<compile_context>
chip_gen: v6e
topology: v6e:2x2x1
jax: 0.10.0
libtpu: 0.0.40
codegen_flags: <defaults>
</compile_context>

<pallas_src>
import jax
import jax.numpy as jnp
from jax import lax
from jax.experimental import pallas as pl
from jax.experimental.pallas import tpu as pltpu


def _round_up(x, m):
    return (x + m - 1) // m * m


# ---------------------------------------------------------------------------
# Feature probe: single resident buffer for grid-invariant inputs.
# ---------------------------------------------------------------------------
_BUFFERED1 = None


def _buffered_one_supported():
    """Detect whether BlockSpec(..., pipeline_mode=pl.Buffered(1)) lowers and runs."""
    global _BUFFERED1
    if _BUFFERED1 is None:
        try:
            def probe(x_ref, o_ref):
                o_ref[...] = x_ref[...] + 1.0

            fn = pl.pallas_call(
                probe,
                out_shape=jax.ShapeDtypeStruct((16, 128), jnp.float32),
                grid=(2,),
                in_specs=[pl.BlockSpec((8, 128), lambda i: (0, 0),
                                       pipeline_mode=pl.Buffered(1))],
                out_specs=pl.BlockSpec((8, 128), lambda i: (i, 0)),
            )
            res = jax.block_until_ready(fn(jnp.zeros((8, 128), jnp.float32)))
            _BUFFERED1 = bool(jnp.all(res == 1.0))
        except Exception:
            _BUFFERED1 = False
    return _BUFFERED1


# ---------------------------------------------------------------------------
# Kernel
# ---------------------------------------------------------------------------
def _make_layer_kernel(S, Tc, Bt, Hp, I_l, merge_proj):
    """One LSTM layer's recurrence over a (batch-tile, time-chunk) grid.

    In:  x (Tc,Bt,I_l) raw input chunk, W_ih^T (I_l,4Hp), W_hh^T (Hp,4Hp),
         bias (1,4Hp) f32, h0/c0 (Bt,Hp).
    Out: hseq (Tc,Bt,Hp) (stream dtype), h_n/c_n (Bt,Hp) f32.
    Scratch: xg chunk (Tc,Bt,4Hp) f32, h/c carries (Bt,Hp) f32 (persist over chunks).
    """
    G = 4 * Hp
    tail = (S % Tc) != 0
    UNROLL = min(Tc, 8)   # partial unroll: LLO visibility without vreg spills

    def kernel(x_ref, wih_ref, whh_ref, bias_ref, h0_ref, c0_ref,
               hseq_ref, hn_ref, cn_ref,
               xg_sc, h_sc, c_sc):
        ci = pl.program_id(1)                       # time-chunk index

        @pl.when(ci == 0)
        def _init():
            h_sc[...] = h0_ref[...].astype(jnp.float32)
            c_sc[...] = c0_ref[...].astype(jnp.float32)

        wih = wih_ref[...]                          # resident
        bias = bias_ref[...].astype(jnp.float32)    # (1, G)

        # ---- non-recurrent input projection for the whole chunk (off the
        # sequential critical path; replaces an HBM round trip of x@W_ih^T) ----
        if merge_proj:
            # tile-aligned merge of (Tc, Bt) -> one MXU-friendly (Tc*Bt, I_l) GEMM
            x2 = x_ref[...].reshape(Tc * Bt, I_l)
            xg2 = jnp.dot(x2, wih, preferred_element_type=jnp.float32) + bias
            xg_sc[...] = xg2.reshape(Tc, Bt, G)
        else:
            # small-batch / bf16 layout-safe path: per-timestep GEMMs (still fused,
            # still independent of h, so they overlap with the recurrence).
            def proj(t, carry):
                xg_sc[t] = jnp.dot(x_ref[t], wih,
                                   preferred_element_type=jnp.float32) + bias
                return carry
            lax.fori_loop(0, Tc, proj, 0, unroll=UNROLL)

        whh = whh_ref[...]                          # resident, hoisted out of loop
        h0v = h_sc[...]
        c0v = c_sc[...]

        def step(t, carry):
            h_prev, c_prev = carry
            # only h_{t-1} @ W_hh^T is on the sequential path
            gates = xg_sc[t] + jnp.dot(h_prev.astype(whh.dtype), whh,
                                       preferred_element_type=jnp.float32)
            # PyTorch gate order i, f, g, o ; slices are 128-lane aligned
            i_g = jax.nn.sigmoid(gates[:, 0 * Hp:1 * Hp])
            f_g = jax.nn.sigmoid(gates[:, 1 * Hp:2 * Hp])
            g_g = jnp.tanh(gates[:, 2 * Hp:3 * Hp])
            o_g = jax.nn.sigmoid(gates[:, 3 * Hp:4 * Hp])
            c_new = f_g * c_prev + i_g * g_g
            h_new = o_g * jnp.tanh(c_new)
            hseq_ref[t] = h_new.astype(hseq_ref.dtype)
            if tail:
                # snapshot the true final state at global step S-1 (last chunk only);
                # padded tail steps after it are never consumed downstream.
                @pl.when(ci * Tc + t == S - 1)
                def _snap():
                    hn_ref[...] = h_new.astype(hn_ref.dtype)
                    cn_ref[...] = c_new.astype(cn_ref.dtype)
            return (h_new, c_new)

        h_f, c_f = lax.fori_loop(0, Tc, step, (h0v, c0v), unroll=UNROLL)
        h_sc[...] = h_f
        c_sc[...] = c_f

        if not tail:
            @pl.when(ci == pl.num_programs(1) - 1)
            def _fin():
                hn_ref[...] = h_f.astype(hn_ref.dtype)
                cn_ref[...] = c_f.astype(cn_ref.dtype)

    return kernel


# ---------------------------------------------------------------------------
# pallas_call builder
# ---------------------------------------------------------------------------
def _build_recurrence(S, Spad, Tc, Bp, Bt, n_bt, Hp, I_l, compute_dtype,
                      merge_proj, vmem_limit):
    G = 4 * Hp
    Sc = Spad // Tc
    kernel = _make_layer_kernel(S, Tc, Bt, Hp, I_l, merge_proj)

    if _buffered_one_supported():
        def resident(shape, index_map):
            return pl.BlockSpec(shape, index_map, pipeline_mode=pl.Buffered(1))
    else:
        def resident(shape, index_map):
            return pl.BlockSpec(shape, index_map)

    return pl.pallas_call(
        kernel,
        out_shape=(
            jax.ShapeDtypeStruct((Spad, Bp, Hp), compute_dtype),  # hidden sequence
            jax.ShapeDtypeStruct((Bp, Hp), jnp.float32),          # h_n (layer)
            jax.ShapeDtypeStruct((Bp, Hp), jnp.float32),          # c_n (layer)
        ),
        grid_spec=pltpu.PrefetchScalarGridSpec(
            num_scalar_prefetch=0,
            grid=(n_bt, Sc),
            in_specs=[
                pl.BlockSpec((Tc, Bt, I_l), lambda b, c: (c, b, 0)),   # x chunk
                resident((I_l, G), lambda b, c: (0, 0)),               # W_ih^T
                resident((Hp, G), lambda b, c: (0, 0)),                # W_hh^T
                resident((1, G), lambda b, c: (0, 0)),                 # bias
                pl.BlockSpec((Bt, Hp), lambda b, c: (b, 0)),           # h0
                pl.BlockSpec((Bt, Hp), lambda b, c: (b, 0)),           # c0
            ],
            out_specs=(
                pl.BlockSpec((Tc, Bt, Hp), lambda b, c: (c, b, 0)),    # hseq
                pl.BlockSpec((Bt, Hp), lambda b, c: (b, 0)),           # h_n
                pl.BlockSpec((Bt, Hp), lambda b, c: (b, 0)),           # c_n
            ),
            scratch_shapes=[
                pltpu.VMEM((Tc, Bt, G), jnp.float32),   # xg chunk
                pltpu.VMEM((Bt, Hp), jnp.float32),      # h carry
                pltpu.VMEM((Bt, Hp), jnp.float32),      # c carry
            ],
        ),
        compiler_params=pltpu.CompilerParams(
            dimension_semantics=("parallel", "arbitrary"),
            vmem_limit_bytes=vmem_limit),
    )


def _vmem_estimate(Tc, Bt, Hp, I_l, cdb, wbuf):
    G = 4 * Hp
    return (2 * Tc * Bt * I_l * cdb          # x chunk (double buffered)
            + 2 * Tc * Bt * Hp * cdb         # hseq chunk (double buffered)
            + wbuf * ((I_l + Hp) * G * cdb + G * 4)   # W_ih^T + W_hh^T + bias
            + 4 * Bt * Hp * 4                # h0/c0 blocks
            + 4 * Bt * Hp * 4                # h_n/c_n blocks
            + Tc * Bt * G * 4                # xg scratch
            + 2 * Bt * Hp * 4)               # carries

_VMEM_BUDGET = 40 << 20                      # keeps double-buffered streaming on v7x


# ---------------------------------------------------------------------------
# Parameter preparation (pad/transpose/cast ONCE)
# ---------------------------------------------------------------------------
def prepare_params(params, *, compute_dtype=jnp.bfloat16):
    H = params["w_hh"][0].shape[1]
    I = params["w_ih"][0].shape[1]
    Hp = _round_up(H, 128)
    Ip = _round_up(I, 128)
    L = len(params["w_ih"])

    def pad_gate_rows(w):
        """(4H, ...) -> (4Hp, ...): zero-pad each of the 4 gate blocks H -> Hp."""
        rest = w.shape[1:]
        w4 = w.reshape(4, H, *rest)
        pad = [(0, 0), (0, Hp - H)] + [(0, 0)] * len(rest)
        return jnp.pad(w4, pad).reshape(4 * Hp, *rest)

    out = {"wih_t": [], "whh_t": [], "bias": []}
    for l in range(L):
        in_l = params["w_ih"][l].shape[1]
        in_p = Ip if l == 0 else Hp
        wih = pad_gate_rows(params["w_ih"][l])                       # (4Hp, in_l)
        wih = jnp.pad(wih, ((0, 0), (0, in_p - in_l)))               # (4Hp, in_p)
        whh = jnp.pad(pad_gate_rows(params["w_hh"][l]),
                      ((0, 0), (0, Hp - H)))                         # (4Hp, Hp)
        bias = pad_gate_rows((params["b_ih"][l] + params["b_hh"][l])
                             .reshape(4 * H, 1))[:, 0]               # (4Hp,)
        out["wih_t"].append(jnp.transpose(wih).astype(compute_dtype))   # (in_p, 4Hp)
        out["whh_t"].append(jnp.transpose(whh).astype(compute_dtype))   # (Hp, 4Hp)
        out["bias"].append(bias.reshape(1, 4 * Hp).astype(jnp.float32))
    return out


# ---------------------------------------------------------------------------
# Wrapper
# ---------------------------------------------------------------------------
def lstm_pallas(x, h0, c0, params, *, time_chunk=64,
                compute_dtype=jnp.bfloat16, prepared=None):
    """x: (B, S, I) batch-first; h0/c0: (L, B, H).

    Returns (out (B, S, O), (h_n (L, B, H), c_n (L, B, H))) matching
    nn.LSTM(batch_first=True) followed by nn.Linear (eval mode).
    """
    B, S, I = x.shape
    L, _, H = h0.shape
    w_fc = params["w_fc"]
    b_fc = params["b_fc"]
    out_dt = x.dtype

    Hp = _round_up(H, 128)      # lane-align gate slices, lane-dense hidden output
    Bp = _round_up(B, 8)        # fill sublanes
    Ip = _round_up(I, 128)

    if prepared is None:
        prepared = prepare_params(params, compute_dtype=compute_dtype)
    compute_dtype = prepared["whh_t"][0].dtype

    # batch tiling: split padded batch in two for v7x's second TensorCore
    Bt = Bp // 2 if (Bp >= 16 and Bp % 16 == 0) else Bp
    n_bt = Bp // Bt

    cdb = jnp.dtype(compute_dtype).itemsize
    wbuf = 1 if _buffered_one_supported() else 2
    I_max = max(Ip, Hp)
    Tc = max(1, min(time_chunk, S))
    while Tc > 8 and _vmem_estimate(Tc, Bt, Hp, I_max, cdb, wbuf) > _VMEM_BUDGET:
        Tc = (Tc + 1) // 2
    Sc = pl.cdiv(S, Tc)
    Spad = Sc * Tc
    est = _vmem_estimate(Tc, Bt, Hp, I_max, cdb, wbuf)
    vmem_limit = int(min(100 << 20, max(32 << 20, int(est * 1.4) + (4 << 20))))

    # The (Tc,Bt)->(Tc*Bt) merge inside the kernel is only a free retiling when
    # Bt is a multiple of the native sublane tile for the stream dtype.
    merge_proj = (Bt % max(1, 32 // cdb)) == 0

    # time-major, zero-padded inputs / state.
    x_tm = jnp.transpose(x, (1, 0, 2))
    x_tm = jnp.pad(x_tm, ((0, Spad - S), (0, Bp - B), (0, Ip - I))).astype(compute_dtype)
    h_state = jnp.pad(h0.astype(jnp.float32), ((0, 0), (0, Bp - B), (0, Hp - H)))
    c_state = jnp.pad(c0.astype(jnp.float32), ((0, 0), (0, Bp - B), (0, Hp - H)))

    rec_cache = {}

    def recurrence_for(I_l):
        if I_l not in rec_cache:
            rec_cache[I_l] = _build_recurrence(
                S, Spad, Tc, Bp, Bt, n_bt, Hp, I_l, compute_dtype,
                merge_proj, vmem_limit)
        return rec_cache[I_l]

    seq_in = x_tm                                          # (Spad, Bp, I_l)
    h_n, c_n = [], []
    for l in range(L):
        I_l = Ip if l == 0 else Hp
        hseq, hT, cT = recurrence_for(I_l)(
            seq_in, prepared["wih_t"][l], prepared["whh_t"][l],
            prepared["bias"][l], h_state[l], c_state[l])
        h_n.append(hT)
        c_n.append(cT)
        # TODO(synk): inter-layer dropout is train-only; inference = identity.
        seq_in = hseq                                      # next layer's input

    # Final fully-connected projection: one lane-dense matmul over all rows.
    top = seq_in[:S, :B, :H].astype(jnp.float32)           # (S, B, H)
    out = (jnp.dot(top, jnp.transpose(w_fc).astype(jnp.float32),
                   precision=lax.Precision.HIGHEST)
           + b_fc.astype(jnp.float32))                     # (S, B, O)
    out = jnp.transpose(out, (1, 0, 2)).astype(out_dt)     # (B, S, O)

    h_n = jnp.stack(h_n)[:, :B, :H].astype(h0.dtype)
    c_n = jnp.stack(c_n)[:, :B, :H].astype(c0.dtype)
    return out, (h_n, c_n)


# ---------------------------------------------------------------------------
# Pure-JAX reference + init
# ---------------------------------------------------------------------------
def lstm_ref(x, h0, c0, params):
    """Pure-JAX reference mirroring torch.nn.LSTM (eval) + nn.Linear."""
    HI = lax.Precision.HIGHEST
    L = h0.shape[0]
    layer_in = x
    h_n, c_n = [], []
    for l in range(L):
        w_ih = params["w_ih"][l]
        w_hh = params["w_hh"][l]
        b = params["b_ih"][l] + params["b_hh"][l]

        def step(carry, x_t, w_ih=w_ih, w_hh=w_hh, b=b):
            h, c = carry
            gates = (jnp.dot(x_t, w_ih.T, precision=HI)
                     + jnp.dot(h, w_hh.T, precision=HI) + b)
            i, f, g, o = jnp.split(gates, 4, axis=-1)
            i, f, o = jax.nn.sigmoid(i), jax.nn.sigmoid(f), jax.nn.sigmoid(o)
            g = jnp.tanh(g)
            c = f * c + i * g
            h = o * jnp.tanh(c)
            return (h, c), h

        (hT, cT), outs = jax.lax.scan(step, (h0[l], c0[l]),
                                      jnp.transpose(layer_in, (1, 0, 2)))
        layer_in = jnp.transpose(outs, (1, 0, 2))
        h_n.append(hT)
        c_n.append(cT)
    out = jnp.dot(layer_in, params["w_fc"].T, precision=HI) + params["b_fc"]
    return out, (jnp.stack(h_n), jnp.stack(c_n))


def init_params(key, input_dim, hidden_dim, output_dim, n_layers):
    """PyTorch-style uniform(-1/sqrt(H), 1/sqrt(H)) init, deterministic."""
    k = 1.0 / jnp.sqrt(hidden_dim)
    params = {"w_ih": [], "w_hh": [], "b_ih": [], "b_hh": []}
    for l in range(n_layers):
        in_l = input_dim if l == 0 else hidden_dim
        key, k1, k2, k3, k4 = jax.random.split(key, 5)
        params["w_ih"].append(jax.random.uniform(k1, (4 * hidden_dim, in_l),
                                                 jnp.float32, -k, k))
        params["w_hh"].append(jax.random.uniform(k2, (4 * hidden_dim, hidden_dim),
                                                 jnp.float32, -k, k))
        params["b_ih"].append(jax.random.uniform(k3, (4 * hidden_dim,),
                                                 jnp.float32, -k, k))
        params["b_hh"].append(jax.random.uniform(k4, (4 * hidden_dim,),
                                                 jnp.float32, -k, k))
    key, k1, k2 = jax.random.split(key, 3)
    params["w_fc"] = jax.random.uniform(k1, (output_dim, hidden_dim),
                                        jnp.float32, -k, k)
    params["b_fc"] = jax.random.uniform(k2, (output_dim,), jnp.float32, -k, k)
    return params


if __name__ == "__main__":
    input_dim, hidden_dim, output_dim, n_layers = 4, 32, 2, 2
    batch, seq = 2, 8

    key = jax.random.PRNGKey(0)
    key, kx = jax.random.split(key)
    x = jax.random.normal(kx, (batch, seq, input_dim), jnp.float32)
    # init_hidden(batch_size) -> zeros
    h0 = jnp.zeros((n_layers, batch, hidden_dim), jnp.float32)
    c0 = jnp.zeros((n_layers, batch, hidden_dim), jnp.float32)
    params = init_params(key, input_dim, hidden_dim, output_dim, n_layers)

    out_r, (h_r, c_r) = lstm_ref(x, h0, c0, params)

    # --- exactness path: f32 weights/streams, tight tolerance ---
    out32, (h32, c32) = lstm_pallas(x, h0, c0, params, compute_dtype=jnp.float32)
    out32 = jax.block_until_ready(out32)
    h32 = jax.block_until_ready(h32)
    c32 = jax.block_until_ready(c32)
    assert out32.shape == (batch, seq, output_dim)
    assert h32.shape == (n_layers, batch, hidden_dim)
    assert c32.shape == (n_layers, batch, hidden_dim)
    assert jnp.allclose(out32, out_r, atol=1e-4), "f32 output mismatch"
    assert jnp.allclose(h32, h_r, atol=1e-4), "f32 h_n mismatch"
    assert jnp.allclose(c32, c_r, atol=1e-4), "f32 c_n mismatch"

    # --- default performance path: bf16 weights/streams, f32 state/accum ---
    prepared = prepare_params(params, compute_dtype=jnp.bfloat16)   # pad/cast once
    out_bf, (h_bf, c_bf) = lstm_pallas(x, h0, c0, params, prepared=prepared)
    out_bf = jax.block_until_ready(out_bf)
    h_bf = jax.block_until_ready(h_bf)
    c_bf = jax.block_until_ready(c_bf)
    assert out_bf.shape == (batch, seq, output_dim)
    assert jnp.allclose(out_bf, out_r, atol=5e-2), "bf16 output mismatch"
    assert jnp.allclose(h_bf, h_r, atol=5e-2), "bf16 h_n mismatch"
    assert jnp.allclose(c_bf, c_r, atol=5e-2), "bf16 c_n mismatch"

    print("KERNEL_OK")
</pallas_src>

<mosaic_0001>
module attributes {stable_mosaic.version = 11 : i64} {
  func.func @probe(%arg0: i32, %arg1: memref<8x128xf32, #tpu.memory_space<vmem>>, %arg2: memref<8x128xf32, #tpu.memory_space<vmem>>) attributes {dimension_semantics = [#tpu.dimension_semantics<arbitrary>], iteration_bounds = array<i64: 2>, scalar_prefetch = 0 : i64, scratch_operands = 0 : i64, tpu.core_type = #tpu.core_type<tc>, window_params = [{pipeline_mode = #tpu.pipeline_mode<synchronous>, transform_indices = @transform_0, window_bounds = array<i64: 8, 128>}, {transform_indices = @transform_1, window_bounds = array<i64: 8, 128>}]} {
    %c0 = arith.constant 0 : index
    %c0_0 = arith.constant 0 : index
    %0 = vector.load %arg1[%c0, %c0_0] : memref<8x128xf32, #tpu.memory_space<vmem>>, vector<8x128xf32>
    %cst = arith.constant 1.000000e+00 : f32
    %1 = vector.broadcast %cst : f32 to vector<8x128xf32>
    %2 = arith.addf %0, %1 : vector<8x128xf32>
    %c0_1 = arith.constant 0 : index
    %c0_2 = arith.constant 0 : index
    %3 = vector.load %arg2[%c0_1, %c0_2] : memref<8x128xf32, #tpu.memory_space<vmem>>, vector<8x128xf32>
    tpu.vector_store %arg2[%c0_1, %c0_2], %2 {strides = array<i32>} : memref<8x128xf32, #tpu.memory_space<vmem>>, vector<8x128xf32>,
    return
  }
  func.func @transform_0(%arg0: i32) -> (i32, i32) {
    %c0_i32 = arith.constant 0 : i32
    %c0_i32_0 = arith.constant 0 : i32
    %c0_i32_1 = arith.constant 0 : i32
    return %c0_i32, %c0_i32_0 : i32, i32
  }
  func.func @transform_1(%arg0: i32) -> (i32, i32) {
    %c0_i32 = arith.constant 0 : i32
    %c0_i32_0 = arith.constant 0 : i32
    return %arg0, %c0_i32 : i32, i32
  }
}

module attributes {stable_mosaic.version = 11 : i64} {
  func.func @kernel(%arg0: i32, %arg1: i32, %arg2: memref<8x8x128xf32, #tpu.memory_space<vmem>>, %arg3: memref<128x512xf32, #tpu.memory_space<vmem>>, %arg4: memref<128x512xf32, #tpu.memory_space<vmem>>, %arg5: memref<1x512xf32, #tpu.memory_space<vmem>>, %arg6: memref<8x128xf32, #tpu.memory_space<vmem>>, %arg7: memref<8x128xf32, #tpu.memory_space<vmem>>, %arg8: memref<8x8x128xf32, #tpu.memory_space<vmem>>, %arg9: memref<8x128xf32, #tpu.memory_space<vmem>>, %arg10: memref<8x128xf32, #tpu.memory_space<vmem>>, %arg11: memref<8x8x512xf32, #tpu.memory_space<vmem>>, %arg12: memref<8x128xf32, #tpu.memory_space<vmem>>, %arg13: memref<8x128xf32, #tpu.memory_space<vmem>>) attributes {dimension_semantics = [#tpu.dimension_semantics<parallel>, #tpu.dimension_semantics<arbitrary>], iteration_bounds = array<i64: 1, 1>, scalar_prefetch = 0 : i64, scratch_operands = 3 : i64, tpu.core_type = #tpu.core_type<tc>, window_params = [{transform_indices = @transform_0, window_bounds = array<i64: 8, 8, 128>}, {pipeline_mode = #tpu.pipeline_mode<synchronous>, transform_indices = @transform_1, window_bounds = array<i64: 128, 512>}, {pipeline_mode = #tpu.pipeline_mode<synchronous>, transform_indices = @transform_2, window_bounds = array<i64: 128, 512>}, {pipeline_mode = #tpu.pipeline_mode<synchronous>, transform_indices = @transform_3, window_bounds = array<i64: 1, 512>}, {transform_indices = @transform_4, window_bounds = array<i64: 8, 128>}, {transform_indices = @transform_5, window_bounds = array<i64: 8, 128>}, {transform_indices = @transform_6, window_bounds = array<i64: 8, 8, 128>}, {transform_indices = @transform_7, window_bounds = array<i64: 8, 128>}, {transform_indices = @transform_8, window_bounds = array<i64: 8, 128>}]} {
    %c0_i32 = arith.constant 0 : i32
    %0 = arith.cmpi eq, %arg1, %c0_i32 : i32
    %1 = arith.extui %0 : i1 to i32
    %c0_i32_0 = arith.constant 0 : i32
    %2 = arith.cmpi ne, %1, %c0_i32_0 : i32
    scf.if %2 {
      %c0_87 = arith.constant 0 : index
      %c0_88 = arith.constant 0 : index
      %292 = vector.load %arg6[%c0_87, %c0_88] : memref<8x128xf32, #tpu.memory_space<vmem>>, vector<8x128xf32>
      %c0_89 = arith.constant 0 : index
      %c0_90 = arith.constant 0 : index
      %293 = vector.load %arg12[%c0_89, %c0_90] : memref<8x128xf32, #tpu.memory_space<vmem>>, vector<8x128xf32>
      tpu.vector_store %arg12[%c0_89, %c0_90], %292 {strides = array<i32>} : memref<8x128xf32, #tpu.memory_space<vmem>>, vector<8x128xf32>,
      %c0_91 = arith.constant 0 : index
      %c0_92 = arith.constant 0 : index
      %294 = vector.load %arg7[%c0_91, %c0_92] : memref<8x128xf32, #tpu.memory_space<vmem>>, vector<8x128xf32>
      %c0_93 = arith.constant 0 : index
      %c0_94 = arith.constant 0 : index
      %295 = vector.load %arg13[%c0_93, %c0_94] : memref<8x128xf32, #tpu.memory_space<vmem>>, vector<8x128xf32>
      tpu.vector_store %arg13[%c0_93, %c0_94], %294 {strides = array<i32>} : memref<8x128xf32, #tpu.memory_space<vmem>>, vector<8x128xf32>,
    } else {
    }
    %c0 = arith.constant 0 : index
    %c0_1 = arith.constant 0 : index
    %3 = vector.load %arg3[%c0, %c0_1] : memref<128x512xf32, #tpu.memory_space<vmem>>, vector<128x512xf32>
    %c0_2 = arith.constant 0 : index
    %c0_3 = arith.constant 0 : index
    %4 = vector.load %arg5[%c0_2, %c0_3] : memref<1x512xf32, #tpu.memory_space<vmem>>, vector<1x512xf32>
    %c0_4 = arith.constant 0 : index
    %c0_5 = arith.constant 0 : index
    %c0_6 = arith.constant 0 : index
    %5 = vector.load %arg2[%c0_4, %c0_5, %c0_6] : memref<8x8x128xf32, #tpu.memory_space<vmem>>, vector<8x8x128xf32>
    %6 = vector.shape_cast %5 : vector<8x8x128xf32> to vector<64x128xf32>
    %cst = arith.constant dense<0.000000e+00> : vector<64x512xf32>
    %7 = tpu.matmul %6, %3, %cst {dimension_numbers = #tpu.dot_dimension_numbers<[1], [0], [0], [1], [0, 0, 1, 1], [], []>} : vector<64x128xf32>, vector<128x512xf32>, vector<64x512xf32> -> vector<64x512xf32>
    %8 = vector.broadcast %4 : vector<1x512xf32> to vector<64x512xf32>
    %9 = arith.addf %7, %8 : vector<64x512xf32>
    %10 = vector.shape_cast %9 : vector<64x512xf32> to vector<8x8x512xf32>
    %c0_7 = arith.constant 0 : index
    %c0_8 = arith.constant 0 : index
    %c0_9 = arith.constant 0 : index
    %11 = vector.load %arg11[%c0_7, %c0_8, %c0_9] : memref<8x8x512xf32, #tpu.memory_space<vmem>>, vector<8x8x512xf32>
    tpu.vector_store %arg11[%c0_7, %c0_8, %c0_9], %10 {strides = array<i32>} : memref<8x8x512xf32, #tpu.memory_space<vmem>>, vector<8x8x512xf32>,
    %c0_10 = arith.constant 0 : index
    %c0_11 = arith.constant 0 : index
    %12 = vector.load %arg4[%c0_10, %c0_11] : memref<128x512xf32, #tpu.memory_space<vmem>>, vector<128x512xf32>
    %c0_12 = arith.constant 0 : index
    %c0_13 = arith.constant 0 : index
    %13 = vector.load %arg12[%c0_12, %c0_13] : memref<8x128xf32, #tpu.memory_space<vmem>>, vector<8x128xf32>
    %c0_14 = arith.constant 0 : index
    %c0_15 = arith.constant 0 : index
    %14 = vector.load %arg13[%c0_14, %c0_15] : memref<8x128xf32, #tpu.memory_space<vmem>>, vector<8x128xf32>
    %c0_i32_16 = arith.constant 0 : i32
    %15 = arith.index_cast %c0_i32_16 : i32 to index
    %c0_17 = arith.constant 0 : index
    %c0_18 = arith.constant 0 : index
    %16 = vector.load %arg11[%15, %c0_17, %c0_18] : memref<8x8x512xf32, #tpu.memory_space<vmem>>, vector<1x8x512xf32>
    %17 = vector.shape_cast %16 : vector<1x8x512xf32> to vector<8x512xf32>
    %cst_19 = arith.constant dense<0.000000e+00> : vector<8x512xf32>
    %18 = tpu.matmul %13, %12, %cst_19 {dimension_numbers = #tpu.dot_dimension_numbers<[1], [0], [0], [1], [0, 0, 1, 1], [], []>} : vector<8x128xf32>, vector<128x512xf32>, vector<8x512xf32> -> vector<8x512xf32>
    %19 = arith.addf %17, %18 : vector<8x512xf32>
    %20 = vector.extract_strided_slice %19 {offsets = [0, 0], sizes = [8, 128], strides = [1, 1]} : vector<8x512xf32> to vector<8x128xf32>
    %21 = arith.negf %20 : vector<8x128xf32>
    %22 = math.exp %21 : vector<8x128xf32>
    %cst_20 = arith.constant 1.000000e+00 : f32
    %23 = vector.broadcast %cst_20 : f32 to vector<8x128xf32>
    %24 = arith.addf %23, %22 : vector<8x128xf32>
    %25 = arith.divf %23, %24 : vector<8x128xf32>
    %26 = vector.extract_strided_slice %19 {offsets = [0, 128], sizes = [8, 128], strides = [1, 1]} : vector<8x512xf32> to vector<8x128xf32>
    %27 = arith.negf %26 : vector<8x128xf32>
    %28 = math.exp %27 : vector<8x128xf32>
    %cst_21 = arith.constant 1.000000e+00 : f32
    %29 = vector.broadcast %cst_21 : f32 to vector<8x128xf32>
    %30 = arith.addf %29, %28 : vector<8x128xf32>
    %31 = arith.divf %29, %30 : vector<8x128xf32>
    %32 = vector.extract_strided_slice %19 {offsets = [0, 256], sizes = [8, 128], strides = [1, 1]} : vector<8x512xf32> to vector<8x128xf32>
    %33 = math.tanh %32 : vector<8x128xf32>
    %34 = vector.extract_strided_slice %19 {offsets = [0, 384], sizes = [8, 128], strides = [1, 1]} : vector<8x512xf32> to vector<8x128xf32>
    %35 = arith.negf %34 : vector<8x128xf32>
    %36 = math.exp %35 : vector<8x128xf32>
    %cst_22 = arith.constant 1.000000e+00 : f32
    %37 = vector.broadcast %cst_22 : f32 to vector<8x128xf32>
    %38 = arith.addf %37, %36 : vector<8x128xf32>
    %39 = arith.divf %37, %38 : vector<8x128xf32>
    %40 = arith.mulf %31, %14 : vector<8x128xf32>
    %41 = arith.mulf %25, %33 : vector<8x128xf32>
    %42 = arith.addf %40, %41 : vector<8x128xf32>
    %43 = math.tanh %42 : vector<8x128xf32>
    %44 = arith.mulf %39, %43 : vector<8x128xf32>
    %45 = arith.index_cast %c0_i32_16 : i32 to index
    %c0_23 = arith.constant 0 : index
    %c0_24 = arith.constant 0 : index
    %46 = vector.load %arg8[%45, %c0_23, %c0_24] : memref<8x8x128xf32, #tpu.memory_space<vmem>>, vector<1x8x128xf32>
    %47 = vector.shape_cast %46 : vector<1x8x128xf32> to vector<8x128xf32>
    %48 = vector.shape_cast %44 : vector<8x128xf32> to vector<1x8x128xf32>
    tpu.vector_store %arg8[%45, %c0_23, %c0_24], %48 {strides = array<i32>} : memref<8x8x128xf32, #tpu.memory_space<vmem>>, vector<1x8x128xf32>,
    %c1_i32 = arith.constant 1 : i32
    %49 = arith.index_cast %c1_i32 : i32 to index
    %c0_25 = arith.constant 0 : index
    %c0_26 = arith.constant 0 : index
    %50 = vector.load %arg11[%49, %c0_25, %c0_26] : memref<8x8x512xf32, #tpu.memory_space<vmem>>, vector<1x8x512xf32>
    %51 = vector.shape_cast %50 : vector<1x8x512xf32> to vector<8x512xf32>
    %cst_27 = arith.constant dense<0.000000e+00> : vector<8x512xf32>
    %52 = tpu.matmul %44, %12, %cst_27 {dimension_numbers = #tpu.dot_dimension_numbers<[1], [0], [0], [1], [0, 0, 1, 1], [], []>} : vector<8x128xf32>, vector<128x512xf32>, vector<8x512xf32> -> vector<8x512xf32>
    %53 = arith.addf %51, %52 : vector<8x512xf32>
    %54 = vector.extract_strided_slice %53 {offsets = [0, 0], sizes = [8, 128], strides = [1, 1]} : vector<8x512xf32> to vector<8x128xf32>
    %55 = arith.negf %54 : vector<8x128xf32>
    %56 = math.exp %55 : vector<8x128xf32>
    %cst_28 = arith.constant 1.000000e+00 : f32
    %57 = vector.broadcast %cst_28 : f32 to vector<8x128xf32>
    %58 = arith.addf %57, %56 : vector<8x128xf32>
    %59 = arith.divf %57, %58 : vector<8x128xf32>
    %60 = vector.extract_strided_slice %53 {offsets = [0, 128], sizes = [8, 128], strides = [1, 1]} : vector<8x512xf32> to vector<8x128xf32>
    %61 = arith.negf %60 : vector<8x128xf32>
    %62 = math.exp %61 : vector<8x128xf32>
    %cst_29 = arith.constant 1.000000e+00 : f32
    %63 = vector.broadcast %cst_29 : f32 to vector<8x128xf32>
    %64 = arith.addf %63, %62 : vector<8x128xf32>
    %65 = arith.divf %63, %64 : vector<8x128xf32>
    %66 = vector.extract_strided_slice %53 {offsets = [0, 256], sizes = [8, 128], strides = [1, 1]} : vector<8x512xf32> to vector<8x128xf32>
    %67 = math.tanh %66 : vector<8x128xf32>
    %68 = vector.extract_strided_slice %53 {offsets = [0, 384], sizes = [8, 128], strides = [1, 1]} : vector<8x512xf32> to vector<8x128xf32>
    %69 = arith.negf %68 : vector<8x128xf32>
    %70 = math.exp %69 : vector<8x128xf32>
    %cst_30 = arith.constant 1.000000e+00 : f32
    %71 = vector.broadcast %cst_30 : f32 to vector<8x128xf32>
    %72 = arith.addf %71, %70 : vector<8x128xf32>
    %73 = arith.divf %71, %72 : vector<8x128xf32>
    %74 = arith.mulf %65, %42 : vector<8x128xf32>
    %75 = arith.mulf %59, %67 : vector<8x128xf32>
    %76 = arith.addf %74, %75 : vector<8x128xf32>
    %77 = math.tanh %76 : vector<8x128xf32>
    %78 = arith.mulf %73, %77 : vector<8x128xf32>
    %79 = arith.index_cast %c1_i32 : i32 to index
    %c0_31 = arith.constant 0 : index
    %c0_32 = arith.constant 0 : index
    %80 = vector.load %arg8[%79, %c0_31, %c0_32] : memref<8x8x128xf32, #tpu.memory_space<vmem>>, vector<1x8x128xf32>
    %81 = vector.shape_cast %80 : vector<1x8x128xf32> to vector<8x128xf32>
    %82 = vector.shape_cast %78 : vector<8x128xf32> to vector<1x8x128xf32>
    tpu.vector_store %arg8[%79, %c0_31, %c0_32], %82 {strides = array<i32>} : memref<8x8x128xf32, #tpu.memory_space<vmem>>, vector<1x8x128xf32>,
    %c2_i32 = arith.constant 2 : i32
    %83 = arith.index_cast %c2_i32 : i32 to index
    %c0_33 = arith.constant 0 : index
    %c0_34 = arith.constant 0 : index
    %84 = vector.load %arg11[%83, %c0_33, %c0_34] : memref<8x8x512xf32, #tpu.memory_space<vmem>>, vector<1x8x512xf32>
    %85 = vector.shape_cast %84 : vector<1x8x512xf32> to vector<8x512xf32>
    %cst_35 = arith.constant dense<0.000000e+00> : vector<8x512xf32>
    %86 = tpu.matmul %78, %12, %cst_35 {dimension_numbers = #tpu.dot_dimension_numbers<[1], [0], [0], [1], [0, 0, 1, 1], [], []>} : vector<8x128xf32>, vector<128x512xf32>, vector<8x512xf32> -> vector<8x512xf32>
    %87 = arith.addf %85, %86 : vector<8x512xf32>
    %88 = vector.extract_strided_slice %87 {offsets = [0, 0], sizes = [8, 128], strides = [1, 1]} : vector<8x512xf32> to vector<8x128xf32>
    %89 = arith.negf %88 : vector<8x128xf32>
    %90 = math.exp %89 : vector<8x128xf32>
    %cst_36 = arith.constant 1.000000e+00 : f32
    %91 = vector.broadcast %cst_36 : f32 to vector<8x128xf32>
    %92 = arith.addf %91, %90 : vector<8x128xf32>
    %93 = arith.divf %91, %92 : vector<8x128xf32>
    %94 = vector.extract_strided_slice %87 {offsets = [0, 128], sizes = [8, 128], strides = [1, 1]} : vector<8x512xf32> to vector<8x128xf32>
    %95 = arith.negf %94 : vector<8x128xf32>
    %96 = math.exp %95 : vector<8x128xf32>
    %cst_37 = arith.constant 1.000000e+00 : f32
    %97 = vector.broadcast %cst_37 : f32 to vector<8x128xf32>
    %98 = arith.addf %97, %96 : vector<8x128xf32>
    %99 = arith.divf %97, %98 : vector<8x128xf32>
    %100 = vector.extract_strided_slice %87 {offsets = [0, 256], sizes = [8, 128], strides = [1, 1]} : vector<8x512xf32> to vector<8x128xf32>
    %101 = math.tanh %100 : vector<8x128xf32>
    %102 = vector.extract_strided_slice %87 {offsets = [0, 384], sizes = [8, 128], strides = [1, 1]} : vector<8x512xf32> to vector<8x128xf32>
    %103 = arith.negf %102 : vector<8x128xf32>
    %104 = math.exp %103 : vector<8x128xf32>
    %cst_38 = arith.constant 1.000000e+00 : f32
    %105 = vector.broadcast %cst_38 : f32 to vector<8x128xf32>
    %106 = arith.addf %105, %104 : vector<8x128xf32>
    %107 = arith.divf %105, %106 : vector<8x128xf32>
    %108 = arith.mulf %99, %76 : vector<8x128xf32>
    %109 = arith.mulf %93, %101 : vector<8x128xf32>
    %110 = arith.addf %108, %109 : vector<8x128xf32>
    %111 = math.tanh %110 : vector<8x128xf32>
    %112 = arith.mulf %107, %111 : vector<8x128xf32>
    %113 = arith.index_cast %c2_i32 : i32 to index
    %c0_39 = arith.constant 0 : index
    %c0_40 = arith.constant 0 : index
    %114 = vector.load %arg8[%113, %c0_39, %c0_40] : memref<8x8x128xf32, #tpu.memory_space<vmem>>, vector<1x8x128xf32>
    %115 = vector.shape_cast %114 : vector<1x8x128xf32> to vector<8x128xf32>
    %116 = vector.shape_cast %112 : vector<8x128xf32> to vector<1x8x128xf32>
    tpu.vector_store %arg8[%113, %c0_39, %c0_40], %116 {strides = array<i32>} : memref<8x8x128xf32, #tpu.memory_space<vmem>>, vector<1x8x128xf32>,
    %c3_i32 = arith.constant 3 : i32
    %117 = arith.index_cast %c3_i32 : i32 to index
    %c0_41 = arith.constant 0 : index
    %c0_42 = arith.constant 0 : index
    %118 = vector.load %arg11[%117, %c0_41, %c0_42] : memref<8x8x512xf32, #tpu.memory_space<vmem>>, vector<1x8x512xf32>
    %119 = vector.shape_cast %118 : vector<1x8x512xf32> to vector<8x512xf32>
    %cst_43 = arith.constant dense<0.000000e+00> : vector<8x512xf32>
    %120 = tpu.matmul %112, %12, %cst_43 {dimension_numbers = #tpu.dot_dimension_numbers<[1], [0], [0], [1], [0, 0, 1, 1], [], []>} : vector<8x128xf32>, vector<128x512xf32>, vector<8x512xf32> -> vector<8x512xf32>
    %121 = arith.addf %119, %120 : vector<8x512xf32>
    %122 = vector.extract_strided_slice %121 {offsets = [0, 0], sizes = [8, 128], strides = [1, 1]} : vector<8x512xf32> to vector<8x128xf32>
    %123 = arith.negf %122 : vector<8x128xf32>
    %124 = math.exp %123 : vector<8x128xf32>
    %cst_44 = arith.constant 1.000000e+00 : f32
    %125 = vector.broadcast %cst_44 : f32 to vector<8x128xf32>
    %126 = arith.addf %125, %124 : vector<8x128xf32>
    %127 = arith.divf %125, %126 : vector<8x128xf32>
    %128 = vector.extract_strided_slice %121 {offsets = [0, 128], sizes = [8, 128], strides = [1, 1]} : vector<8x512xf32> to vector<8x128xf32>
    %129 = arith.negf %128 : vector<8x128xf32>
    %130 = math.exp %129 : vector<8x128xf32>
    %cst_45 = arith.constant 1.000000e+00 : f32
    %131 = vector.broadcast %cst_45 : f32 to vector<8x128xf32>
    %132 = arith.addf %131, %130 : vector<8x128xf32>
    %133 = arith.divf %131, %132 : vector<8x128xf32>
    %134 = vector.extract_strided_slice %121 {offsets = [0, 256], sizes = [8, 128], strides = [1, 1]} : vector<8x512xf32> to vector<8x128xf32>
    %135 = math.tanh %134 : vector<8x128xf32>
    %136 = vector.extract_strided_slice %121 {offsets = [0, 384], sizes = [8, 128], strides = [1, 1]} : vector<8x512xf32> to vector<8x128xf32>
    %137 = arith.negf %136 : vector<8x128xf32>
    %138 = math.exp %137 : vector<8x128xf32>
    %cst_46 = arith.constant 1.000000e+00 : f32
    %139 = vector.broadcast %cst_46 : f32 to vector<8x128xf32>
    %140 = arith.addf %139, %138 : vector<8x128xf32>
    %141 = arith.divf %139, %140 : vector<8x128xf32>
    %142 = arith.mulf %133, %110 : vector<8x128xf32>
    %143 = arith.mulf %127, %135 : vector<8x128xf32>
    %144 = arith.addf %142, %143 : vector<8x128xf32>
    %145 = math.tanh %144 : vector<8x128xf32>
    %146 = arith.mulf %141, %145 : vector<8x128xf32>
    %147 = arith.index_cast %c3_i32 : i32 to index
    %c0_47 = arith.constant 0 : index
    %c0_48 = arith.constant 0 : index
    %148 = vector.load %arg8[%147, %c0_47, %c0_48] : memref<8x8x128xf32, #tpu.memory_space<vmem>>, vector<1x8x128xf32>
    %149 = vector.shape_cast %148 : vector<1x8x128xf32> to vector<8x128xf32>
    %150 = vector.shape_cast %146 : vector<8x128xf32> to vector<1x8x128xf32>
    tpu.vector_store %arg8[%147, %c0_47, %c0_48], %150 {strides = array<i32>} : memref<8x8x128xf32, #tpu.memory_space<vmem>>, vector<1x8x128xf32>,
    %c4_i32 = arith.constant 4 : i32
    %151 = arith.index_cast %c4_i32 : i32 to index
    %c0_49 = arith.constant 0 : index
    %c0_50 = arith.constant 0 : index
    %152 = vector.load %arg11[%151, %c0_49, %c0_50] : memref<8x8x512xf32, #tpu.memory_space<vmem>>, vector<1x8x512xf32>
    %153 = vector.shape_cast %152 : vector<1x8x512xf32> to vector<8x512xf32>
    %cst_51 = arith.constant dense<0.000000e+00> : vector<8x512xf32>
    %154 = tpu.matmul %146, %12, %cst_51 {dimension_numbers = #tpu.dot_dimension_numbers<[1], [0], [0], [1], [0, 0, 1, 1], [], []>} : vector<8x128xf32>, vector<128x512xf32>, vector<8x512xf32> -> vector<8x512xf32>
    %155 = arith.addf %153, %154 : vector<8x512xf32>
    %156 = vector.extract_strided_slice %155 {offsets = [0, 0], sizes = [8, 128], strides = [1, 1]} : vector<8x512xf32> to vector<8x128xf32>
    %157 = arith.negf %156 : vector<8x128xf32>
    %158 = math.exp %157 : vector<8x128xf32>
    %cst_52 = arith.constant 1.000000e+00 : f32
    %159 = vector.broadcast %cst_52 : f32 to vector<8x128xf32>
    %160 = arith.addf %159, %158 : vector<8x128xf32>
    %161 = arith.divf %159, %160 : vector<8x128xf32>
    %162 = vector.extract_strided_slice %155 {offsets = [0, 128], sizes = [8, 128], strides = [1, 1]} : vector<8x512xf32> to vector<8x128xf32>
    %163 = arith.negf %162 : vector<8x128xf32>
    %164 = math.exp %163 : vector<8x128xf32>
    %cst_53 = arith.constant 1.000000e+00 : f32
    %165 = vector.broadcast %cst_53 : f32 to vector<8x128xf32>
    %166 = arith.addf %165, %164 : vector<8x128xf32>
    %167 = arith.divf %165, %166 : vector<8x128xf32>
    %168 = vector.extract_strided_slice %155 {offsets = [0, 256], sizes = [8, 128], strides = [1, 1]} : vector<8x512xf32> to vector<8x128xf32>
    %169 = math.tanh %168 : vector<8x128xf32>
    %170 = vector.extract_strided_slice %155 {offsets = [0, 384], sizes = [8, 128], strides = [1, 1]} : vector<8x512xf32> to vector<8x128xf32>
    %171 = arith.negf %170 : vector<8x128xf32>
    %172 = math.exp %171 : vector<8x128xf32>
    %cst_54 = arith.constant 1.000000e+00 : f32
    %173 = vector.broadcast %cst_54 : f32 to vector<8x128xf32>
    %174 = arith.addf %173, %172 : vector<8x128xf32>
    %175 = arith.divf %173, %174 : vector<8x128xf32>
    %176 = arith.mulf %167, %144 : vector<8x128xf32>
    %177 = arith.mulf %161, %169 : vector<8x128xf32>
    %178 = arith.addf %176, %177 : vector<8x128xf32>
    %179 = math.tanh %178 : vector<8x128xf32>
    %180 = arith.mulf %175, %179 : vector<8x128xf32>
    %181 = arith.index_cast %c4_i32 : i32 to index
    %c0_55 = arith.constant 0 : index
    %c0_56 = arith.constant 0 : index
    %182 = vector.load %arg8[%181, %c0_55, %c0_56] : memref<8x8x128xf32, #tpu.memory_space<vmem>>, vector<1x8x128xf32>
    %183 = vector.shape_cast %182 : vector<1x8x128xf32> to vector<8x128xf32>
    %184 = vector.shape_cast %180 : vector<8x128xf32> to vector<1x8x128xf32>
    tpu.vector_store %arg8[%181, %c0_55, %c0_56], %184 {strides = array<i32>} : memref<8x8x128xf32, #tpu.memory_space<vmem>>, vector<1x8x128xf32>,
    %c5_i32 = arith.constant 5 : i32
    %185 = arith.index_cast %c5_i32 : i32 to index
    %c0_57 = arith.constant 0 : index
    %c0_58 = arith.constant 0 : index
    %186 = vector.load %arg11[%185, %c0_57, %c0_58] : memref<8x8x512xf32, #tpu.memory_space<vmem>>, vector<1x8x512xf32>
    %187 = vector.shape_cast %186 : vector<1x8x512xf32> to vector<8x512xf32>
    %cst_59 = arith.constant dense<0.000000e+00> : vector<8x512xf32>
    %188 = tpu.matmul %180, %12, %cst_59 {dimension_numbers = #tpu.dot_dimension_numbers<[1], [0], [0], [1], [0, 0, 1, 1], [], []>} : vector<8x128xf32>, vector<128x512xf32>, vector<8x512xf32> -> vector<8x512xf32>
    %189 = arith.addf %187, %188 : vector<8x512xf32>
    %190 = vector.extract_strided_slice %189 {offsets = [0, 0], sizes = [8, 128], strides = [1, 1]} : vector<8x512xf32> to vector<8x128xf32>
    %191 = arith.negf %190 : vector<8x128xf32>
    %192 = math.exp %191 : vector<8x128xf32>
    %cst_60 = arith.constant 1.000000e+00 : f32
    %193 = vector.broadcast %cst_60 : f32 to vector<8x128xf32>
    %194 = arith.addf %193, %192 : vector<8x128xf32>
    %195 = arith.divf %193, %194 : vector<8x128xf32>
    %196 = vector.extract_strided_slice %189 {offsets = [0, 128], sizes = [8, 128], strides = [1, 1]} : vector<8x512xf32> to vector<8x128xf32>
    %197 = arith.negf %196 : vector<8x128xf32>
    %198 = math.exp %197 : vector<8x128xf32>
    %cst_61 = arith.constant 1.000000e+00 : f32
    %199 = vector.broadcast %cst_61 : f32 to vector<8x128xf32>
    %200 = arith.addf %199, %198 : vector<8x128xf32>
    %201 = arith.divf %199, %200 : vector<8x128xf32>
    %202 = vector.extract_strided_slice %189 {offsets = [0, 256], sizes = [8, 128], strides = [1, 1]} : vector<8x512xf32> to vector<8x128xf32>
    %203 = math.tanh %202 : vector<8x128xf32>
    %204 = vector.extract_strided_slice %189 {offsets = [0, 384], sizes = [8, 128], strides = [1, 1]} : vector<8x512xf32> to vector<8x128xf32>
    %205 = arith.negf %204 : vector<8x128xf32>
    %206 = math.exp %205 : vector<8x128xf32>
    %cst_62 = arith.constant 1.000000e+00 : f32
    %207 = vector.broadcast %cst_62 : f32 to vector<8x128xf32>
    %208 = arith.addf %207, %206 : vector<8x128xf32>
    %209 = arith.divf %207, %208 : vector<8x128xf32>
    %210 = arith.mulf %201, %178 : vector<8x128xf32>
    %211 = arith.mulf %195, %203 : vector<8x128xf32>
    %212 = arith.addf %210, %211 : vector<8x128xf32>
    %213 = math.tanh %212 : vector<8x128xf32>
    %214 = arith.mulf %209, %213 : vector<8x128xf32>
    %215 = arith.index_cast %c5_i32 : i32 to index
    %c0_63 = arith.constant 0 : index
    %c0_64 = arith.constant 0 : index
    %216 = vector.load %arg8[%215, %c0_63, %c0_64] : memref<8x8x128xf32, #tpu.memory_space<vmem>>, vector<1x8x128xf32>
    %217 = vector.shape_cast %216 : vector<1x8x128xf32> to vector<8x128xf32>
    %218 = vector.shape_cast %214 : vector<8x128xf32> to vector<1x8x128xf32>
    tpu.vector_store %arg8[%215, %c0_63, %c0_64], %218 {strides = array<i32>} : memref<8x8x128xf32, #tpu.memory_space<vmem>>, vector<1x8x128xf32>,
    %c6_i32 = arith.constant 6 : i32
    %219 = arith.index_cast %c6_i32 : i32 to index
    %c0_65 = arith.constant 0 : index
    %c0_66 = arith.constant 0 : index
    %220 = vector.load %arg11[%219, %c0_65, %c0_66] : memref<8x8x512xf32, #tpu.memory_space<vmem>>, vector<1x8x512xf32>
    %221 = vector.shape_cast %220 : vector<1x8x512xf32> to vector<8x512xf32>
    %cst_67 = arith.constant dense<0.000000e+00> : vector<8x512xf32>
    %222 = tpu.matmul %214, %12, %cst_67 {dimension_numbers = #tpu.dot_dimension_numbers<[1], [0], [0], [1], [0, 0, 1, 1], [], []>} : vector<8x128xf32>, vector<128x512xf32>, vector<8x512xf32> -> vector<8x512xf32>
    %223 = arith.addf %221, %222 : vector<8x512xf32>
    %224 = vector.extract_strided_slice %223 {offsets = [0, 0], sizes = [8, 128], strides = [1, 1]} : vector<8x512xf32> to vector<8x128xf32>
    %225 = arith.negf %224 : vector<8x128xf32>
    %226 = math.exp %225 : vector<8x128xf32>
    %cst_68 = arith.constant 1.000000e+00 : f32
    %227 = vector.broadcast %cst_68 : f32 to vector<8x128xf32>
    %228 = arith.addf %227, %226 : vector<8x128xf32>
    %229 = arith.divf %227, %228 : vector<8x128xf32>
    %230 = vector.extract_strided_slice %223 {offsets = [0, 128], sizes = [8, 128], strides = [1, 1]} : vector<8x512xf32> to vector<8x128xf32>
    %231 = arith.negf %230 : vector<8x128xf32>
    %232 = math.exp %231 : vector<8x128xf32>
    %cst_69 = arith.constant 1.000000e+00 : f32
    %233 = vector.broadcast %cst_69 : f32 to vector<8x128xf32>
    %234 = arith.addf %233, %232 : vector<8x128xf32>
    %235 = arith.divf %233, %234 : vector<8x128xf32>
    %236 = vector.extract_strided_slice %223 {offsets = [0, 256], sizes = [8, 128], strides = [1, 1]} : vector<8x512xf32> to vector<8x128xf32>
    %237 = math.tanh %236 : vector<8x128xf32>
    %238 = vector.extract_strided_slice %223 {offsets = [0, 384], sizes = [8, 128], strides = [1, 1]} : vector<8x512xf32> to vector<8x128xf32>
    %239 = arith.negf %238 : vector<8x128xf32>
    %240 = math.exp %239 : vector<8x128xf32>
    %cst_70 = arith.constant 1.000000e+00 : f32
    %241 = vector.broadcast %cst_70 : f32 to vector<8x128xf32>
    %242 = arith.addf %241, %240 : vector<8x128xf32>
    %243 = arith.divf %241, %242 : vector<8x128xf32>
    %244 = arith.mulf %235, %212 : vector<8x128xf32>
    %245 = arith.mulf %229, %237 : vector<8x128xf32>
    %246 = arith.addf %244, %245 : vector<8x128xf32>
    %247 = math.tanh %246 : vector<8x128xf32>
    %248 = arith.mulf %243, %247 : vector<8x128xf32>
    %249 = arith.index_cast %c6_i32 : i32 to index
    %c0_71 = arith.constant 0 : index
    %c0_72 = arith.constant 0 : index
    %250 = vector.load %arg8[%249, %c0_71, %c0_72] : memref<8x8x128xf32, #tpu.memory_space<vmem>>, vector<1x8x128xf32>
    %251 = vector.shape_cast %250 : vector<1x8x128xf32> to vector<8x128xf32>
    %252 = vector.shape_cast %248 : vector<8x128xf32> to vector<1x8x128xf32>
    tpu.vector_store %arg8[%249, %c0_71, %c0_72], %252 {strides = array<i32>} : memref<8x8x128xf32, #tpu.memory_space<vmem>>, vector<1x8x128xf32>,
    %c7_i32 = arith.constant 7 : i32
    %253 = arith.index_cast %c7_i32 : i32 to index
    %c0_73 = arith.constant 0 : index
    %c0_74 = arith.constant 0 : index
    %254 = vector.load %arg11[%253, %c0_73, %c0_74] : memref<8x8x512xf32, #tpu.memory_space<vmem>>, vector<1x8x512xf32>
    %255 = vector.shape_cast %254 : vector<1x8x512xf32> to vector<8x512xf32>
    %cst_75 = arith.constant dense<0.000000e+00> : vector<8x512xf32>
    %256 = tpu.matmul %248, %12, %cst_75 {dimension_numbers = #tpu.dot_dimension_numbers<[1], [0], [0], [1], [0, 0, 1, 1], [], []>} : vector<8x128xf32>, vector<128x512xf32>, vector<8x512xf32> -> vector<8x512xf32>
    %257 = arith.addf %255, %256 : vector<8x512xf32>
    %258 = vector.extract_strided_slice %257 {offsets = [0, 0], sizes = [8, 128], strides = [1, 1]} : vector<8x512xf32> to vector<8x128xf32>
    %259 = arith.negf %258 : vector<8x128xf32>
    %260 = math.exp %259 : vector<8x128xf32>
    %cst_76 = arith.constant 1.000000e+00 : f32
    %261 = vector.broadcast %cst_76 : f32 to vector<8x128xf32>
    %262 = arith.addf %261, %260 : vector<8x128xf32>
    %263 = arith.divf %261, %262 : vector<8x128xf32>
    %264 = vector.extract_strided_slice %257 {offsets = [0, 128], sizes = [8, 128], strides = [1, 1]} : vector<8x512xf32> to vector<8x128xf32>
    %265 = arith.negf %264 : vector<8x128xf32>
    %266 = math.exp %265 : vector<8x128xf32>
    %cst_77 = arith.constant 1.000000e+00 : f32
    %267 = vector.broadcast %cst_77 : f32 to vector<8x128xf32>
    %268 = arith.addf %267, %266 : vector<8x128xf32>
    %269 = arith.divf %267, %268 : vector<8x128xf32>
    %270 = vector.extract_strided_slice %257 {offsets = [0, 256], sizes = [8, 128], strides = [1, 1]} : vector<8x512xf32> to vector<8x128xf32>
    %271 = math.tanh %270 : vector<8x128xf32>
    %272 = vector.extract_strided_slice %257 {offsets = [0, 384], sizes = [8, 128], strides = [1, 1]} : vector<8x512xf32> to vector<8x128xf32>
    %273 = arith.negf %272 : vector<8x128xf32>
    %274 = math.exp %273 : vector<8x128xf32>
    %cst_78 = arith.constant 1.000000e+00 : f32
    %275 = vector.broadcast %cst_78 : f32 to vector<8x128xf32>
    %276 = arith.addf %275, %274 : vector<8x128xf32>
    %277 = arith.divf %275, %276 : vector<8x128xf32>
    %278 = arith.mulf %269, %246 : vector<8x128xf32>
    %279 = arith.mulf %263, %271 : vector<8x128xf32>
    %280 = arith.addf %278, %279 : vector<8x128xf32>
    %281 = math.tanh %280 : vector<8x128xf32>
    %282 = arith.mulf %277, %281 : vector<8x128xf32>
    %283 = arith.index_cast %c7_i32 : i32 to index
    %c0_79 = arith.constant 0 : index
    %c0_80 = arith.constant 0 : index
    %284 = vector.load %arg8[%283, %c0_79, %c0_80] : memref<8x8x128xf32, #tpu.memory_space<vmem>>, vector<1x8x128xf32>
    %285 = vector.shape_cast %284 : vector<1x8x128xf32> to vector<8x128xf32>
    %286 = vector.shape_cast %282 : vector<8x128xf32> to vector<1x8x128xf32>
    tpu.vector_store %arg8[%283, %c0_79, %c0_80], %286 {strides = array<i32>} : memref<8x8x128xf32, #tpu.memory_space<vmem>>, vector<1x8x128xf32>,
    %c8_i32 = arith.constant 8 : i32
    %c0_81 = arith.constant 0 : index
    %c0_82 = arith.constant 0 : index
    %287 = vector.load %arg12[%c0_81, %c0_82] : memref<8x128xf32, #tpu.memory_space<vmem>>, vector<8x128xf32>
    tpu.vector_store %arg12[%c0_81, %c0_82], %282 {strides = array<i32>} : memref<8x128xf32, #tpu.memory_space<vmem>>, vector<8x128xf32>,
    %c0_83 = arith.constant 0 : index
    %c0_84 = arith.constant 0 : index
    %288 = vector.load %arg13[%c0_83, %c0_84] : memref<8x128xf32, #tpu.memory_space<vmem>>, vector<8x128xf32>
    tpu.vector_store %arg13[%c0_83, %c0_84], %280 {strides = array<i32>} : memref<8x128xf32, #tpu.memory_space<vmem>>, vector<8x128xf32>,
    %c0_i32_85 = arith.constant 0 : i32
    %289 = arith.cmpi eq, %arg1, %c0_i32_85 : i32
    %290 = arith.extui %289 : i1 to i32
    %c0_i32_86 = arith.constant 0 : i32
    %291 = arith.cmpi ne, %290, %c0_i32_86 : i32
    scf.if %291 {
      %c0_87 = arith.constant 0 : index
      %c0_88 = arith.constant 0 : index
      %292 = vector.load %arg9[%c0_87, %c0_88] : memref<8x128xf32, #tpu.memory_space<vmem>>, vector<8x128xf32>
      tpu.vector_store %arg9[%c0_87, %c0_88], %282 {strides = array<i32>} : memref<8x128xf32, #tpu.memory_space<vmem>>, vector<8x128xf32>,
      %c0_89 = arith.constant 0 : index
      %c0_90 = arith.constant 0 : index
      %293 = vector.load %arg10[%c0_89, %c0_90] : memref<8x128xf32, #tpu.memory_space<vmem>>, vector<8x128xf32>
      tpu.vector_store %arg10[%c0_89, %c0_90], %280 {strides = array<i32>} : memref<8x128xf32, #tpu.memory_space<vmem>>, vector<8x128xf32>,
    } else {
    }
    return
  }
  func.func @transform_0(%arg0: i32, %arg1: i32) -> (i32, i32, i32) {
    %c0_i32 = arith.constant 0 : i32
    %c0_i32_0 = arith.constant 0 : i32
    return %arg1, %arg0, %c0_i32 : i32, i32, i32
  }
  func.func @transform_1(%arg0: i32, %arg1: i32) -> (i32, i32) {
    %c0_i32 = arith.constant 0 : i32
    %c0_i32_0 = arith.constant 0 : i32
    %c0_i32_1 = arith.constant 0 : i32
    return %c0_i32, %c0_i32_0 : i32, i32
  }
  func.func @transform_2(%arg0: i32, %arg1: i32) -> (i32, i32) {
    %c0_i32 = arith.constant 0 : i32
    %c0_i32_0 = arith.constant 0 : i32
    %c0_i32_1 = arith.constant 0 : i32
    return %c0_i32, %c0_i32_0 : i32, i32
  }
  func.func @transform_3(%arg0: i32, %arg1: i32) -> (i32, i32) {
    %c0_i32 = arith.constant 0 : i32
    %c0_i32_0 = arith.constant 0 : i32
    %c0_i32_1 = arith.constant 0 : i32
    return %c0_i32, %c0_i32_0 : i32, i32
  }
  func.func @transform_4(%arg0: i32, %arg1: i32) -> (i32, i32) {
    %c0_i32 = arith.constant 0 : i32
    %c0_i32_0 = arith.constant 0 : i32
    return %arg0, %c0_i32 : i32, i32
  }
  func.func @transform_5(%arg0: i32, %arg1: i32) -> (i32, i32) {
    %c0_i32 = arith.constant 0 : i32
    %c0_i32_0 = arith.constant 0 : i32
    return %arg0, %c0_i32 : i32, i32
  }
  func.func @transform_6(%arg0: i32, %arg1: i32) -> (i32, i32, i32) {
    %c0_i32 = arith.constant 0 : i32
    %c0_i32_0 = arith.constant 0 : i32
    return %arg1, %arg0, %c0_i32 : i32, i32, i32
  }
  func.func @transform_7(%arg0: i32, %arg1: i32) -> (i32, i32) {
    %c0_i32 = arith.constant 0 : i32
    %c0_i32_0 = arith.constant 0 : i32
    return %arg0, %c0_i32 : i32, i32
  }
  func.func @transform_8(%arg0: i32, %arg1: i32) -> (i32, i32) {
    %c0_i32 = arith.constant 0 : i32
    %c0_i32_0 = arith.constant 0 : i32
    return %arg0, %c0_i32 : i32, i32
  }
}

</mosaic_0001>

<bundles_post_ra>
// kernel: tpu_custom_call.1
= control target key start
LH: loop header
LB: loop body
LE: loop exit
PB: predicated region body
PF: predicated region fallthrough
CT: control target
= control target key end

     0   :  { %6 = vsyncpa [#allocation3], 0  ;;  %s448_s0 = inlined_call_operand.hbm [shape: f32[8,128], index: 0, kind: input, shape index: {}]   ;;  %s449_s1 = inlined_call_operand.hbm [shape: f32[16,128], index: 1, kind: output, shape index: {}]  }
   0x1   :  { %7 = vsyncpa [#allocation4], 0 }
   0x2   :  { %9 = vsyncpa [#allocation4 + $0x1], 0  ;;  %s348_s6 = smov 0   ;;  %s350_s7 = smov 0  }
   0x3   :  { %s352_s8 = smov 0   ;;  %s354_s9 = smov 0  }
   0x4 LB: > { %s369_s10 = sadd.s32 4294967295, %s334_s9   ;;  %s184_s11 = sadd.s32 4294967294, %s334_s9   ;;  %s334_s9 = sphi %s354_s9, %s457_s9   ;;  %s330_s8 = sphi %s352_s8, %s456_s8   ;;  %s326_s7 = sphi %s350_s7, %s455_s7   ;;  %s322_s6 = sphi %s348_s6, %s454_s6  }
   0x5   : > { %s373_s12 = sadd.s32 1, %s334_s9   ;;  %s43_s13 = sadd.s32 1, %s330_s8 }
   0x6   : > { %s40_s14 = ssub.s32 %s334_s9, %s373_s12  ;;  %p53_p0 = scmp.ne.s32.totalorder %s330_s8, %s326_s7 }
   0x7   : > { %p41_p1 = scmp.eq.s32.totalorder %s40_s14, 0  ;;  %p54_p2 = scmp.eq.s32.totalorder %s369_s10, 1 }
   0x8   : > { %p59_p3 = scmp.ne.s32.totalorder %s326_s7, %s322_s6  ;;  %p60_p4 = scmp.eq.s32.totalorder %s184_s11, 1 }
   0x9   : > { %s384_s15 = scalar_select %p41_p1, %s330_s8, %s43_s13  }
   0xa   : > { %p386_p5 = por %p54_p2, %p53_p0  ;;  %p390_p6 = por %p60_p4, %p59_p3 }
   0xb   : > { %p185_p7 = scmp.ge.s32.totalorder %s334_s9, 1  ;;  %p67_p8 = scmp.lt.s32.totalorder %s334_s9, 3 }
   0xc   : > { %s451_s17 = scalar_select %p390_p6, 1, 0 }
   0xd   : > { %p208_p9 = scmp.eq.s32.totalorder %s369_s10, 0  ;;  %p397_p10 = pnand %p185_p7, %p67_p8 }
   0xe   : > { %s336_s19 = smov [#allocation2]  }
   0xf   : > { %s80_s20 = sshll.u32 %s336_s19, 4  ;;  %p200_p11 = pneg %p397_p10  ;;  %s81_s20 = int_to_ptr.vmem [resolvable:$true] %s80_s20 }
  0x10   : > { %s255_s21 = scalar_lea.vmem %s81_s20, 128  ;;  %p263_p3 = scmp.lt.s32.totalorder %s81_s20, %s81_s20 }
  0x11   : > { %p201_p12 = pnand %p208_p9, %p200_p11  ;;  %p256_p0 = scmp.ne.s32.totalorder %s81_s20, %s255_s21 }
  0x12   : > { %p264_p4 = scmp.lt.s32.totalorder %s255_s21, %s255_s21 }
  0x13   : > { %p246_p13 = pneg %p201_p12 }
  0x14   : > { %p265_p6 = por %p264_p4, %p263_p3 }
  0x15   : > { %p258_p1 = pnand %p256_p0, %p246_p13 }
  0x17   : > { %p259_p2 = pneg %p258_p1 }
  0x19   : > { %p266_p7 = pnand %p265_p6, %p259_p2 }
  0x1b   : > { %269 = shalt.err (!%p266_p7)
}
  0x1c   : > { %203 = dma.hbm_to_vmem [thread:$0]  (!%p201_p12), %s448_s0, 128, %s81_s20, [#allocation3]  }
  0x1d   : > { %93 = sbr.rel (%p397_p10) target bundleno = 60 (0x3c), region = 24 }
  0x22   : > { %313 = dma.done.wait (%p208_p9), [#allocation3], 128  }
  0x23   : > { %315 = vsyncadd (%p208_p9), [#allocation3], 4294967168  ;;  %s105_s24 = sand.u32 1, %s326_s7   ;;  %s191_s28 = sshll.u32 %s369_s10, 7  ;;  %v108_v0 = vld [vmem:[#allocation2] sm:$0xff] }
  0x24   : > { %s189_s25 = sshll.u32 %s105_s24, 3  ;;  %v109_v1 = vadd.f32 1.0, %v108_v0  ;;  %s123_s2 = scalar_lea.hbm %s449_s1, %s191_s28 }
  0x25   : > { %s107_s26 = scalar_lea.vmem [#allocation5], %s189_s25  ;;  %s112_s3 = scalar_lea.sflag [#allocation4], %s105_s24 }
  0x26   : > { %s125_s27 = sshll.u32 %s107_s26, 4  ;;  %110 = vst [vmem:[%s107_s26] sm:$0xff] %v109_v1  ;;  %s337_s5 = smov [#allocation5]   ;;  %s126_s27 = int_to_ptr.vmem [resolvable:$true] %s125_s27 }
  0x27   : > { %s270_s4 = scalar_lea.vmem %s126_s27, 128  ;;  %s274_s11 = sshll.u32 %s337_s5, 4  ;;  %s275_s11 = int_to_ptr.vmem [resolvable:$false] %s274_s11 }
  0x28   : > { %p271_p6 = scmp.ne.s32.totalorder %s126_s27, %s270_s4  ;;  %s276_s13 = scalar_lea.vmem %s275_s11, 256 }
  0x29   : > { %p277_p10 = scmp.lt.s32.totalorder %s126_s27, %s275_s11  ;;  %p278_p11 = scmp.lt.s32.totalorder %s276_s13, %s270_s4 }
  0x2a   : > { %p272_p8 = pnand %p271_p6, %p386_p5 }
  0x2b   : > { %p279_p12 = por %p278_p11, %p277_p10 }
  0x2c   : > { %p273_p9 = pneg %p272_p8 }
  0x2e   : > { %p280_p13 = pnand %p279_p12, %p273_p9 }
  0x30   : > { %283 = shalt.err (!%p280_p13)
}
  0x31   : > { %s284_s10 = scalar_lea.hbm %s123_s2, 128  ;;  %s288_s19 = scalar_lea.hbm %s449_s1, 256 }
  0x32   : > { %p285_p0 = scmp.ne.s32.totalorder %s123_s2, %s284_s10  ;;  %p289_p3 = scmp.lt.s32.totalorder %s123_s2, %s449_s1 }
  0x33   : > { %p290_p4 = scmp.lt.s32.totalorder %s288_s19, %s284_s10 }
  0x34   : > { %p286_p1 = pnand %p285_p0, %p386_p5 }
  0x35   : > { %p291_p7 = por %p290_p4, %p289_p3 }
  0x36   : > { %p287_p2 = pneg %p286_p1 }
  0x38   : > { %p292_p6 = pnand %p291_p7, %p287_p2 }
  0x3a   : > { %295 = shalt.err (!%p292_p6)
}
  0x3b   : > { %198 = dma.vmem_to_hbm [thread:$0]  (%p386_p5), %s126_s27, 128, %s123_s2, %s112_s3  }
  0x3c PF: > { %p210_p8 = scmp.ge.s32.totalorder %s334_s9, 2  ;;  %s137_s22 = sand.u32 1, %s322_s6  }
  0x3d   : > { %p453_p9 = scmp.ne.s32.totalorder %s451_s17, 0  ;;  %s138_s23 = scalar_lea.sflag [#allocation4], %s137_s22 }
  0x3f   : > { %p205_p10 = pnand %p210_p8, %p453_p9 }
  0x41   : > { %p206_p11 = pneg %p205_p10 }
  0x43   : > { %317 = dma.done.wait (%p206_p11), %s138_s23, 128  }
  0x44   : > { %319 = vsyncadd (%p206_p11), %s138_s23, 4294967168  ;;  %p12_p12 = scmp.ge.s32.totalorder %s373_s12, 4   ;;  %s454_s6 = smov %s326_s7 }
  0x45   : > { %s455_s7 = smov %s330_s8  ;;  %s456_s8 = smov %s384_s15 }
  0x46   : > { %s457_s9 = smov %s373_s12  ;;  %14 = sbr.rel (!%p12_p12) target bundleno = 4 (0x4), region = 61 }
  0x4b   :  { %143 = vsyncpa [#allocation3], 1 }
  0x4c   :  { %145 = vsyncpa [#allocation3 + $0x1], 1 }
  0x4d   :  { %146 = vsyncpa [#allocation4], 1 }
  0x4e   :  { %148 = vsyncpa [#allocation4 + $0x1], 1 }

// kernel: tpu_custom_call.1
= control target key start
LH: loop header
LB: loop body
LE: loop exit
PB: predicated region body
PF: predicated region fallthrough
CT: control target
= control target key end

     0   :  { %14 = vsyncpa [#allocation6], 0  ;;  %s3421_s0 = inlined_call_operand.hbm [shape: f32[8,8,128], index: 0, kind: input, shape index: {}]   ;;  %s3422_s1 = inlined_call_operand.hbm [shape: f32[128,512], index: 1, kind: input, shape index: {}]   ;;  %s3423_s2 = inlined_call_operand.hbm [shape: f32[128,512], index: 2, kind: input, shape index: {}]   ;;  %s3424_s3 = inlined_call_operand.hbm [shape: f32[1,512], index: 3, kind: input, shape index: {}]   ;;  %s3425_s4 = inlined_call_operand.hbm [shape: f32[8,128], index: 4, kind: input, shape index: {}]   ;;  %s3426_s5 = inlined_call_operand.vmem [shape: f32[8,128], index: 5, kind: input, shape index: {}]   ;;  %s3427_s6 = inlined_call_operand.hbm [shape: f32[8,8,128], index: 6, kind: output, shape index: {0}]   ;;  %s3428_s7 = inlined_call_operand.hbm [shape: f32[8,128], index: 7, kind: output, shape index: {1}]   ;;  %s3429_s8 = inlined_call_operand.hbm [shape: f32[8,128], index: 8, kind: output, shape index: {2}]  }
   0x1   :  { %15 = vsyncpa [#allocation9], 0 }
   0x2   :  { %16 = vsyncpa [#allocation12], 0 }
   0x3   :  { %17 = vsyncpa [#allocation7], 0 }
   0x4   :  { %18 = vsyncpa [#allocation16], 0  ;;  %s2384_s27 = smov [#allocation8]  }
   0x5   :  { %s36_s28 = sshll.u32 %s2384_s27, 4  ;;  %s37_s28 = int_to_ptr.vmem [resolvable:$true] %s36_s28 }
   0x6   :  { %s2222_s29 = scalar_lea.vmem %s37_s28, 8192  ;;  %p2227_p1 = scmp.lt.s32.totalorder %s37_s28, %s37_s28 }
   0x7   :  { %p2223_p0 = scmp.ne.s32.totalorder %s37_s28, %s2222_s29  ;;  %p2228_p2 = scmp.lt.s32.totalorder %s2222_s29, %s2222_s29 }
   0x9   :  { %p2229_p3 = por %p2228_p2, %p2227_p1 }
   0xb   :  { %p2230_p4 = pnand %p2229_p3, %p2223_p0 }
   0xd   :  { %2233 = shalt.err (!%p2230_p4)
}
   0xe   :  { %s2385_s30 = smov 512   ;;  %s2386_s9 = smov 32  }
   0xf   :  { %42 = dma.hbm_to_vmem [thread:$0]  %s3422_s1, 8192, %s37_s28, [#allocation9], %s2385_s30, %s2385_s30, %s2386_s9  }
  0x10   :  { %s2387_s12 = smov [#allocation11]   ;;  %s2388_s14 = smov [#allocation5]  }
  0x11   :  { %s61_s13 = sshll.u32 %s2387_s12, 4  ;;  %s24_s15 = sshll.u32 %s2388_s14, 4  ;;  %s62_s13 = int_to_ptr.vmem [resolvable:$true] %s61_s13  ;;  %s25_s15 = int_to_ptr.vmem [resolvable:$true] %s24_s15 }
  0x12   :  { %s2242_s16 = scalar_lea.vmem %s62_s13, 64  ;;  %p2247_p6 = scmp.lt.s32.totalorder %s62_s13, %s62_s13 }
  0x13   :  { %p2243_p5 = scmp.ne.s32.totalorder %s62_s13, %s2242_s16  ;;  %p2248_p7 = scmp.lt.s32.totalorder %s2242_s16, %s2242_s16 }
  0x15   :  { %p2249_p8 = por %p2248_p7, %p2247_p6 }
  0x17   :  { %p2250_p9 = pnand %p2249_p8, %p2243_p5 }
  0x19   :  { %2253 = shalt.err (!%p2250_p9)
}
  0x1a   :  { %64 = dma.hbm_to_vmem [thread:$0]  %s3424_s3, 64, %s62_s13, [#allocation12]  }
  0x1b   :  { %s2262_s19 = scalar_lea.vmem %s25_s15, 1024  ;;  %p2267_p11 = scmp.lt.s32.totalorder %s25_s15, %s25_s15 }
  0x1c   :  { %p2263_p10 = scmp.ne.s32.totalorder %s25_s15, %s2262_s19  ;;  %p2268_p12 = scmp.lt.s32.totalorder %s2262_s19, %s2262_s19 }
  0x1e   :  { %p2269_p13 = por %p2268_p12, %p2267_p11 }
  0x20   :  { %p2270_p0 = pnand %p2269_p13, %p2263_p10 }
  0x22   :  { %2273 = shalt.err (!%p2270_p0)
}
  0x23   :  { %s2389_s1 = smov 128   ;;  %s2390_s20 = smov 8  }
  0x24   :  { %30 = dma.hbm_to_vmem [thread:$0]  %s3421_s0, 1024, %s25_s15, [#allocation6], %s2389_s1, %s2389_s1, %s2390_s20  }
  0x25   :  { %s2391_s23 = smov [#allocation10]   ;;  %s2392_s3 = smov [#allocation13]  }
  0x26   :  { %s48_s24 = sshll.u32 %s2391_s23, 4  ;;  %s71_s25 = sshll.u32 %s2392_s3, 4  ;;  %s49_s24 = int_to_ptr.vmem [resolvable:$true] %s48_s24  ;;  %s72_s25 = int_to_ptr.vmem [resolvable:$true] %s71_s25 }
  0x27   :  { %s2282_s26 = scalar_lea.vmem %s49_s24, 8192  ;;  %p2287_p2 = scmp.lt.s32.totalorder %s49_s24, %s49_s24 }
  0x28   :  { %p2283_p1 = scmp.ne.s32.totalorder %s49_s24, %s2282_s26  ;;  %p2288_p3 = scmp.lt.s32.totalorder %s2282_s26, %s2282_s26 }
  0x2a   :  { %p2289_p4 = por %p2288_p3, %p2287_p2 }
  0x2c   :  { %p2290_p5 = pnand %p2289_p4, %p2283_p1 }
  0x2e   :  { %2293 = shalt.err (!%p2290_p5)
}
  0x2f   :  { %54 = dma.hbm_to_vmem [thread:$0]  %s3423_s2, 8192, %s49_s24, [#allocation9], %s2385_s30, %s2385_s30, %s2386_s9  }
  0x30   :  { %s2302_s0 = scalar_lea.vmem %s72_s25, 128  ;;  %p2307_p7 = scmp.lt.s32.totalorder %s72_s25, %s72_s25 }
  0x31   :  { %p2303_p6 = scmp.ne.s32.totalorder %s72_s25, %s2302_s0  ;;  %p2308_p8 = scmp.lt.s32.totalorder %s2302_s0, %s2302_s0 }
  0x33   :  { %p2309_p9 = por %p2308_p8, %p2307_p7 }
  0x35   :  { %p2310_p10 = pnand %p2309_p9, %p2303_p6 }
  0x37   :  { %2313 = shalt.err (!%p2310_p10)
}
  0x38   :  { %74 = dma.hbm_to_vmem [thread:$0]  %s3425_s4, 128, %s72_s25, [#allocation12]  }
  0x39   :  { %2374 = dma.done.wait [#allocation6], 1024  }
  0x3a   :  { %2375 = vsyncadd [#allocation6], 4294966272 }
  0x3b   :  { %2376 = dma.done.wait [#allocation9], 16384  }
  0x3c   :  { %2377 = vsyncadd [#allocation9], 4294950912 }
  0x3d   :  { %2378 = dma.done.wait [#allocation12], 192  }
  0x3e   :  { %2379 = vsyncadd [#allocation12], 4294967104  ;;  %v3430_v0 = vmov 0.0   ;;  %v161_v1 = vld [vmem:[#allocation8 + $0x1e8] sm:$0xff]  ;;  %v163_v2 = vld [vmem:[#allocation8 + $0x1f8] sm:$0xff]  ;;  %s2395_s9 = smov [#allocation14]  }
  0x3f   :  { %258 = vmatprep.mubr.f32.mxu0 %v3430_v0  ;;  %371 = vmatprep.mubr.f32.mxu1 %v3430_v0  ;;  %v160_v3 = vld [vmem:[#allocation8 + $0x1e0] sm:$0xff]  ;;  %v162_v4 = vld [vmem:[#allocation8 + $0x1f0] sm:$0xff]  ;;  %v157_v5 = vld [vmem:[#allocation8 + $0x1c8] sm:$0xff]  ;;  %s1944_s11 = sshll.u32 %s2395_s9, 4  ;;  %s2396_s12 = smov [#allocation17]   ;;  %s1945_s11 = int_to_ptr.vmem [resolvable:$true] %s1944_s11 }
  0x40   :  { %194 = vmatprep.subr.mxu0 %v161_v1  ;;  %307 = vmatprep.subr.mxu1 %v163_v2  ;;  %v159_v6 = vld [vmem:[#allocation8 + $0x1d8] sm:$0xff]  ;;  %v156_v7 = vld [vmem:[#allocation8 + $0x1c0] sm:$0xff]  ;;  %v158_v8 = vld [vmem:[#allocation8 + $0x1d0] sm:$0xff]  ;;  %s1967_s13 = sshll.u32 %s2396_s12, 4  ;;  %s1968_s13 = int_to_ptr.vmem [resolvable:$true] %s1967_s13 }
  0x41   :  { %195 = vmatpush1.msra.mxu0 %v160_v3  ;;  %308 = vmatpush1.msra.mxu1 %v162_v4  ;;  %v153_v9 = vld [vmem:[#allocation8 + $0x1a8] sm:$0xff]  ;;  %v155_v10 = vld [vmem:[#allocation8 + $0x1b8] sm:$0xff]  ;;  %v152_v11 = vld [vmem:[#allocation8 + $0x1a0] sm:$0xff] }
  0x42   :  { %196 = vmatprep.subr.mxu0 %v157_v5  ;;  %309 = vmatprep.subr.mxu1 %v159_v6  ;;  %v154_v12 = vld [vmem:[#allocation8 + $0x1b0] sm:$0xff]  ;;  %v149_v13 = vld [vmem:[#allocation8 + $0x188] sm:$0xff]  ;;  %v151_v14 = vld [vmem:[#allocation8 + $0x198] sm:$0xff] }
  0x43   :  { %197 = vmatpush1.msra.mxu0 %v156_v7  ;;  %310 = vmatpush1.msra.mxu1 %v158_v8  ;;  %v148_v15 = vld [vmem:[#allocation8 + $0x180] sm:$0xff]  ;;  %v150_v16 = vld [vmem:[#allocation8 + $0x190] sm:$0xff]  ;;  %v145_v17 = vld [vmem:[#allocation8 + $0x168] sm:$0xff] }
  0x44   :  { %198 = vmatprep.subr.mxu0 %v153_v9  ;;  %311 = vmatprep.subr.mxu1 %v155_v10  ;;  %v147_v18 = vld [vmem:[#allocation8 + $0x178] sm:$0xff]  ;;  %v144_v19 = vld [vmem:[#allocation8 + $0x160] sm:$0xff]  ;;  %v146_v20 = vld [vmem:[#allocation8 + $0x170] sm:$0xff] }
  0x45   :  { %199 = vmatpush1.msra.mxu0 %v152_v11  ;;  %312 = vmatpush1.msra.mxu1 %v154_v12  ;;  %v141_v21 = vld [vmem:[#allocation8 + $0x148] sm:$0xff]  ;;  %v143_v22 = vld [vmem:[#allocation8 + $0x158] sm:$0xff]  ;;  %v140_v23 = vld [vmem:[#allocation8 + $0x140] sm:$0xff] }
  0x46   :  { %200 = vmatprep.subr.mxu0 %v149_v13  ;;  %313 = vmatprep.subr.mxu1 %v151_v14  ;;  %v142_v24 = vld [vmem:[#allocation8 + $0x150] sm:$0xff]  ;;  %v137_v25 = vld [vmem:[#allocation8 + $0x128] sm:$0xff]  ;;  %v139_v26 = vld [vmem:[#allocation8 + $0x138] sm:$0xff] }
  0x47   :  { %201 = vmatpush1.msra.mxu0 %v148_v15  ;;  %314 = vmatpush1.msra.mxu1 %v150_v16  ;;  %v136_v27 = vld [vmem:[#allocation8 + $0x120] sm:$0xff]  ;;  %v138_v28 = vld [vmem:[#allocation8 + $0x130] sm:$0xff]  ;;  %v133_v29 = vld [vmem:[#allocation8 + $0x108] sm:$0xff] }
  0x48   :  { %202 = vmatprep.subr.mxu0 %v145_v17  ;;  %315 = vmatprep.subr.mxu1 %v147_v18  ;;  %v135_v30 = vld [vmem:[#allocation8 + $0x118] sm:$0xff]  ;;  %v132_v31 = vld [vmem:[#allocation8 + $0x100] sm:$0xff]  ;;  %v134_v32 = vld [vmem:[#allocation8 + $0x110] sm:$0xff] }
  0x49   :  { %203 = vmatpush1.msra.mxu0 %v144_v19  ;;  %316 = vmatpush1.msra.mxu1 %v146_v20  ;;  %v129_v33 = vld [vmem:[#allocation8 + $0xe8] sm:$0xff]  ;;  %v131_v34 = vld [vmem:[#allocation8 + $0xf8] sm:$0xff]  ;;  %v128_v35 = vld [vmem:[#allocation8 + $0xe0] sm:$0xff] }
  0x4a   :  { %204 = vmatprep.subr.mxu0 %v141_v21  ;;  %317 = vmatprep.subr.mxu1 %v143_v22  ;;  %v130_v36 = vld [vmem:[#allocation8 + $0xf0] sm:$0xff]  ;;  %v125_v37 = vld [vmem:[#allocation8 + $0xc8] sm:$0xff]  ;;  %v127_v38 = vld [vmem:[#allocation8 + $0xd8] sm:$0xff] }
  0x4b   :  { %205 = vmatpush1.msra.mxu0 %v140_v23  ;;  %318 = vmatpush1.msra.mxu1 %v142_v24  ;;  %v124_v39 = vld [vmem:[#allocation8 + $0xc0] sm:$0xff]  ;;  %v126_v40 = vld [vmem:[#allocation8 + $0xd0] sm:$0xff]  ;;  %v121_v41 = vld [vmem:[#allocation8 + $0xa8] sm:$0xff] }
  0x4c   :  { %206 = vmatprep.subr.mxu0 %v137_v25  ;;  %319 = vmatprep.subr.mxu1 %v139_v26  ;;  %v123_v42 = vld [vmem:[#allocation8 + $0xb8] sm:$0xff]  ;;  %v120_v43 = vld [vmem:[#allocation8 + $0xa0] sm:$0xff]  ;;  %v122_v44 = vld [vmem:[#allocation8 + $0xb0] sm:$0xff] }
  0x4d   :  { %207 = vmatpush1.msra.mxu0 %v136_v27  ;;  %320 = vmatpush1.msra.mxu1 %v138_v28  ;;  %v117_v45 = vld [vmem:[#allocation8 + $0x88] sm:$0xff]  ;;  %v119_v46 = vld [vmem:[#allocation8 + $0x98] sm:$0xff]  ;;  %v116_v47 = vld [vmem:[#allocation8 + $0x80] sm:$0xff] }
  0x4e   :  { %208 = vmatprep.subr.mxu0 %v133_v29  ;;  %321 = vmatprep.subr.mxu1 %v135_v30  ;;  %v118_v48 = vld [vmem:[#allocation8 + $0x90] sm:$0xff]  ;;  %v113_v49 = vld [vmem:[#allocation8 + $0x68] sm:$0xff]  ;;  %v115_v50 = vld [vmem:[#allocation8 + $0x78] sm:$0xff] }
  0x4f   :  { %209 = vmatpush1.msra.mxu0 %v132_v31  ;;  %322 = vmatpush1.msra.mxu1 %v134_v32  ;;  %v112_v51 = vld [vmem:[#allocation8 + $0x60] sm:$0xff]  ;;  %v114_v52 = vld [vmem:[#allocation8 + $0x70] sm:$0xff]  ;;  %v109_v53 = vld [vmem:[#allocation8 + $0x48] sm:$0xff] }
  0x50   :  { %210 = vmatprep.subr.mxu0 %v129_v33  ;;  %323 = vmatprep.subr.mxu1 %v131_v34  ;;  %v111_v54 = vld [vmem:[#allocation8 + $0x58] sm:$0xff]  ;;  %v108_v55 = vld [vmem:[#allocation8 + $0x40] sm:$0xff]  ;;  %v110_v56 = vld [vmem:[#allocation8 + $0x50] sm:$0xff] }
  0x51   :  { %211 = vmatpush1.msra.mxu0 %v128_v35  ;;  %324 = vmatpush1.msra.mxu1 %v130_v36  ;;  %v105_v57 = vld [vmem:[#allocation8 + $0x28] sm:$0xff]  ;;  %v107_v58 = vld [vmem:[#allocation8 + $0x38] sm:$0xff]  ;;  %v104_v59 = vld [vmem:[#allocation8 + $0x20] sm:$0xff] }
  0x52   :  { %212 = vmatprep.subr.mxu0 %v125_v37  ;;  %325 = vmatprep.subr.mxu1 %v127_v38  ;;  %v106_v60 = vld [vmem:[#allocation8 + $0x30] sm:$0xff]  ;;  %v101_v61 = vld [vmem:[#allocation8 + $0x8] sm:$0xff]  ;;  %v103_v62 = vld [vmem:[#allocation8 + $0x18] sm:$0xff] }
  0x53   :  { %213 = vmatpush1.msra.mxu0 %v124_v39  ;;  %326 = vmatpush1.msra.mxu1 %v126_v40  ;;  %v100_v63 = vld [vmem:[#allocation8] sm:$0xff]  ;;  %v102_v1 = vld [vmem:[#allocation8 + $0x10] sm:$0xff]  ;;  %v2468_v3 = vld [vmem:[#allocation10 + $0x1e8] sm:$0xff] }
  0x54   :  { %214 = vmatprep.subr.mxu0 %v121_v41  ;;  %327 = vmatprep.subr.mxu1 %v123_v42  ;;  %v165_v2 = vld [vmem:[#allocation5] sm:$0xff]  ;;  %3518 = vst [vmem:[#allocation23_spill] sm:$0xff] %v2468_v3  ;;  %v2470_v4 = vld [vmem:[#allocation10 + $0x1f8] sm:$0xff]  ;;  %v2474_v6 = vld [vmem:[#allocation10 + $0x1f0] sm:$0xff] }
  0x55   :  { %215 = vmatpush1.msra.mxu0 %v120_v43  ;;  %328 = vmatpush1.msra.mxu1 %v122_v44  ;;  %3519 = vst [vmem:[#allocation24_spill] sm:$0xff] %v2470_v4  ;;  %v2472_v5 = vld [vmem:[#allocation10 + $0x1e0] sm:$0xff]  ;;  %v2476_v7 = vld [vmem:[#allocation10 + $0x1c8] sm:$0xff]  ;;  %v2478_v8 = vld [vmem:[#allocation10 + $0x1d8] sm:$0xff] }
  0x56   :  { %216 = vmatprep.subr.mxu0 %v117_v45  ;;  %329 = vmatprep.subr.mxu1 %v119_v46  ;;  %v2484_v9 = vld [vmem:[#allocation10 + $0x1c0] sm:$0xff]  ;;  %v2486_v10 = vld [vmem:[#allocation10 + $0x1d0] sm:$0xff]  ;;  %v166_v11 = vld [vmem:[#allocation5 + $0x8] sm:$0xff] }
  0x57   :  { %217 = vmatpush1.msra.mxu0 %v116_v47  ;;  %330 = vmatpush1.msra.mxu1 %v118_v48  ;;  %v2492_v12 = vld [vmem:[#allocation10 + $0x1a8] sm:$0xff]  ;;  %v2494_v13 = vld [vmem:[#allocation10 + $0x1b8] sm:$0xff]  ;;  %v2498_v14 = vld [vmem:[#allocation10 + $0x1a0] sm:$0xff] }
  0x58   :  { %218 = vmatprep.subr.mxu0 %v113_v49  ;;  %331 = vmatprep.subr.mxu1 %v115_v50  ;;  %v2500_v15 = vld [vmem:[#allocation10 + $0x1b0] sm:$0xff]  ;;  %v2502_v16 = vld [vmem:[#allocation10 + $0x188] sm:$0xff]  ;;  %v2504_v17 = vld [vmem:[#allocation10 + $0x198] sm:$0xff] }
  0x59   :  { %219 = vmatpush1.msra.mxu0 %v112_v51  ;;  %332 = vmatpush1.msra.mxu1 %v114_v52  ;;  %v2510_v18 = vld [vmem:[#allocation10 + $0x180] sm:$0xff]  ;;  %v2512_v19 = vld [vmem:[#allocation10 + $0x190] sm:$0xff]  ;;  %v2518_v21 = vld [vmem:[#allocation10 + $0x168] sm:$0xff] }
  0x5a   :  { %220 = vmatprep.subr.mxu0 %v109_v53  ;;  %333 = vmatprep.subr.mxu1 %v111_v54  ;;  %v167_v20 = vld [vmem:[#allocation5 + $0x10] sm:$0xff]  ;;  %v2520_v22 = vld [vmem:[#allocation10 + $0x178] sm:$0xff]  ;;  %v2524_v23 = vld [vmem:[#allocation10 + $0x160] sm:$0xff] }
  0x5b   :  { %221 = vmatpush1.msra.mxu0 %v108_v55  ;;  %334 = vmatpush1.msra.mxu1 %v110_v56  ;;  %v2526_v24 = vld [vmem:[#allocation10 + $0x170] sm:$0xff]  ;;  %v2528_v25 = vld [vmem:[#allocation10 + $0x148] sm:$0xff]  ;;  %v2530_v26 = vld [vmem:[#allocation10 + $0x158] sm:$0xff] }
  0x5c   :  { %222 = vmatprep.subr.mxu0 %v105_v57  ;;  %335 = vmatprep.subr.mxu1 %v107_v58  ;;  %v2536_v27 = vld [vmem:[#allocation10 + $0x140] sm:$0xff]  ;;  %v2538_v28 = vld [vmem:[#allocation10 + $0x150] sm:$0xff]  ;;  %v168_v29 = vld [vmem:[#allocation5 + $0x18] sm:$0xff] }
  0x5d   :  { %223 = vmatpush1.msra.mxu0 %v104_v59  ;;  %336 = vmatpush1.msra.mxu1 %v106_v60  ;;  %v2544_v30 = vld [vmem:[#allocation10 + $0x128] sm:$0xff]  ;;  %v2546_v31 = vld [vmem:[#allocation10 + $0x138] sm:$0xff]  ;;  %v2550_v32 = vld [vmem:[#allocation10 + $0x120] sm:$0xff] }
  0x5e   :  { %224 = vmatprep.subr.mxu0 %v101_v61  ;;  %337 = vmatprep.subr.mxu1 %v103_v62  ;;  %v2552_v33 = vld [vmem:[#allocation10 + $0x130] sm:$0xff]  ;;  %v2554_v34 = vld [vmem:[#allocation10 + $0x108] sm:$0xff]  ;;  %v2556_v35 = vld [vmem:[#allocation10 + $0x118] sm:$0xff] }
  0x5f   :  { %225 = vmatpush1.msra.mxu0 %v100_v63  ;;  %338 = vmatpush1.msra.mxu1 %v102_v1  ;;  %v2562_v36 = vld [vmem:[#allocation10 + $0x100] sm:$0xff]  ;;  %v2564_v37 = vld [vmem:[#allocation10 + $0x110] sm:$0xff]  ;;  %v2570_v39 = vld [vmem:[#allocation10 + $0xe8] sm:$0xff] }
  0x60   :  { %259 = vmatmul.mubr.f32.vlgmr.msra.gmra.mxu0 %v165_v2  ;;  %372 = vmatmul.mubr.f32.vlgmr.msra.gmra.mxu1 %v165_v2  ;;  %v169_v38 = vld [vmem:[#allocation5 + $0x20] sm:$0xff]  ;;  %v2572_v40 = vld [vmem:[#allocation10 + $0xf8] sm:$0xff]  ;;  %v2578_v42 = vld [vmem:[#allocation10 + $0xf0] sm:$0xff] }
  0x61   :  { %522 = vmatprep.subr.mxu0 %v2468_v3  ;;  %593 = vmatprep.subr.mxu1 %v2470_v4  ;;  %v2576_v41 = vld [vmem:[#allocation10 + $0xe0] sm:$0xff]  ;;  %v2580_v43 = vld [vmem:[#allocation10 + $0xc8] sm:$0xff]  ;;  %v2582_v44 = vld [vmem:[#allocation10 + $0xd8] sm:$0xff] }
  0x62   :  { %523 = vmatpush1.msra.mxu0 %v2472_v5  ;;  %594 = vmatpush1.msra.mxu1 %v2474_v6  ;;  %v2588_v45 = vld [vmem:[#allocation10 + $0xc0] sm:$0xff]  ;;  %v2590_v46 = vld [vmem:[#allocation10 + $0xd0] sm:$0xff]  ;;  %v170_v47 = vld [vmem:[#allocation5 + $0x28] sm:$0xff] }
  0x63   :  { %524 = vmatprep.subr.mxu0 %v2476_v7  ;;  %595 = vmatprep.subr.mxu1 %v2478_v8  ;;  %v2596_v48 = vld [vmem:[#allocation10 + $0xa8] sm:$0xff]  ;;  %v2598_v49 = vld [vmem:[#allocation10 + $0xb8] sm:$0xff]  ;;  %v2602_v50 = vld [vmem:[#allocation10 + $0xa0] sm:$0xff] }
  0x64   :  { %264 = vmatprep.mubr.f32.mxu0 %v3430_v0  ;;  %377 = vmatprep.mubr.f32.mxu1 %v3430_v0  ;;  %v2604_v51 = vld [vmem:[#allocation10 + $0xb0] sm:$0xff]  ;;  %v2606_v52 = vld [vmem:[#allocation10 + $0x88] sm:$0xff]  ;;  %v2608_v53 = vld [vmem:[#allocation10 + $0x98] sm:$0xff] }
  0x65   :  { %525 = vmatpush1.msra.mxu0 %v2484_v9  ;;  %596 = vmatpush1.msra.mxu1 %v2486_v10  ;;  %3520 = vst [vmem:[#allocation25_spill] sm:$0xff] %v2606_v52  ;;  %3521 = vst [vmem:[#allocation26_spill] sm:$0xff] %v2608_v53  ;;  %v2614_v54 = vld [vmem:[#allocation10 + $0x80] sm:$0xff]  ;;  %v2616_v55 = vld [vmem:[#allocation10 + $0x90] sm:$0xff] }
  0x66   :  { %265 = vmatmul.mubr.f32.gmra.mxu0 %v166_v11  ;;  %378 = vmatmul.mubr.f32.gmra.mxu1 %v166_v11  ;;  %3522 = vst [vmem:[#allocation27_spill] sm:$0xff] %v2614_v54  ;;  %3523 = vst [vmem:[#allocation28_spill] sm:$0xff] %v2616_v55  ;;  %v171_v56 = vld [vmem:[#allocation5 + $0x30] sm:$0xff]  ;;  %v2622_v57 = vld [vmem:[#allocation10 + $0x68] sm:$0xff] }
  0x67   :  { %526 = vmatprep.subr.mxu0 %v2492_v12  ;;  %597 = vmatprep.subr.mxu1 %v2494_v13  ;;  %3524 = vst [vmem:[#allocation29_spill] sm:$0xff] %v2622_v57  ;;  %v2624_v58 = vld [vmem:[#allocation10 + $0x78] sm:$0xff]  ;;  %v2628_v59 = vld [vmem:[#allocation10 + $0x60] sm:$0xff]  ;;  %v2630_v60 = vld [vmem:[#allocation10 + $0x70] sm:$0xff] }
  0x68   :  { %527 = vmatpush1.msra.mxu0 %v2498_v14  ;;  %598 = vmatpush1.msra.mxu1 %v2500_v15  ;;  %3525 = vst [vmem:[#allocation30_spill] sm:$0xff] %v2624_v58  ;;  %3526 = vst [vmem:[#allocation31_spill] sm:$0xff] %v2628_v59  ;;  %v2632_v61 = vld [vmem:[#allocation10 + $0x48] sm:$0xff]  ;;  %v2634_v62 = vld [vmem:[#allocation10 + $0x58] sm:$0xff] }
  0x69   :  { %528 = vmatprep.subr.mxu0 %v2502_v16  ;;  %599 = vmatprep.subr.mxu1 %v2504_v17  ;;  %3527 = vst [vmem:[#allocation32_spill] sm:$0xff] %v2630_v60  ;;  %3528 = vst [vmem:[#allocation33_spill] sm:$0xff] %v2632_v61  ;;  %v2640_v63 = vld [vmem:[#allocation10 + $0x40] sm:$0xff]  ;;  %v2642_v1 = vld [vmem:[#allocation10 + $0x50] sm:$0xff] }
  0x6a   :  { %270 = vmatprep.mubr.f32.mxu0 %v3430_v0  ;;  %383 = vmatprep.mubr.f32.mxu1 %v3430_v0  ;;  %3529 = vst [vmem:[#allocation34_spill] sm:$0xff] %v2634_v62  ;;  %3530 = vst [vmem:[#allocation35_spill] sm:$0xff] %v2640_v63  ;;  %v172_v2 = vld [vmem:[#allocation5 + $0x38] sm:$0xff]  ;;  %v2648_v11 = vld [vmem:[#allocation10 + $0x28] sm:$0xff] }
  0x6b   :  { %529 = vmatpush1.msra.mxu0 %v2510_v18  ;;  %600 = vmatpush1.msra.mxu1 %v2512_v19  ;;  %3531 = vst [vmem:[#allocation36_spill] sm:$0xff] %v2642_v1  ;;  %3532 = vst [vmem:[#allocation37_spill] sm:$0xff] %v2648_v11 }
  0x6c   :  { %271 = vmatmul.mubr.f32.gmra.mxu0 %v167_v20  ;;  %384 = vmatmul.mubr.f32.gmra.mxu1 %v167_v20  ;;  %v2650_v20 = vld [vmem:[#allocation10 + $0x38] sm:$0xff] }
  0x6d   :  { %530 = vmatprep.subr.mxu0 %v2518_v21  ;;  %601 = vmatprep.subr.mxu1 %v2520_v22  ;;  %3533 = vst [vmem:[#allocation38_spill] sm:$0xff] %v2650_v20 }
  0x6e   :  { %531 = vmatpush1.msra.mxu0 %v2524_v23  ;;  %602 = vmatpush1.msra.mxu1 %v2526_v24 }
  0x6f   :  { %532 = vmatprep.subr.mxu0 %v2528_v25  ;;  %603 = vmatprep.subr.mxu1 %v2530_v26 }
  0x70   :  { %276 = vmatprep.mubr.f32.mxu0 %v3430_v0  ;;  %389 = vmatprep.mubr.f32.mxu1 %v3430_v0 }
  0x71   :  { %533 = vmatpush1.msra.mxu0 %v2536_v27  ;;  %604 = vmatpush1.msra.mxu1 %v2538_v28 }
  0x72   :  { %277 = vmatmul.mubr.f32.gmra.mxu0 %v168_v29  ;;  %390 = vmatmul.mubr.f32.gmra.mxu1 %v168_v29  ;;  %v2654_v29 = vld [vmem:[#allocation10 + $0x20] sm:$0xff] }
  0x73   :  { %534 = vmatprep.subr.mxu0 %v2544_v30  ;;  %605 = vmatprep.subr.mxu1 %v2546_v31  ;;  %3534 = vst [vmem:[#allocation39_spill] sm:$0xff] %v2654_v29 }
  0x74   :  { %535 = vmatpush1.msra.mxu0 %v2550_v32  ;;  %606 = vmatpush1.msra.mxu1 %v2552_v33 }
  0x75   :  { %536 = vmatprep.subr.mxu0 %v2554_v34  ;;  %607 = vmatprep.subr.mxu1 %v2556_v35 }
  0x76   :  { %282 = vmatprep.mubr.f32.mxu0 %v3430_v0  ;;  %395 = vmatprep.mubr.f32.mxu1 %v3430_v0 }
  0x77   :  { %537 = vmatpush1.msra.mxu0 %v2562_v36  ;;  %608 = vmatpush1.msra.mxu1 %v2564_v37 }
  0x78   :  { %283 = vmatmul.mubr.f32.gmra.mxu0 %v169_v38  ;;  %396 = vmatmul.mubr.f32.gmra.mxu1 %v169_v38  ;;  %v2656_v38 = vld [vmem:[#allocation10 + $0x30] sm:$0xff] }
  0x79   :  { %538 = vmatprep.subr.mxu0 %v2570_v39  ;;  %609 = vmatprep.subr.mxu1 %v2572_v40  ;;  %3535 = vst [vmem:[#allocation40_spill] sm:$0xff] %v2656_v38 }
  0x7a   :  { %539 = vmatpush1.msra.mxu0 %v2576_v41  ;;  %610 = vmatpush1.msra.mxu1 %v2578_v42 }
  0x7b   :  { %540 = vmatprep.subr.mxu0 %v2580_v43  ;;  %611 = vmatprep.subr.mxu1 %v2582_v44 }
  0x7c   :  { %288 = vmatprep.mubr.f32.mxu0 %v3430_v0  ;;  %401 = vmatprep.mubr.f32.mxu1 %v3430_v0 }
  0x7d   :  { %541 = vmatpush1.msra.mxu0 %v2588_v45  ;;  %612 = vmatpush1.msra.mxu1 %v2590_v46 }
  0x7e   :  { %289 = vmatmul.mubr.f32.gmra.mxu0 %v170_v47  ;;  %402 = vmatmul.mubr.f32.gmra.mxu1 %v170_v47  ;;  %v2658_v47 = vld [vmem:[#allocation10 + $0x8] sm:$0xff] }
  0x7f   :  { %542 = vmatprep.subr.mxu0 %v2596_v48  ;;  %613 = vmatprep.subr.mxu1 %v2598_v49  ;;  %3536 = vst [vmem:[#allocation41_spill] sm:$0xff] %v2658_v47 }
  0x80   :  { %543 = vmatpush1.msra.mxu0 %v2602_v50  ;;  %614 = vmatpush1.msra.mxu1 %v2604_v51 }
  0x81   :  { %544 = vmatprep.subr.mxu0 %v2606_v52  ;;  %615 = vmatprep.subr.mxu1 %v2608_v53 }
  0x82   :  { %294 = vmatprep.mubr.f32.mxu0 %v3430_v0  ;;  %407 = vmatprep.mubr.f32.mxu1 %v3430_v0 }
  0x83   :  { %545 = vmatpush1.msra.mxu0 %v2614_v54  ;;  %616 = vmatpush1.msra.mxu1 %v2616_v55 }
  0x84   :  { %295 = vmatmul.mubr.f32.gmra.mxu0 %v171_v56  ;;  %408 = vmatmul.mubr.f32.gmra.mxu1 %v171_v56  ;;  %v2660_v56 = vld [vmem:[#allocation10 + $0x18] sm:$0xff] }
  0x85   :  { %546 = vmatprep.subr.mxu0 %v2622_v57  ;;  %617 = vmatprep.subr.mxu1 %v2624_v58  ;;  %3537 = vst [vmem:[#allocation42_spill] sm:$0xff] %v2660_v56 }
  0x86   :  { %547 = vmatpush1.msra.mxu0 %v2628_v59  ;;  %618 = vmatpush1.msra.mxu1 %v2630_v60 }
  0x87   :  { %548 = vmatprep.subr.mxu0 %v2632_v61  ;;  %619 = vmatprep.subr.mxu1 %v2634_v62 }
  0x88   :  { %300 = vmatprep.mubr.f32.mxu0 %v3430_v0  ;;  %413 = vmatprep.mubr.f32.mxu1 %v3430_v0  ;;  %v2664_v0 = vld [vmem:[#allocation10] sm:$0xff] }
  0x89   :  { %549 = vmatpush1.msra.mxu0 %v2640_v63  ;;  %620 = vmatpush1.msra.mxu1 %v2642_v1  ;;  %3538 = vst [vmem:[#allocation43_spill] sm:$0xff] %v2664_v0  ;;  %v2668_v1 = vld [vmem:[#allocation10 + $0x10] sm:$0xff]  ;;  %v3540_v63 = vmov 0.0  }
  0x8a   :  { %301 = vmatmul.mubr.f32.gmra.mxu0 %v172_v2  ;;  %414 = vmatmul.mubr.f32.gmra.mxu1 %v172_v2  ;;  %3539 = vst [vmem:[#allocation44_spill] sm:$0xff] %v2668_v1  ;;  %v96_v2 = vld [vmem:[#allocation13] sm:$0xff] }
  0x8b   :  { %550 = vmatprep.subr.mxu0 %v2648_v11  ;;  %621 = vmatprep.subr.mxu1 %v2650_v20 }
  0x8c   :  { %551 = vmatpush1.msra.mxu0 %v2654_v29  ;;  %622 = vmatpush1.msra.mxu1 %v2656_v38 }
  0x8d   :  { %552 = vmatprep.subr.mxu0 %v2658_v47  ;;  %623 = vmatprep.subr.mxu1 %v2660_v56 }
  0x8e   :  { %553 = vmatpush1.msra.mxu0 %v2664_v0  ;;  %586 = vmatprep.mubr.f32.mxu0 %v3540_v63 }
  0x8f   :  { %624 = vmatpush1.msra.mxu1 %v2668_v1  ;;  %657 = vmatprep.mubr.f32.mxu1 %v3540_v63 }
  0x90   :  { %587 = vmatmul.mubr.f32.vlgmr.msra.gmra.mxu0 %v96_v2  ;;  %658 = vmatmul.mubr.f32.vlgmr.msra.gmra.mxu1 %v96_v2  ;;  %v3541_v2 = vld [vmem:[#allocation35_spill] sm:$0xff] }
  0x91   :  { %698 = vmatprep.subr.mxu0 %v2468_v3  ;;  %769 = vmatprep.subr.mxu1 %v2470_v4 }
  0x92   :  { %699 = vmatpush1.msra.mxu0 %v2472_v5  ;;  %770 = vmatpush1.msra.mxu1 %v2474_v6 }
  0x93   :  { %700 = vmatprep.subr.mxu0 %v2476_v7  ;;  %771 = vmatprep.subr.mxu1 %v2478_v8 }
  0x94   :  { %701 = vmatpush1.msra.mxu0 %v2484_v9  ;;  %772 = vmatpush1.msra.mxu1 %v2486_v10 }
  0x95   :  { %702 = vmatprep.subr.mxu0 %v2492_v12  ;;  %773 = vmatprep.subr.mxu1 %v2494_v13 }
  0x96   :  { %703 = vmatpush1.msra.mxu0 %v2498_v14  ;;  %774 = vmatpush1.msra.mxu1 %v2500_v15 }
  0x97   :  { %704 = vmatprep.subr.mxu0 %v2502_v16  ;;  %775 = vmatprep.subr.mxu1 %v2504_v17 }
  0x98   :  { %705 = vmatpush1.msra.mxu0 %v2510_v18  ;;  %776 = vmatpush1.msra.mxu1 %v2512_v19 }
  0x99   :  { %706 = vmatprep.subr.mxu0 %v2518_v21  ;;  %777 = vmatprep.subr.mxu1 %v2520_v22 }
  0x9a   :  { %707 = vmatpush1.msra.mxu0 %v2524_v23  ;;  %778 = vmatpush1.msra.mxu1 %v2526_v24 }
  0x9b   :  { %708 = vmatprep.subr.mxu0 %v2528_v25  ;;  %779 = vmatprep.subr.mxu1 %v2530_v26 }
  0x9c   :  { %709 = vmatpush1.msra.mxu0 %v2536_v27  ;;  %780 = vmatpush1.msra.mxu1 %v2538_v28 }
  0x9d   :  { %710 = vmatprep.subr.mxu0 %v2544_v30  ;;  %781 = vmatprep.subr.mxu1 %v2546_v31 }
  0x9e   :  { %711 = vmatpush1.msra.mxu0 %v2550_v32  ;;  %782 = vmatpush1.msra.mxu1 %v2552_v33 }
  0x9f   :  { %712 = vmatprep.subr.mxu0 %v2554_v34  ;;  %783 = vmatprep.subr.mxu1 %v2556_v35 }
  0xa0   :  { %713 = vmatpush1.msra.mxu0 %v2562_v36  ;;  %784 = vmatpush1.msra.mxu1 %v2564_v37 }
  0xa1   :  { %714 = vmatprep.subr.mxu0 %v2570_v39  ;;  %785 = vmatprep.subr.mxu1 %v2572_v40 }
  0xa2   :  { %715 = vmatpush1.msra.mxu0 %v2576_v41  ;;  %786 = vmatpush1.msra.mxu1 %v2578_v42 }
  0xa3   :  { %716 = vmatprep.subr.mxu0 %v2580_v43  ;;  %787 = vmatprep.subr.mxu1 %v2582_v44 }
  0xa4   :  { %717 = vmatpush1.msra.mxu0 %v2588_v45  ;;  %788 = vmatpush1.msra.mxu1 %v2590_v46 }
  0xa5   :  { %718 = vmatprep.subr.mxu0 %v2596_v48  ;;  %789 = vmatprep.subr.mxu1 %v2598_v49 }
  0xa6   :  { %719 = vmatpush1.msra.mxu0 %v2602_v50  ;;  %790 = vmatpush1.msra.mxu1 %v2604_v51 }
  0xa7   :  { %720 = vmatprep.subr.mxu0 %v2606_v52  ;;  %791 = vmatprep.subr.mxu1 %v2608_v53  ;;  %v3542_v52 = vld [vmem:[#allocation36_spill] sm:$0xff] }
  0xa8   :  { %721 = vmatpush1.msra.mxu0 %v2614_v54  ;;  %792 = vmatpush1.msra.mxu1 %v2616_v55 }
  0xa9   :  { %722 = vmatprep.subr.mxu0 %v2622_v57  ;;  %793 = vmatprep.subr.mxu1 %v2624_v58 }
  0xaa   :  { %723 = vmatpush1.msra.mxu0 %v2628_v59  ;;  %794 = vmatpush1.msra.mxu1 %v2630_v60 }
  0xab   :  { %724 = vmatprep.subr.mxu0 %v2632_v61  ;;  %795 = vmatprep.subr.mxu1 %v2634_v62 }
  0xac   :  { %725 = vmatpush1.msra.mxu0 %v3541_v2  ;;  %796 = vmatpush1.msra.mxu1 %v3542_v52  ;;  %v164_v52 = vld [vmem:[#allocation11] sm:$0xf] }
  0xad   :  { %726 = vmatprep.subr.mxu0 %v2648_v11  ;;  %797 = vmatprep.subr.mxu1 %v2650_v20  ;;  %v174_v20 = vlaneseq }
  0xae   :  { %727 = vmatpush1.msra.mxu0 %v2654_v29  ;;  %798 = vmatpush1.msra.mxu1 %v2656_v38 }
  0xaf   :  { %728 = vmatprep.subr.mxu0 %v2658_v47  ;;  %799 = vmatprep.subr.mxu1 %v2660_v56  ;;  %v175_v29 = vshrl.u32 %v174_v20, 7 }
  0xb0   :  { %729 = vmatpush1.msra.mxu0 %v2664_v0  ;;  %762 = vmatprep.mubr.f32.mxu0 %v3540_v63 }
  0xb1   :  { %800 = vmatpush1.msra.mxu1 %v2668_v1  ;;  %833 = vmatprep.mubr.f32.mxu1 %v3540_v63  ;;  %v176_v47 = vsub.s32 0, %v175_v29  ;;  %v184_v56 = vsub.s32 2, %v175_v29  ;;  %v180_v1 = vsub.s32 1, %v175_v29  ;;  %v188_v62 = vsub.s32 3, %v175_v29 }
  0xb2   :  { %875 = vmatprep.subr.mxu0 %v2468_v3  ;;  %946 = vmatprep.subr.mxu1 %v2470_v4 }
  0xb3   :  { %v177_v63 = vrot.slane %v164_v52, %v176_v47  ;;  %v2752_v61 = vrot.slane %v164_v52, %v184_v56  ;;  %v181_v60 = vrot.slane %v164_v52, %v180_v1  ;;  %v2754_v20 = vrot.slane %v164_v52, %v188_v62 }
 0x120   :  { %v2744_v11 = vpop.f32.mrf.mxu0  ;;  %v2746_v38 = vpop.f32.mrf.mxu1 }
 0x122   :  { %v2748_v0 = vpop.f32.mrf.mxu0  ;;  %v2750_v2 = vpop.f32.mrf.mxu1 }
 0x126   :  { %v266_v3 = vpop.f32.mrf.mxu0  ;;  %v379_v4 = vpop.f32.mrf.mxu1 }
 0x127   :  { %v2756_v59 = vadd.f32 %v266_v3, %v177_v63  ;;  %v2759_v58 = vadd.f32 %v379_v4, %v2752_v61 }
 0x128   :  { %v268_v57 = vpop.f32.mrf.mxu0  ;;  %v381_v55 = vpop.f32.mrf.mxu1 }
 0x129   :  { %3543 = vst [vmem:[#allocation45_spill] sm:$0xff] %v2756_v59  ;;  %3544 = vst [vmem:[#allocation46_spill] sm:$0xff] %v2759_v58  ;;  %v2761_v54 = vadd.f32 %v268_v57, %v181_v60  ;;  %v2764_v53 = vadd.f32 %v381_v55, %v2754_v20 }
 0x12b   :  { %3545 = vst [vmem:[#allocation47_spill] sm:$0xff] %v2761_v54  ;;  %3546 = vst [vmem:[#allocation48_spill] sm:$0xff] %v2764_v53 }
 0x12c   :  { %v272_v29 = vpop.f32.mrf.mxu0  ;;  %v385_v47 = vpop.f32.mrf.mxu1 }
 0x12d   :  { %v2766_v56 = vadd.f32 %v272_v29, %v177_v63  ;;  %v2769_v1 = vadd.f32 %v385_v47, %v2752_v61 }
 0x12e   :  { %v274_v52 = vpop.f32.mrf.mxu0  ;;  %v387_v3 = vpop.f32.mrf.mxu1 }
 0x12f   :  { %3547 = vst [vmem:[#allocation49_spill] sm:$0xff] %v2766_v56  ;;  %3548 = vst [vmem:[#allocation50_spill] sm:$0xff] %v2769_v1  ;;  %v2771_v62 = vadd.f32 %v274_v52, %v181_v60  ;;  %v2774_v4 = vadd.f32 %v387_v3, %v2754_v20 }
 0x131   :  { %3549 = vst [vmem:[#allocation51_spill] sm:$0xff] %v2771_v62  ;;  %3550 = vst [vmem:[#allocation52_spill] sm:$0xff] %v2774_v4 }
 0x132   :  { %v278_v58 = vpop.f32.mrf.mxu0  ;;  %v391_v57 = vpop.f32.mrf.mxu1 }
 0x133   :  { %v2776_v54 = vadd.f32 %v278_v58, %v177_v63  ;;  %v2779_v55 = vadd.f32 %v391_v57, %v2752_v61 }
 0x134   :  { %v280_v53 = vpop.f32.mrf.mxu0  ;;  %v393_v29 = vpop.f32.mrf.mxu1 }
 0x135   :  { %3551 = vst [vmem:[#allocation53_spill] sm:$0xff] %v2776_v54  ;;  %3552 = vst [vmem:[#allocation54_spill] sm:$0xff] %v2779_v55  ;;  %v2781_v56 = vadd.f32 %v280_v53, %v181_v60  ;;  %v2784_v47 = vadd.f32 %v393_v29, %v2754_v20 }
 0x137   :  { %3553 = vst [vmem:[#allocation55_spill] sm:$0xff] %v2781_v56  ;;  %3554 = vst [vmem:[#allocation56_spill] sm:$0xff] %v2784_v47 }
 0x138   :  { %v284_v1 = vpop.f32.mrf.mxu0  ;;  %v397_v52 = vpop.f32.mrf.mxu1 }
 0x139   :  { %v2786_v62 = vadd.f32 %v284_v1, %v177_v63  ;;  %v2789_v3 = vadd.f32 %v397_v52, %v2752_v61 }
 0x13a   :  { %v286_v4 = vpop.f32.mrf.mxu0  ;;  %v399_v58 = vpop.f32.mrf.mxu1 }
 0x13b   :  { %3555 = vst [vmem:[#allocation57_spill] sm:$0xff] %v2786_v62  ;;  %3556 = vst [vmem:[#allocation58_spill] sm:$0xff] %v2789_v3  ;;  %v2791_v54 = vadd.f32 %v286_v4, %v181_v60  ;;  %v2794_v57 = vadd.f32 %v399_v58, %v2754_v20 }
 0x13d   :  { %3557 = vst [vmem:[#allocation59_spill] sm:$0xff] %v2791_v54  ;;  %3558 = vst [vmem:[#allocation60_spill] sm:$0xff] %v2794_v57 }
 0x13e   :  { %v290_v55 = vpop.f32.mrf.mxu0  ;;  %v403_v53 = vpop.f32.mrf.mxu1 }
 0x13f   :  { %v2796_v56 = vadd.f32 %v290_v55, %v177_v63  ;;  %v2799_v29 = vadd.f32 %v403_v53, %v2752_v61 }
 0x140   :  { %v292_v47 = vpop.f32.mrf.mxu0  ;;  %v405_v1 = vpop.f32.mrf.mxu1 }
 0x141   :  { %3559 = vst [vmem:[#allocation61_spill] sm:$0xff] %v2796_v56  ;;  %3560 = vst [vmem:[#allocation62_spill] sm:$0xff] %v2799_v29  ;;  %v2801_v62 = vadd.f32 %v292_v47, %v181_v60  ;;  %v2804_v52 = vadd.f32 %v405_v1, %v2754_v20 }
 0x143   :  { %3561 = vst [vmem:[#allocation63_spill] sm:$0xff] %v2801_v62  ;;  %3562 = vst [vmem:[#allocation64_spill] sm:$0xff] %v2804_v52 }
 0x144   :  { %v296_v3 = vpop.f32.mrf.mxu0  ;;  %v409_v4 = vpop.f32.mrf.mxu1 }
 0x145   :  { %v2806_v54 = vadd.f32 %v296_v3, %v177_v63  ;;  %v2809_v58 = vadd.f32 %v409_v4, %v2752_v61 }
 0x146   :  { %v298_v57 = vpop.f32.mrf.mxu0  ;;  %v411_v55 = vpop.f32.mrf.mxu1 }
 0x147   :  { %3563 = vst [vmem:[#allocation65_spill] sm:$0xff] %v2806_v54  ;;  %3564 = vst [vmem:[#allocation66_spill] sm:$0xff] %v2809_v58  ;;  %v2811_v56 = vadd.f32 %v298_v57, %v181_v60  ;;  %v2814_v53 = vadd.f32 %v411_v55, %v2754_v20  ;;  %v261_v57 = vadd.f32 %v2744_v11, %v177_v63 }
 0x148   :  { %v263_v55 = vadd.f32 %v2748_v0, %v181_v60 }
 0x149   :  { %3565 = vst [vmem:[#allocation67_spill] sm:$0xff] %v2811_v56  ;;  %3566 = vst [vmem:[#allocation68_spill] sm:$0xff] %v2814_v53 }
 0x14a   :  { %v302_v29 = vpop.f32.mrf.mxu0  ;;  %v415_v47 = vpop.f32.mrf.mxu1 }
 0x14b   :  { %v2816_v62 = vadd.f32 %v302_v29, %v177_v63  ;;  %v2819_v1 = vadd.f32 %v415_v47, %v2752_v61 }
 0x14c   :  { %v304_v52 = vpop.f32.mrf.mxu0  ;;  %v417_v3 = vpop.f32.mrf.mxu1 }
 0x14d   :  { %3567 = vst [vmem:[#allocation69_spill] sm:$0xff] %v2816_v62  ;;  %3568 = vst [vmem:[#allocation70_spill] sm:$0xff] %v2819_v1  ;;  %v2821_v54 = vadd.f32 %v304_v52, %v181_v60  ;;  %v2824_v4 = vadd.f32 %v417_v3, %v2754_v20  ;;  %v376_v52 = vadd.f32 %v2750_v2, %v2754_v20  ;;  %v98_v2 = vld [vmem:[%s3426_s5] sm:$0xff]  ;;  %s2394_s5 = smov [#allocation15]  }
 0x14e   :  { %v374_v3 = vadd.f32 %v2746_v38, %v2752_v61  ;;  %s1957_s30 = sshll.u32 %s2394_s5, 4  ;;  %s1958_s30 = int_to_ptr.vmem [resolvable:$true] %s1957_s30 }
 0x14f   :  { %3569 = vst [vmem:[#allocation71_spill] sm:$0xff] %v2821_v54  ;;  %3570 = vst [vmem:[#allocation72_spill] sm:$0xff] %v2824_v4  ;;  %s2314_s14 = scalar_lea.vmem %s1958_s30, 128  ;;  %p2319_p12 = scmp.lt.s32.totalorder %s1958_s30, %s1958_s30 }
 0x150   :  { %v588_v58 = vpop.f32.mrf.mxu0  ;;  %v659_v62 = vpop.f32.mrf.mxu1  ;;  %p2315_p11 = scmp.ne.s32.totalorder %s1958_s30, %s2314_s14  ;;  %p2320_p13 = scmp.lt.s32.totalorder %s2314_s14, %s2314_s14 }
 0x151   :  { %v664_v53 = vadd.f32 %v588_v58, %v261_v57  ;;  %v666_v4 = vadd.f32 %v659_v62, %v374_v3  ;;  %v3575_v3 = vld [vmem:[#allocation29_spill] sm:$0xff] }
 0x152   :  { %v590_v56 = vpop.f32.mrf.mxu0  ;;  %v661_v1 = vpop.f32.mrf.mxu1  ;;  %p2321_p0 = por %p2320_p13, %p2319_p12 }
 0x153   :  { %v1985_v59 = vmul.f32 -1.442695, %v664_v53  ;;  %v665_v29 = vadd.f32 %v590_v56, %v263_v55  ;;  %v667_v54 = vadd.f32 %v661_v1, %v376_v52  ;;  %v3571_v55 = vld [vmem:[#allocation25_spill] sm:$0xff]  ;;  %v3574_v52 = vld [vmem:[#allocation28_spill] sm:$0xff] }
 0x154   :  { %p2322_p1 = pnand %p2321_p0, %p2315_p11 }
 0x155   :  { %2022 = vpow2.f32 %v1985_v59  ;;  %v1986_v47 = vmul.f32 -1.442695, %v665_v29  ;;  %v1987_v63 = vmul.f32 -1.442695, %v667_v54  ;;  %v3572_v29 = vld [vmem:[#allocation26_spill] sm:$0xff] }
 0x157   :  { %2024 = vpow2.f32 %v1986_v47  ;;  %v3573_v47 = vld [vmem:[#allocation27_spill] sm:$0xff] }
 0x158   :  { %2026 = vpow2.f32 %v1987_v63  ;;  %v3576_v63 = vld [vmem:[#allocation30_spill] sm:$0xff] }
 0x162   :  { %v2023_v11 = vpop.eup %2022 }
 0x163   :  { %v671_v0 = vadd.f32 1.0, %v2023_v11  ;;  %v3577_v11 = vld [vmem:[#allocation31_spill] sm:$0xff] }
 0x164   :  { %v2025_v60 = vpop.eup %2024 }
 0x165   :  { %2028 = vrcp.f32 %v671_v0  ;;  %v677_v56 = vadd.f32 1.0, %v2025_v60  ;;  %v2027_v59 = vpop.eup %2026  ;;  %v3578_v0 = vld [vmem:[#allocation32_spill] sm:$0xff]  ;;  %v3579_v60 = vld [vmem:[#allocation33_spill] sm:$0xff] }
 0x166   :  { %2030 = vtanh.f32 %v666_v4  ;;  %v684_v1 = vadd.f32 1.0, %v2027_v59  ;;  %v3581_v59 = vld [vmem:[#allocation35_spill] sm:$0xff] }
 0x167   :  { %2032 = vrcp.f32 %v677_v56  ;;  %v3580_v56 = vld [vmem:[#allocation34_spill] sm:$0xff] }
 0x168   :  { %2034 = vrcp.f32 %v684_v1  ;;  %v3586_v1 = vld [vmem:[#allocation40_spill] sm:$0xff] }
 0x172   :  { %v2029_v58 = vpop.eup %2028 }
 0x173   :  { %v2031_v20 = vpop.eup %2030 }
 0x174   :  { %v2033_v53 = vpop.eup %2032  ;;  %v688_v61 = vmul.f32 %v2031_v20, %v2029_v58  ;;  %v3582_v58 = vld [vmem:[#allocation36_spill] sm:$0xff]  ;;  %v3584_v20 = vld [vmem:[#allocation38_spill] sm:$0xff] }
 0x175   :  { %v687_v54 = vmul.f32 %v2033_v53, %v98_v2  ;;  %v2035_v62 = vpop.eup %2034  ;;  %v3583_v2 = vld [vmem:[#allocation37_spill] sm:$0xff]  ;;  %v3585_v53 = vld [vmem:[#allocation39_spill] sm:$0xff] }
 0x177   :  { %v2835_v38 = vadd.f32 %v688_v61, %v687_v54  ;;  %v3587_v61 = vld [vmem:[#allocation41_spill] sm:$0xff]  ;;  %v3588_v54 = vld [vmem:[#allocation42_spill] sm:$0xff] }
 0x179   :  { %2036 = vtanh.f32 %v2835_v38 }
 0x186   :  { %v2037_v57 = vpop.eup %2036 }
 0x187   :  { %v691_v4 = vmul.f32 %v2037_v57, %v2035_v62  ;;  %v3589_v62 = vld [vmem:[#allocation43_spill] sm:$0xff]  ;;  %v3590_v57 = vmov 0.0  }
 0x189   :  { %692 = vst [vmem:[#allocation14] sm:$0xff] %v691_v4  ;;  %763 = vmatmul.mubr.f32.vlgmr.msra.gmra.mxu0 %v691_v4  ;;  %834 = vmatmul.mubr.f32.vlgmr.msra.gmra.mxu1 %v691_v4  ;;  %v3591_v4 = vld [vmem:[#allocation44_spill] sm:$0xff] }
 0x18a   :  { %876 = vmatpush1.msra.mxu0 %v2472_v5  ;;  %947 = vmatpush1.msra.mxu1 %v2474_v6 }
 0x18b   :  { %877 = vmatprep.subr.mxu0 %v2476_v7  ;;  %948 = vmatprep.subr.mxu1 %v2478_v8 }
 0x18c   :  { %878 = vmatpush1.msra.mxu0 %v2484_v9  ;;  %949 = vmatpush1.msra.mxu1 %v2486_v10 }
 0x18d   :  { %879 = vmatprep.subr.mxu0 %v2492_v12  ;;  %950 = vmatprep.subr.mxu1 %v2494_v13 }
 0x18e   :  { %880 = vmatpush1.msra.mxu0 %v2498_v14  ;;  %951 = vmatpush1.msra.mxu1 %v2500_v15 }
 0x18f   :  { %881 = vmatprep.subr.mxu0 %v2502_v16  ;;  %952 = vmatprep.subr.mxu1 %v2504_v17 }
 0x190   :  { %882 = vmatpush1.msra.mxu0 %v2510_v18  ;;  %953 = vmatpush1.msra.mxu1 %v2512_v19 }
 0x191   :  { %883 = vmatprep.subr.mxu0 %v2518_v21  ;;  %954 = vmatprep.subr.mxu1 %v2520_v22 }
 0x192   :  { %884 = vmatpush1.msra.mxu0 %v2524_v23  ;;  %955 = vmatpush1.msra.mxu1 %v2526_v24 }
 0x193   :  { %885 = vmatprep.subr.mxu0 %v2528_v25  ;;  %956 = vmatprep.subr.mxu1 %v2530_v26 }
 0x194   :  { %886 = vmatpush1.msra.mxu0 %v2536_v27  ;;  %957 = vmatpush1.msra.mxu1 %v2538_v28 }
 0x195   :  { %887 = vmatprep.subr.mxu0 %v2544_v30  ;;  %958 = vmatprep.subr.mxu1 %v2546_v31 }
 0x196   :  { %888 = vmatpush1.msra.mxu0 %v2550_v32  ;;  %959 = vmatpush1.msra.mxu1 %v2552_v33 }
 0x197   :  { %889 = vmatprep.subr.mxu0 %v2554_v34  ;;  %960 = vmatprep.subr.mxu1 %v2556_v35 }
 0x198   :  { %890 = vmatpush1.msra.mxu0 %v2562_v36  ;;  %961 = vmatpush1.msra.mxu1 %v2564_v37 }
 0x199   :  { %891 = vmatprep.subr.mxu0 %v2570_v39  ;;  %962 = vmatprep.subr.mxu1 %v2572_v40 }
 0x19a   :  { %892 = vmatpush1.msra.mxu0 %v2576_v41  ;;  %963 = vmatpush1.msra.mxu1 %v2578_v42 }
 0x19b   :  { %893 = vmatprep.subr.mxu0 %v2580_v43  ;;  %964 = vmatprep.subr.mxu1 %v2582_v44 }
 0x19c   :  { %894 = vmatpush1.msra.mxu0 %v2588_v45  ;;  %965 = vmatpush1.msra.mxu1 %v2590_v46 }
 0x19d   :  { %895 = vmatprep.subr.mxu0 %v2596_v48  ;;  %966 = vmatprep.subr.mxu1 %v2598_v49 }
 0x19e   :  { %896 = vmatpush1.msra.mxu0 %v2602_v50  ;;  %967 = vmatpush1.msra.mxu1 %v2604_v51 }
 0x19f   :  { %897 = vmatprep.subr.mxu0 %v3571_v55  ;;  %968 = vmatprep.subr.mxu1 %v3572_v29 }
 0x1a0   :  { %898 = vmatpush1.msra.mxu0 %v3573_v47  ;;  %969 = vmatpush1.msra.mxu1 %v3574_v52 }
 0x1a1   :  { %899 = vmatprep.subr.mxu0 %v3575_v3  ;;  %970 = vmatprep.subr.mxu1 %v3576_v63  ;;  %v3597_v63 = vld [vmem:[#allocation46_spill] sm:$0xff] }
 0x1a2   :  { %900 = vmatpush1.msra.mxu0 %v3577_v11  ;;  %971 = vmatpush1.msra.mxu1 %v3578_v0  ;;  %v3596_v11 = vld [vmem:[#allocation48_spill] sm:$0xff] }
 0x1a3   :  { %901 = vmatprep.subr.mxu0 %v3579_v60  ;;  %972 = vmatprep.subr.mxu1 %v3580_v56 }
 0x1a4   :  { %902 = vmatpush1.msra.mxu0 %v3581_v59  ;;  %973 = vmatpush1.msra.mxu1 %v3582_v58  ;;  %v3592_v58 = vld [vmem:[#allocation23_spill] sm:$0xff] }
 0x1a5   :  { %903 = vmatprep.subr.mxu0 %v3583_v2  ;;  %974 = vmatprep.subr.mxu1 %v3584_v20  ;;  %v3593_v2 = vld [vmem:[#allocation24_spill] sm:$0xff] }
 0x1a6   :  { %904 = vmatpush1.msra.mxu0 %v3585_v53  ;;  %975 = vmatpush1.msra.mxu1 %v3586_v1  ;;  %v3594_v53 = vld [vmem:[#allocation45_spill] sm:$0xff] }
 0x1a7   :  { %905 = vmatprep.subr.mxu0 %v3587_v61  ;;  %976 = vmatprep.subr.mxu1 %v3588_v54  ;;  %v3595_v61 = vld [vmem:[#allocation47_spill] sm:$0xff] }
 0x1a8   :  { %906 = vmatpush1.msra.mxu0 %v3589_v62  ;;  %939 = vmatprep.mubr.f32.mxu0 %v3590_v57 }
 0x1a9   :  { %977 = vmatpush1.msra.mxu1 %v3591_v4  ;;  %1010 = vmatprep.mubr.f32.mxu1 %v3590_v57 }
 0x1aa   :  { %1052 = vmatprep.subr.mxu0 %v3592_v58  ;;  %1123 = vmatprep.subr.mxu1 %v3593_v2 }
 0x249   :  { %v764_v20 = vpop.f32.mrf.mxu0  ;;  %v835_v54 = vpop.f32.mrf.mxu1 }
 0x24a   :  { %v840_v59 = vadd.f32 %v764_v20, %v3594_v53  ;;  %v842_v57 = vadd.f32 %v835_v54, %v3597_v63 }
 0x24b   :  { %v766_v1 = vpop.f32.mrf.mxu0  ;;  %v837_v0 = vpop.f32.mrf.mxu1 }
 0x24c   :  { %v1988_v56 = vmul.f32 -1.442695, %v840_v59  ;;  %v841_v60 = vadd.f32 %v766_v1, %v3595_v61  ;;  %v843_v4 = vadd.f32 %v837_v0, %v3596_v11 }
 0x24e   :  { %2038 = vpow2.f32 %v1988_v56  ;;  %v1989_v62 = vmul.f32 -1.442695, %v841_v60  ;;  %v1990_v3 = vmul.f32 -1.442695, %v843_v4  ;;  %v3621_v4 = vld [vmem:[#allocation50_spill] sm:$0xff] }
 0x250   :  { %2040 = vpow2.f32 %v1989_v62 }
 0x251   :  { %2042 = vtanh.f32 %v842_v57 }
 0x252   :  { %2044 = vpow2.f32 %v1990_v3  ;;  %v3620_v3 = vld [vmem:[#allocation52_spill] sm:$0xff] }
 0x25b   :  { %v2039_v58 = vpop.eup %2038 }
 0x25c   :  { %v847_v52 = vadd.f32 1.0, %v2039_v58 }
 0x25d   :  { %v2041_v2 = vpop.eup %2040 }
 0x25e   :  { %2046 = vrcp.f32 %v847_v52  ;;  %v853_v20 = vadd.f32 1.0, %v2041_v2  ;;  %v2043_v59 = vpop.eup %2042 }
 0x25f   :  { %v2045_v53 = vpop.eup %2044 }
 0x260   :  { %2048 = vrcp.f32 %v853_v20  ;;  %v860_v61 = vadd.f32 1.0, %v2045_v53 }
 0x262   :  { %2050 = vrcp.f32 %v860_v61 }
 0x26b   :  { %v2047_v56 = vpop.eup %2046 }
 0x26c   :  { %v864_v1 = vmul.f32 %v2047_v56, %v2043_v59 }
 0x26d   :  { %v2049_v60 = vpop.eup %2048 }
 0x26e   :  { %v863_v62 = vmul.f32 %v2049_v60, %v2835_v38 }
 0x26f   :  { %v2051_v63 = vpop.eup %2050 }
 0x270   :  { %v2909_v11 = vadd.f32 %v864_v1, %v863_v62 }
 0x272   :  { %2052 = vtanh.f32 %v2909_v11 }
 0x27f   :  { %v2053_v0 = vpop.eup %2052 }
 0x280   :  { %v867_v54 = vmul.f32 %v2053_v0, %v2051_v63 }
 0x282   :  { %869 = vst [vmem:[#allocation14 + $0x8] sm:$0xff] %v867_v54  ;;  %940 = vmatmul.mubr.f32.vlgmr.msra.gmra.mxu0 %v867_v54  ;;  %1011 = vmatmul.mubr.f32.vlgmr.msra.gmra.mxu1 %v867_v54 }
 0x283   :  { %1053 = vmatpush1.msra.mxu0 %v2472_v5  ;;  %1124 = vmatpush1.msra.mxu1 %v2474_v6  ;;  %v3598_v5 = vld [vmem:[#allocation28_spill] sm:$0xff]  ;;  %v3599_v6 = vld [vmem:[#allocation29_spill] sm:$0xff] }
 0x284   :  { %1054 = vmatprep.subr.mxu0 %v2476_v7  ;;  %1125 = vmatprep.subr.mxu1 %v2478_v8  ;;  %v3600_v7 = vld [vmem:[#allocation30_spill] sm:$0xff]  ;;  %v3601_v8 = vld [vmem:[#allocation31_spill] sm:$0xff] }
 0x285   :  { %1055 = vmatpush1.msra.mxu0 %v2484_v9  ;;  %1126 = vmatpush1.msra.mxu1 %v2486_v10  ;;  %v3602_v9 = vld [vmem:[#allocation32_spill] sm:$0xff]  ;;  %v3603_v10 = vld [vmem:[#allocation33_spill] sm:$0xff] }
 0x286   :  { %1056 = vmatprep.subr.mxu0 %v2492_v12  ;;  %1127 = vmatprep.subr.mxu1 %v2494_v13  ;;  %v3604_v12 = vld [vmem:[#allocation34_spill] sm:$0xff]  ;;  %v3605_v13 = vld [vmem:[#allocation35_spill] sm:$0xff] }
 0x287   :  { %1057 = vmatpush1.msra.mxu0 %v2498_v14  ;;  %1128 = vmatpush1.msra.mxu1 %v2500_v15  ;;  %v3606_v14 = vld [vmem:[#allocation36_spill] sm:$0xff]  ;;  %v3607_v15 = vld [vmem:[#allocation37_spill] sm:$0xff] }
 0x288   :  { %1058 = vmatprep.subr.mxu0 %v2502_v16  ;;  %1129 = vmatprep.subr.mxu1 %v2504_v17  ;;  %v3608_v16 = vld [vmem:[#allocation38_spill] sm:$0xff]  ;;  %v3609_v17 = vld [vmem:[#allocation39_spill] sm:$0xff] }
 0x289   :  { %1059 = vmatpush1.msra.mxu0 %v2510_v18  ;;  %1130 = vmatpush1.msra.mxu1 %v2512_v19  ;;  %v3610_v18 = vld [vmem:[#allocation40_spill] sm:$0xff]  ;;  %v3611_v19 = vld [vmem:[#allocation41_spill] sm:$0xff] }
 0x28a   :  { %1060 = vmatprep.subr.mxu0 %v2518_v21  ;;  %1131 = vmatprep.subr.mxu1 %v2520_v22  ;;  %v3612_v21 = vld [vmem:[#allocation42_spill] sm:$0xff]  ;;  %v3613_v22 = vld [vmem:[#allocation43_spill] sm:$0xff] }
 0x28b   :  { %1061 = vmatpush1.msra.mxu0 %v2524_v23  ;;  %1132 = vmatpush1.msra.mxu1 %v2526_v24  ;;  %v3614_v23 = vmov 0.0   ;;  %v3615_v24 = vld [vmem:[#allocation44_spill] sm:$0xff] }
 0x28c   :  { %1062 = vmatprep.subr.mxu0 %v2528_v25  ;;  %1133 = vmatprep.subr.mxu1 %v2530_v26  ;;  %v2976_v25 = vld [vmem:[#allocation10 + $0x1e8] sm:$0xff]  ;;  %v2979_v26 = vld [vmem:[#allocation10 + $0x1f8] sm:$0xff] }
 0x28d   :  { %1063 = vmatpush1.msra.mxu0 %v2536_v27  ;;  %1134 = vmatpush1.msra.mxu1 %v2538_v28  ;;  %3616 = vst [vmem:[#allocation25_spill] sm:$0xff] %v2976_v25  ;;  %3617 = vst [vmem:[#allocation26_spill] sm:$0xff] %v2979_v26  ;;  %v3618_v28 = vld [vmem:[#allocation49_spill] sm:$0xff] }
 0x28e   :  { %1064 = vmatprep.subr.mxu0 %v2544_v30  ;;  %1135 = vmatprep.subr.mxu1 %v2546_v31 }
 0x28f   :  { %1065 = vmatpush1.msra.mxu0 %v2550_v32  ;;  %1136 = vmatpush1.msra.mxu1 %v2552_v33  ;;  %v3619_v33 = vld [vmem:[#allocation51_spill] sm:$0xff] }
 0x290   :  { %1066 = vmatprep.subr.mxu0 %v2554_v34  ;;  %1137 = vmatprep.subr.mxu1 %v2556_v35 }
 0x291   :  { %1067 = vmatpush1.msra.mxu0 %v2562_v36  ;;  %1138 = vmatpush1.msra.mxu1 %v2564_v37 }
 0x292   :  { %1068 = vmatprep.subr.mxu0 %v2570_v39  ;;  %1139 = vmatprep.subr.mxu1 %v2572_v40 }
 0x293   :  { %1069 = vmatpush1.msra.mxu0 %v2576_v41  ;;  %1140 = vmatpush1.msra.mxu1 %v2578_v42 }
 0x294   :  { %1070 = vmatprep.subr.mxu0 %v2580_v43  ;;  %1141 = vmatprep.subr.mxu1 %v2582_v44 }
 0x295   :  { %1071 = vmatpush1.msra.mxu0 %v2588_v45  ;;  %1142 = vmatpush1.msra.mxu1 %v2590_v46 }
 0x296   :  { %1072 = vmatprep.subr.mxu0 %v2596_v48  ;;  %1143 = vmatprep.subr.mxu1 %v2598_v49 }
 0x297   :  { %1073 = vmatpush1.msra.mxu0 %v2602_v50  ;;  %1144 = vmatpush1.msra.mxu1 %v2604_v51 }
 0x298   :  { %1074 = vmatprep.subr.mxu0 %v3571_v55  ;;  %1145 = vmatprep.subr.mxu1 %v3572_v29 }
 0x299   :  { %1075 = vmatpush1.msra.mxu0 %v3573_v47  ;;  %1146 = vmatpush1.msra.mxu1 %v3598_v5 }
 0x29a   :  { %1076 = vmatprep.subr.mxu0 %v3599_v6  ;;  %1147 = vmatprep.subr.mxu1 %v3600_v7 }
 0x29b   :  { %1077 = vmatpush1.msra.mxu0 %v3601_v8  ;;  %1148 = vmatpush1.msra.mxu1 %v3602_v9 }
 0x29c   :  { %1078 = vmatprep.subr.mxu0 %v3603_v10  ;;  %1149 = vmatprep.subr.mxu1 %v3604_v12 }
 0x29d   :  { %1079 = vmatpush1.msra.mxu0 %v3605_v13  ;;  %1150 = vmatpush1.msra.mxu1 %v3606_v14 }
 0x29e   :  { %1080 = vmatprep.subr.mxu0 %v3607_v15  ;;  %1151 = vmatprep.subr.mxu1 %v3608_v16 }
 0x29f   :  { %1081 = vmatpush1.msra.mxu0 %v3609_v17  ;;  %1152 = vmatpush1.msra.mxu1 %v3610_v18 }
 0x2a0   :  { %1082 = vmatprep.subr.mxu0 %v3611_v19  ;;  %1153 = vmatprep.subr.mxu1 %v3612_v21 }
 0x2a1   :  { %1083 = vmatpush1.msra.mxu0 %v3613_v22  ;;  %1116 = vmatprep.mubr.f32.mxu0 %v3614_v23 }
 0x2a2   :  { %1154 = vmatpush1.msra.mxu1 %v3615_v24  ;;  %1187 = vmatprep.mubr.f32.mxu1 %v3614_v23 }
 0x2a3   :  { %1229 = vmatprep.subr.mxu0 %v2976_v25  ;;  %1300 = vmatprep.subr.mxu1 %v2979_v26 }
 0x342   :  { %v941_v27 = vpop.f32.mrf.mxu0  ;;  %v1012_v35 = vpop.f32.mrf.mxu1 }
 0x343   :  { %v1017_v30 = vadd.f32 %v941_v27, %v3618_v28  ;;  %v1019_v58 = vadd.f32 %v1012_v35, %v3621_v4  ;;  %v3002_v35 = vld [vmem:[#allocation10 + $0x1c0] sm:$0xff]  ;;  %v3017_v4 = vld [vmem:[#allocation10 + $0x1b0] sm:$0xff] }
 0x344   :  { %v943_v31 = vpop.f32.mrf.mxu0  ;;  %v1014_v52 = vpop.f32.mrf.mxu1 }
 0x345   :  { %v1991_v32 = vmul.f32 -1.442695, %v1017_v30  ;;  %v1018_v34 = vadd.f32 %v943_v31, %v3619_v33  ;;  %v1020_v57 = vadd.f32 %v1014_v52, %v3620_v3  ;;  %v2993_v33 = vld [vmem:[#allocation10 + $0x1f0] sm:$0xff]  ;;  %v3008_v52 = vld [vmem:[#allocation10 + $0x1a8] sm:$0xff]  ;;  %v3011_v3 = vld [vmem:[#allocation10 + $0x1b8] sm:$0xff] }
 0x347   :  { %2054 = vpow2.f32 %v1991_v32  ;;  %v1992_v38 = vmul.f32 -1.442695, %v1018_v34  ;;  %v1993_v2 = vmul.f32 -1.442695, %v1020_v57  ;;  %v2990_v32 = vld [vmem:[#allocation10 + $0x1e0] sm:$0xff]  ;;  %v2999_v34 = vld [vmem:[#allocation10 + $0x1d8] sm:$0xff] }
 0x348   :  { %v3014_v57 = vld [vmem:[#allocation10 + $0x1a0] sm:$0xff] }
 0x349   :  { %2056 = vpow2.f32 %v1992_v38  ;;  %v3005_v38 = vld [vmem:[#allocation10 + $0x1d0] sm:$0xff] }
 0x34a   :  { %2058 = vtanh.f32 %v1019_v58  ;;  %v3020_v58 = vld [vmem:[#allocation10 + $0x188] sm:$0xff] }
 0x34b   :  { %2060 = vpow2.f32 %v1993_v2  ;;  %v3023_v2 = vld [vmem:[#allocation10 + $0x198] sm:$0xff] }
 0x354   :  { %v2055_v20 = vpop.eup %2054 }
 0x355   :  { %v1024_v59 = vadd.f32 1.0, %v2055_v20  ;;  %v3026_v20 = vld [vmem:[#allocation10 + $0x180] sm:$0xff] }
 0x356   :  { %v2057_v53 = vpop.eup %2056 }
 0x357   :  { %2062 = vrcp.f32 %v1024_v59  ;;  %v1030_v56 = vadd.f32 1.0, %v2057_v53  ;;  %v2059_v1 = vpop.eup %2058  ;;  %v3029_v59 = vld [vmem:[#allocation10 + $0x190] sm:$0xff]  ;;  %v3032_v53 = vld [vmem:[#allocation10 + $0x168] sm:$0xff] }
 0x358   :  { %v2061_v60 = vpop.eup %2060 }
 0x359   :  { %2064 = vrcp.f32 %v1030_v56  ;;  %v1037_v0 = vadd.f32 1.0, %v2061_v60  ;;  %v3035_v56 = vld [vmem:[#allocation10 + $0x178] sm:$0xff]  ;;  %v3041_v60 = vld [vmem:[#allocation10 + $0x170] sm:$0xff] }
 0x35b   :  { %2066 = vrcp.f32 %v1037_v0  ;;  %v3053_v0 = vld [vmem:[#allocation10 + $0x150] sm:$0xff] }
 0x35c   :  { %3623 = vst [vmem:[#allocation23_spill] sm:$0xff] %v3053_v0 }
 0x364   :  { %v2063_v61 = vpop.eup %2062 }
 0x365   :  { %v1041_v62 = vmul.f32 %v2063_v61, %v2059_v1  ;;  %v3038_v1 = vld [vmem:[#allocation10 + $0x160] sm:$0xff]  ;;  %v3044_v61 = vld [vmem:[#allocation10 + $0x148] sm:$0xff] }
 0x366   :  { %v2065_v63 = vpop.eup %2064 }
 0x367   :  { %v1040_v54 = vmul.f32 %v2065_v63, %v2909_v11  ;;  %v2996_v11 = vld [vmem:[#allocation10 + $0x1c8] sm:$0xff]  ;;  %v3050_v63 = vld [vmem:[#allocation10 + $0x140] sm:$0xff] }
 0x368   :  { %v2067_v28 = vpop.eup %2066  ;;  %3622 = vst [vmem:[#allocation27_spill] sm:$0xff] %v3050_v63 }
 0x369   :  { %v2987_v27 = vadd.f32 %v1041_v62, %v1040_v54  ;;  %v3047_v62 = vld [vmem:[#allocation10 + $0x158] sm:$0xff]  ;;  %v3056_v54 = vld [vmem:[#allocation10 + $0x128] sm:$0xff] }
 0x36b   :  { %2068 = vtanh.f32 %v2987_v27 }
 0x378   :  { %v2069_v30 = vpop.eup %2068 }
 0x379   :  { %v1044_v31 = vmul.f32 %v2069_v30, %v2067_v28  ;;  %v3059_v28 = vld [vmem:[#allocation10 + $0x138] sm:$0xff]  ;;  %v3062_v30 = vld [vmem:[#allocation10 + $0x120] sm:$0xff] }
 0x37b   :  { %1046 = vst [vmem:[#allocation14 + $0x10] sm:$0xff] %v1044_v31  ;;  %1117 = vmatmul.mubr.f32.vlgmr.msra.gmra.mxu0 %v1044_v31  ;;  %1188 = vmatmul.mubr.f32.vlgmr.msra.gmra.mxu1 %v1044_v31  ;;  %v3065_v31 = vld [vmem:[#allocation10 + $0x130] sm:$0xff] }
 0x37c   :  { %1230 = vmatpush1.msra.mxu0 %v2990_v32  ;;  %1301 = vmatpush1.msra.mxu1 %v2993_v33 }
 0x37d   :  { %1231 = vmatprep.subr.mxu0 %v2996_v11  ;;  %1302 = vmatprep.subr.mxu1 %v2999_v34 }
 0x37e   :  { %1232 = vmatpush1.msra.mxu0 %v3002_v35  ;;  %1303 = vmatpush1.msra.mxu1 %v3005_v38 }
 0x37f   :  { %1233 = vmatprep.subr.mxu0 %v3008_v52  ;;  %1304 = vmatprep.subr.mxu1 %v3011_v3 }
 0x380   :  { %1234 = vmatpush1.msra.mxu0 %v3014_v57  ;;  %1305 = vmatpush1.msra.mxu1 %v3017_v4 }
 0x381   :  { %1235 = vmatprep.subr.mxu0 %v3020_v58  ;;  %1306 = vmatprep.subr.mxu1 %v3023_v2 }
 0x382   :  { %1236 = vmatpush1.msra.mxu0 %v3026_v20  ;;  %1307 = vmatpush1.msra.mxu1 %v3029_v59 }
 0x383   :  { %1237 = vmatprep.subr.mxu0 %v3032_v53  ;;  %1308 = vmatprep.subr.mxu1 %v3035_v56 }
 0x384   :  { %1238 = vmatpush1.msra.mxu0 %v3038_v1  ;;  %1309 = vmatpush1.msra.mxu1 %v3041_v60 }
 0x385   :  { %1239 = vmatprep.subr.mxu0 %v3044_v61  ;;  %1310 = vmatprep.subr.mxu1 %v3047_v62 }
 0x386   :  { %1240 = vmatpush1.msra.mxu0 %v3050_v63  ;;  %1311 = vmatpush1.msra.mxu1 %v3053_v0  ;;  %v3068_v63 = vld [vmem:[#allocation10 + $0x108] sm:$0xff]  ;;  %v3071_v0 = vld [vmem:[#allocation10 + $0x118] sm:$0xff] }
 0x387   :  { %1241 = vmatprep.subr.mxu0 %v3056_v54  ;;  %1312 = vmatprep.subr.mxu1 %v3059_v28 }
 0x388   :  { %1242 = vmatpush1.msra.mxu0 %v3062_v30  ;;  %1313 = vmatpush1.msra.mxu1 %v3065_v31 }
 0x389   :  { %1243 = vmatprep.subr.mxu0 %v3068_v63  ;;  %1314 = vmatprep.subr.mxu1 %v3071_v0 }
 0x38a   :  { %1244 = vmatpush1.msra.mxu0 %v2562_v36  ;;  %1315 = vmatpush1.msra.mxu1 %v2564_v37  ;;  %v3624_v37 = vld [vmem:[#allocation53_spill] sm:$0xff] }
 0x38b   :  { %1245 = vmatprep.subr.mxu0 %v2570_v39  ;;  %1316 = vmatprep.subr.mxu1 %v2572_v40 }
 0x38c   :  { %1246 = vmatpush1.msra.mxu0 %v2576_v41  ;;  %1317 = vmatpush1.msra.mxu1 %v2578_v42  ;;  %v3625_v42 = vld [vmem:[#allocation55_spill] sm:$0xff] }
 0x38d   :  { %1247 = vmatprep.subr.mxu0 %v2580_v43  ;;  %1318 = vmatprep.subr.mxu1 %v2582_v44 }
 0x38e   :  { %1248 = vmatpush1.msra.mxu0 %v2588_v45  ;;  %1319 = vmatpush1.msra.mxu1 %v2590_v46 }
 0x38f   :  { %1249 = vmatprep.subr.mxu0 %v2596_v48  ;;  %1320 = vmatprep.subr.mxu1 %v2598_v49  ;;  %v3626_v48 = vld [vmem:[#allocation56_spill] sm:$0xff] }
 0x390   :  { %1250 = vmatpush1.msra.mxu0 %v2602_v50  ;;  %1321 = vmatpush1.msra.mxu1 %v2604_v51  ;;  %v3627_v50 = vld [vmem:[#allocation54_spill] sm:$0xff] }
 0x391   :  { %1251 = vmatprep.subr.mxu0 %v3571_v55  ;;  %1322 = vmatprep.subr.mxu1 %v3572_v29 }
 0x392   :  { %1252 = vmatpush1.msra.mxu0 %v3573_v47  ;;  %1323 = vmatpush1.msra.mxu1 %v3598_v5 }
 0x393   :  { %1253 = vmatprep.subr.mxu0 %v3599_v6  ;;  %1324 = vmatprep.subr.mxu1 %v3600_v7 }
 0x394   :  { %1254 = vmatpush1.msra.mxu0 %v3601_v8  ;;  %1325 = vmatpush1.msra.mxu1 %v3602_v9 }
 0x395   :  { %1255 = vmatprep.subr.mxu0 %v3603_v10  ;;  %1326 = vmatprep.subr.mxu1 %v3604_v12 }
 0x396   :  { %1256 = vmatpush1.msra.mxu0 %v3605_v13  ;;  %1327 = vmatpush1.msra.mxu1 %v3606_v14 }
 0x397   :  { %1257 = vmatprep.subr.mxu0 %v3607_v15  ;;  %1328 = vmatprep.subr.mxu1 %v3608_v16 }
 0x398   :  { %1258 = vmatpush1.msra.mxu0 %v3609_v17  ;;  %1329 = vmatpush1.msra.mxu1 %v3610_v18 }
 0x399   :  { %1259 = vmatprep.subr.mxu0 %v3611_v19  ;;  %1330 = vmatprep.subr.mxu1 %v3612_v21  ;;  %v3628_v19 = vld [vmem:[#allocation27_spill] sm:$0xff] }
 0x39a   :  { %1260 = vmatpush1.msra.mxu0 %v3613_v22  ;;  %1293 = vmatprep.mubr.f32.mxu0 %v3614_v23  ;;  %v3629_v21 = vld [vmem:[#allocation23_spill] sm:$0xff] }
 0x39b   :  { %1331 = vmatpush1.msra.mxu1 %v3615_v24  ;;  %1364 = vmatprep.mubr.f32.mxu1 %v3614_v23  ;;  %v3148_v22 = vld [vmem:[#allocation10 + $0x100] sm:$0xff]  ;;  %v3151_v24 = vld [vmem:[#allocation10 + $0x110] sm:$0xff] }
 0x39c   :  { %1406 = vmatprep.subr.mxu0 %v2976_v25  ;;  %1477 = vmatprep.subr.mxu1 %v2979_v26 }
 0x43b   :  { %v1118_v36 = vpop.f32.mrf.mxu0  ;;  %v1189_v44 = vpop.f32.mrf.mxu1 }
 0x43c   :  { %v1194_v39 = vadd.f32 %v1118_v36, %v3624_v37  ;;  %v1196_v51 = vadd.f32 %v1189_v44, %v3627_v50  ;;  %v3157_v36 = vld [vmem:[#allocation10 + $0xf8] sm:$0xff]  ;;  %v3160_v37 = vld [vmem:[#allocation10 + $0xe0] sm:$0xff]  ;;  %v3178_v44 = vld [vmem:[#allocation10 + $0xa8] sm:$0xff] }
 0x43d   :  { %v1120_v40 = vpop.f32.mrf.mxu0  ;;  %v1191_v46 = vpop.f32.mrf.mxu1  ;;  %v3193_v50 = vld [vmem:[#allocation10 + $0x98] sm:$0xff] }
 0x43e   :  { %v1994_v41 = vmul.f32 -1.442695, %v1194_v39  ;;  %v1195_v43 = vadd.f32 %v1120_v40, %v3625_v42  ;;  %v1197_v49 = vadd.f32 %v1191_v46, %v3626_v48  ;;  %v3163_v39 = vld [vmem:[#allocation10 + $0xf0] sm:$0xff]  ;;  %v3166_v40 = vld [vmem:[#allocation10 + $0xc8] sm:$0xff]  ;;  %v3172_v42 = vld [vmem:[#allocation10 + $0xc0] sm:$0xff] }
 0x43f   :  { %v3184_v46 = vld [vmem:[#allocation10 + $0xa0] sm:$0xff]  ;;  %v3187_v48 = vld [vmem:[#allocation10 + $0xb0] sm:$0xff] }
 0x440   :  { %2070 = vpow2.f32 %v1994_v41  ;;  %v1995_v45 = vmul.f32 -1.442695, %v1195_v43  ;;  %v1996_v55 = vmul.f32 -1.442695, %v1197_v49  ;;  %v3169_v41 = vld [vmem:[#allocation10 + $0xd8] sm:$0xff]  ;;  %v3175_v43 = vld [vmem:[#allocation10 + $0xd0] sm:$0xff] }
 0x441   :  { %v3190_v49 = vld [vmem:[#allocation10 + $0x88] sm:$0xff] }
 0x442   :  { %2072 = vpow2.f32 %v1995_v45  ;;  %v3181_v45 = vld [vmem:[#allocation10 + $0xb8] sm:$0xff] }
 0x443   :  { %2074 = vtanh.f32 %v1196_v51  ;;  %v3196_v51 = vld [vmem:[#allocation10 + $0x80] sm:$0xff] }
 0x444   :  { %2076 = vpow2.f32 %v1996_v55  ;;  %v3199_v55 = vld [vmem:[#allocation10 + $0x90] sm:$0xff] }
 0x445   :  { %3630 = vst [vmem:[#allocation24_spill] sm:$0xff] %v3199_v55 }
 0x44d   :  { %v2071_v29 = vpop.eup %2070 }
 0x44e   :  { %v1201_v47 = vadd.f32 1.0, %v2071_v29  ;;  %v3202_v29 = vld [vmem:[#allocation10 + $0x68] sm:$0xff] }
 0x44f   :  { %v2073_v5 = vpop.eup %2072  ;;  %3631 = vst [vmem:[#allocation45_spill] sm:$0xff] %v3202_v29 }
 0x450   :  { %2078 = vrcp.f32 %v1201_v47  ;;  %v1207_v6 = vadd.f32 1.0, %v2073_v5  ;;  %v2075_v7 = vpop.eup %2074  ;;  %v3205_v47 = vld [vmem:[#allocation10 + $0x78] sm:$0xff]  ;;  %v3208_v5 = vld [vmem:[#allocation10 + $0x60] sm:$0xff] }
 0x451   :  { %v2077_v8 = vpop.eup %2076  ;;  %3632 = vst [vmem:[#allocation47_spill] sm:$0xff] %v3205_v47  ;;  %3633 = vst [vmem:[#allocation48_spill] sm:$0xff] %v3208_v5 }
 0x452   :  { %2080 = vrcp.f32 %v1207_v6  ;;  %v1214_v13 = vadd.f32 1.0, %v2077_v8  ;;  %v3211_v6 = vld [vmem:[#allocation10 + $0x70] sm:$0xff]  ;;  %v3217_v8 = vld [vmem:[#allocation10 + $0x58] sm:$0xff] }
 0x453   :  { %3634 = vst [vmem:[#allocation46_spill] sm:$0xff] %v3211_v6  ;;  %3636 = vst [vmem:[#allocation29_spill] sm:$0xff] %v3217_v8 }
 0x454   :  { %2082 = vrcp.f32 %v1214_v13  ;;  %v3229_v13 = vld [vmem:[#allocation10 + $0x38] sm:$0xff] }
 0x455   :  { %3640 = vst [vmem:[#allocation33_spill] sm:$0xff] %v3229_v13 }
 0x45d   :  { %v2079_v9 = vpop.eup %2078 }
 0x45e   :  { %v1218_v10 = vmul.f32 %v2079_v9, %v2075_v7  ;;  %v3214_v7 = vld [vmem:[#allocation10 + $0x48] sm:$0xff]  ;;  %v3220_v9 = vld [vmem:[#allocation10 + $0x40] sm:$0xff] }
 0x45f   :  { %v2081_v12 = vpop.eup %2080  ;;  %3635 = vst [vmem:[#allocation28_spill] sm:$0xff] %v3214_v7  ;;  %3637 = vst [vmem:[#allocation30_spill] sm:$0xff] %v3220_v9 }
 0x460   :  { %v1217_v14 = vmul.f32 %v2081_v12, %v2987_v27  ;;  %v3154_v27 = vld [vmem:[#allocation10 + $0xe8] sm:$0xff] }
 0x461   :  { %v2083_v16 = vpop.eup %2082  ;;  %v3226_v12 = vld [vmem:[#allocation10 + $0x28] sm:$0xff] }
 0x462   :  { %v3117_v15 = vadd.f32 %v1218_v10, %v1217_v14  ;;  %v3223_v10 = vld [vmem:[#allocation10 + $0x50] sm:$0xff]  ;;  %3639 = vst [vmem:[#allocation32_spill] sm:$0xff] %v3226_v12  ;;  %v3232_v14 = vld [vmem:[#allocation10 + $0x20] sm:$0xff] }
 0x463   :  { %3638 = vst [vmem:[#allocation31_spill] sm:$0xff] %v3223_v10  ;;  %3641 = vst [vmem:[#allocation34_spill] sm:$0xff] %v3232_v14 }
 0x464   :  { %2084 = vtanh.f32 %v3117_v15 }
 0x471   :  { %v2085_v17 = vpop.eup %2084 }
 0x472   :  { %v1221_v18 = vmul.f32 %v2085_v17, %v2083_v16  ;;  %v3235_v16 = vld [vmem:[#allocation10 + $0x30] sm:$0xff]  ;;  %v3238_v17 = vld [vmem:[#allocation10 + $0x8] sm:$0xff] }
 0x473   :  { %3642 = vst [vmem:[#allocation35_spill] sm:$0xff] %v3235_v16  ;;  %3643 = vst [vmem:[#allocation36_spill] sm:$0xff] %v3238_v17 }
 0x474   :  { %1223 = vst [vmem:[#allocation14 + $0x18] sm:$0xff] %v1221_v18  ;;  %1294 = vmatmul.mubr.f32.vlgmr.msra.gmra.mxu0 %v1221_v18  ;;  %1365 = vmatmul.mubr.f32.vlgmr.msra.gmra.mxu1 %v1221_v18  ;;  %v3241_v18 = vld [vmem:[#allocation10 + $0x18] sm:$0xff] }
 0x475   :  { %1407 = vmatpush1.msra.mxu0 %v2990_v32  ;;  %1478 = vmatpush1.msra.mxu1 %v2993_v33  ;;  %3644 = vst [vmem:[#allocation37_spill] sm:$0xff] %v3241_v18 }
 0x476   :  { %1408 = vmatprep.subr.mxu0 %v2996_v11  ;;  %1479 = vmatprep.subr.mxu1 %v2999_v34 }
 0x477   :  { %1409 = vmatpush1.msra.mxu0 %v3002_v35  ;;  %1480 = vmatpush1.msra.mxu1 %v3005_v38 }
 0x478   :  { %1410 = vmatprep.subr.mxu0 %v3008_v52  ;;  %1481 = vmatprep.subr.mxu1 %v3011_v3 }
 0x479   :  { %1411 = vmatpush1.msra.mxu0 %v3014_v57  ;;  %1482 = vmatpush1.msra.mxu1 %v3017_v4 }
 0x47a   :  { %1412 = vmatprep.subr.mxu0 %v3020_v58  ;;  %1483 = vmatprep.subr.mxu1 %v3023_v2 }
 0x47b   :  { %1413 = vmatpush1.msra.mxu0 %v3026_v20  ;;  %1484 = vmatpush1.msra.mxu1 %v3029_v59 }
 0x47c   :  { %1414 = vmatprep.subr.mxu0 %v3032_v53  ;;  %1485 = vmatprep.subr.mxu1 %v3035_v56 }
 0x47d   :  { %1415 = vmatpush1.msra.mxu0 %v3038_v1  ;;  %1486 = vmatpush1.msra.mxu1 %v3041_v60 }
 0x47e   :  { %1416 = vmatprep.subr.mxu0 %v3044_v61  ;;  %1487 = vmatprep.subr.mxu1 %v3047_v62 }
 0x47f   :  { %1417 = vmatpush1.msra.mxu0 %v3628_v19  ;;  %1488 = vmatpush1.msra.mxu1 %v3629_v21 }
 0x480   :  { %1418 = vmatprep.subr.mxu0 %v3056_v54  ;;  %1489 = vmatprep.subr.mxu1 %v3059_v28 }
 0x481   :  { %1419 = vmatpush1.msra.mxu0 %v3062_v30  ;;  %1490 = vmatpush1.msra.mxu1 %v3065_v31 }
 0x482   :  { %1420 = vmatprep.subr.mxu0 %v3068_v63  ;;  %1491 = vmatprep.subr.mxu1 %v3071_v0 }
 0x483   :  { %1421 = vmatpush1.msra.mxu0 %v3148_v22  ;;  %1492 = vmatpush1.msra.mxu1 %v3151_v24 }
 0x484   :  { %1422 = vmatprep.subr.mxu0 %v3154_v27  ;;  %1493 = vmatprep.subr.mxu1 %v3157_v36 }
 0x485   :  { %1423 = vmatpush1.msra.mxu0 %v3160_v37  ;;  %1494 = vmatpush1.msra.mxu1 %v3163_v39 }
 0x486   :  { %1424 = vmatprep.subr.mxu0 %v3166_v40  ;;  %1495 = vmatprep.subr.mxu1 %v3169_v41 }
 0x487   :  { %1425 = vmatpush1.msra.mxu0 %v3172_v42  ;;  %1496 = vmatpush1.msra.mxu1 %v3175_v43 }
 0x488   :  { %1426 = vmatprep.subr.mxu0 %v3178_v44  ;;  %1497 = vmatprep.subr.mxu1 %v3181_v45 }
 0x489   :  { %1427 = vmatpush1.msra.mxu0 %v3184_v46  ;;  %1498 = vmatpush1.msra.mxu1 %v3187_v48 }
 0x48a   :  { %1428 = vmatprep.subr.mxu0 %v3190_v49  ;;  %1499 = vmatprep.subr.mxu1 %v3193_v50 }
 0x48b   :  { %1429 = vmatpush1.msra.mxu0 %v3196_v51  ;;  %1500 = vmatpush1.msra.mxu1 %v3199_v55 }
 0x48c   :  { %1430 = vmatprep.subr.mxu0 %v3202_v29  ;;  %1501 = vmatprep.subr.mxu1 %v3205_v47  ;;  %v3650_v47 = vld [vmem:[#allocation58_spill] sm:$0xff] }
 0x48d   :  { %1431 = vmatpush1.msra.mxu0 %v3208_v5  ;;  %1502 = vmatpush1.msra.mxu1 %v3211_v6  ;;  %v3649_v5 = vld [vmem:[#allocation60_spill] sm:$0xff] }
 0x48e   :  { %1432 = vmatprep.subr.mxu0 %v3214_v7  ;;  %1503 = vmatprep.subr.mxu1 %v3217_v8 }
 0x48f   :  { %1433 = vmatpush1.msra.mxu0 %v3220_v9  ;;  %1504 = vmatpush1.msra.mxu1 %v3223_v10  ;;  %v3648_v9 = vld [vmem:[#allocation59_spill] sm:$0xff] }
 0x490   :  { %1434 = vmatprep.subr.mxu0 %v3226_v12  ;;  %1505 = vmatprep.subr.mxu1 %v3229_v13  ;;  %v3244_v12 = vld [vmem:[#allocation10] sm:$0xff]  ;;  %v3248_v13 = vld [vmem:[#allocation10 + $0x10] sm:$0xff] }
 0x491   :  { %1435 = vmatpush1.msra.mxu0 %v3232_v14  ;;  %1506 = vmatpush1.msra.mxu1 %v3235_v16  ;;  %3645 = vst [vmem:[#allocation38_spill] sm:$0xff] %v3244_v12  ;;  %3646 = vst [vmem:[#allocation39_spill] sm:$0xff] %v3248_v13  ;;  %v3647_v16 = vld [vmem:[#allocation57_spill] sm:$0xff] }
 0x492   :  { %1436 = vmatprep.subr.mxu0 %v3238_v17  ;;  %1507 = vmatprep.subr.mxu1 %v3241_v18 }
 0x493   :  { %1437 = vmatpush1.msra.mxu0 %v3244_v12  ;;  %1470 = vmatprep.mubr.f32.mxu0 %v3614_v23 }
 0x494   :  { %1508 = vmatpush1.msra.mxu1 %v3248_v13  ;;  %1541 = vmatprep.mubr.f32.mxu1 %v3614_v23 }
 0x495   :  { %1583 = vmatprep.subr.mxu0 %v2976_v25  ;;  %1654 = vmatprep.subr.mxu1 %v2979_v26 }
 0x534   :  { %v1295_v17 = vpop.f32.mrf.mxu0  ;;  %v1366_v12 = vpop.f32.mrf.mxu1 }
 0x535   :  { %v1371_v14 = vadd.f32 %v1295_v17, %v3647_v16  ;;  %v1373_v23 = vadd.f32 %v1366_v12, %v3650_v47  ;;  %v3656_v12 = vld [vmem:[#allocation28_spill] sm:$0xff] }
 0x536   :  { %v1297_v18 = vpop.f32.mrf.mxu0  ;;  %v1368_v6 = vpop.f32.mrf.mxu1 }
 0x537   :  { %v1997_v10 = vmul.f32 -1.442695, %v1371_v14  ;;  %v1372_v8 = vadd.f32 %v1297_v18, %v3648_v9  ;;  %v1374_v13 = vadd.f32 %v1368_v6, %v3649_v5  ;;  %v3655_v6 = vld [vmem:[#allocation46_spill] sm:$0xff] }
 0x539   :  { %2086 = vpow2.f32 %v1997_v10  ;;  %v1998_v7 = vmul.f32 -1.442695, %v1372_v8  ;;  %v1999_v29 = vmul.f32 -1.442695, %v1374_v13  ;;  %v3657_v13 = vld [vmem:[#allocation29_spill] sm:$0xff] }
 0x53b   :  { %2088 = vpow2.f32 %v1998_v7 }
 0x53c   :  { %2090 = vtanh.f32 %v1373_v23 }
 0x53d   :  { %2092 = vpow2.f32 %v1999_v29  ;;  %v3654_v29 = vld [vmem:[#allocation48_spill] sm:$0xff] }
 0x546   :  { %v2087_v25 = vpop.eup %2086 }
 0x547   :  { %v1378_v55 = vadd.f32 1.0, %v2087_v25 }
 0x548   :  { %v2089_v26 = vpop.eup %2088 }
 0x549   :  { %2094 = vrcp.f32 %v1378_v55  ;;  %v1384_v16 = vadd.f32 1.0, %v2089_v26  ;;  %v2091_v14 = vpop.eup %2090  ;;  %v3651_v26 = vld [vmem:[#allocation24_spill] sm:$0xff]  ;;  %v3653_v55 = vld [vmem:[#allocation47_spill] sm:$0xff] }
 0x54a   :  { %v2093_v9 = vpop.eup %2092 }
 0x54b   :  { %2096 = vrcp.f32 %v1384_v16  ;;  %v1391_v7 = vadd.f32 1.0, %v2093_v9  ;;  %v3658_v16 = vld [vmem:[#allocation30_spill] sm:$0xff]  ;;  %v3660_v9 = vld [vmem:[#allocation32_spill] sm:$0xff] }
 0x54d   :  { %2098 = vrcp.f32 %v1391_v7  ;;  %v3664_v7 = vld [vmem:[#allocation36_spill] sm:$0xff] }
 0x556   :  { %v2095_v10 = vpop.eup %2094 }
 0x557   :  { %v1395_v17 = vmul.f32 %v2095_v10, %v2091_v14  ;;  %v3659_v14 = vld [vmem:[#allocation31_spill] sm:$0xff]  ;;  %v3661_v10 = vld [vmem:[#allocation33_spill] sm:$0xff] }
 0x558   :  { %v2097_v8 = vpop.eup %2096 }
 0x559   :  { %v1394_v18 = vmul.f32 %v2097_v8, %v3117_v15  ;;  %v3652_v15 = vld [vmem:[#allocation45_spill] sm:$0xff]  ;;  %v3663_v8 = vld [vmem:[#allocation35_spill] sm:$0xff] }
 0x55a   :  { %v2099_v25 = vpop.eup %2098 }
 0x55b   :  { %v3259_v5 = vadd.f32 %v1395_v17, %v1394_v18  ;;  %v3662_v17 = vld [vmem:[#allocation34_spill] sm:$0xff]  ;;  %v3665_v18 = vld [vmem:[#allocation37_spill] sm:$0xff] }
 0x55d   :  { %2100 = vtanh.f32 %v3259_v5 }
 0x56a   :  { %v2101_v23 = vpop.eup %2100 }
 0x56b   :  { %v1398_v47 = vmul.f32 %v2101_v23, %v2099_v25  ;;  %v3666_v25 = vld [vmem:[#allocation38_spill] sm:$0xff]  ;;  %v3667_v23 = vmov 0.0  }
 0x56d   :  { %1400 = vst [vmem:[#allocation14 + $0x20] sm:$0xff] %v1398_v47  ;;  %1471 = vmatmul.mubr.f32.vlgmr.msra.gmra.mxu0 %v1398_v47  ;;  %1542 = vmatmul.mubr.f32.vlgmr.msra.gmra.mxu1 %v1398_v47  ;;  %v3668_v47 = vld [vmem:[#allocation39_spill] sm:$0xff] }
 0x56e   :  { %1584 = vmatpush1.msra.mxu0 %v2990_v32  ;;  %1655 = vmatpush1.msra.mxu1 %v2993_v33 }
 0x56f   :  { %1585 = vmatprep.subr.mxu0 %v2996_v11  ;;  %1656 = vmatprep.subr.mxu1 %v2999_v34 }
 0x570   :  { %1586 = vmatpush1.msra.mxu0 %v3002_v35  ;;  %1657 = vmatpush1.msra.mxu1 %v3005_v38 }
 0x571   :  { %1587 = vmatprep.subr.mxu0 %v3008_v52  ;;  %1658 = vmatprep.subr.mxu1 %v3011_v3 }
 0x572   :  { %1588 = vmatpush1.msra.mxu0 %v3014_v57  ;;  %1659 = vmatpush1.msra.mxu1 %v3017_v4 }
 0x573   :  { %1589 = vmatprep.subr.mxu0 %v3020_v58  ;;  %1660 = vmatprep.subr.mxu1 %v3023_v2 }
 0x574   :  { %1590 = vmatpush1.msra.mxu0 %v3026_v20  ;;  %1661 = vmatpush1.msra.mxu1 %v3029_v59 }
 0x575   :  { %1591 = vmatprep.subr.mxu0 %v3032_v53  ;;  %1662 = vmatprep.subr.mxu1 %v3035_v56 }
 0x576   :  { %1592 = vmatpush1.msra.mxu0 %v3038_v1  ;;  %1663 = vmatpush1.msra.mxu1 %v3041_v60 }
 0x577   :  { %1593 = vmatprep.subr.mxu0 %v3044_v61  ;;  %1664 = vmatprep.subr.mxu1 %v3047_v62 }
 0x578   :  { %1594 = vmatpush1.msra.mxu0 %v3628_v19  ;;  %1665 = vmatpush1.msra.mxu1 %v3629_v21 }
 0x579   :  { %1595 = vmatprep.subr.mxu0 %v3056_v54  ;;  %1666 = vmatprep.subr.mxu1 %v3059_v28 }
 0x57a   :  { %1596 = vmatpush1.msra.mxu0 %v3062_v30  ;;  %1667 = vmatpush1.msra.mxu1 %v3065_v31 }
 0x57b   :  { %1597 = vmatprep.subr.mxu0 %v3068_v63  ;;  %1668 = vmatprep.subr.mxu1 %v3071_v0 }
 0x57c   :  { %1598 = vmatpush1.msra.mxu0 %v3148_v22  ;;  %1669 = vmatpush1.msra.mxu1 %v3151_v24 }
 0x57d   :  { %1599 = vmatprep.subr.mxu0 %v3154_v27  ;;  %1670 = vmatprep.subr.mxu1 %v3157_v36 }
 0x57e   :  { %1600 = vmatpush1.msra.mxu0 %v3160_v37  ;;  %1671 = vmatpush1.msra.mxu1 %v3163_v39 }
 0x57f   :  { %1601 = vmatprep.subr.mxu0 %v3166_v40  ;;  %1672 = vmatprep.subr.mxu1 %v3169_v41 }
 0x580   :  { %1602 = vmatpush1.msra.mxu0 %v3172_v42  ;;  %1673 = vmatpush1.msra.mxu1 %v3175_v43 }
 0x581   :  { %1603 = vmatprep.subr.mxu0 %v3178_v44  ;;  %1674 = vmatprep.subr.mxu1 %v3181_v45 }
 0x582   :  { %1604 = vmatpush1.msra.mxu0 %v3184_v46  ;;  %1675 = vmatpush1.msra.mxu1 %v3187_v48 }
 0x583   :  { %1605 = vmatprep.subr.mxu0 %v3190_v49  ;;  %1676 = vmatprep.subr.mxu1 %v3193_v50 }
 0x584   :  { %1606 = vmatpush1.msra.mxu0 %v3196_v51  ;;  %1677 = vmatpush1.msra.mxu1 %v3651_v26 }
 0x585   :  { %1607 = vmatprep.subr.mxu0 %v3652_v15  ;;  %1678 = vmatprep.subr.mxu1 %v3653_v55  ;;  %v3674_v55 = vld [vmem:[#allocation62_spill] sm:$0xff] }
 0x586   :  { %1608 = vmatpush1.msra.mxu0 %v3654_v29  ;;  %1679 = vmatpush1.msra.mxu1 %v3655_v6  ;;  %v3673_v29 = vld [vmem:[#allocation64_spill] sm:$0xff] }
 0x587   :  { %1609 = vmatprep.subr.mxu0 %v3656_v12  ;;  %1680 = vmatprep.subr.mxu1 %v3657_v13 }
 0x588   :  { %1610 = vmatpush1.msra.mxu0 %v3658_v16  ;;  %1681 = vmatpush1.msra.mxu1 %v3659_v14  ;;  %v3669_v14 = vld [vmem:[#allocation25_spill] sm:$0xff] }
 0x589   :  { %1611 = vmatprep.subr.mxu0 %v3660_v9  ;;  %1682 = vmatprep.subr.mxu1 %v3661_v10  ;;  %v3670_v9 = vld [vmem:[#allocation26_spill] sm:$0xff] }
 0x58a   :  { %1612 = vmatpush1.msra.mxu0 %v3662_v17  ;;  %1683 = vmatpush1.msra.mxu1 %v3663_v8  ;;  %v3671_v17 = vld [vmem:[#allocation61_spill] sm:$0xff] }
 0x58b   :  { %1613 = vmatprep.subr.mxu0 %v3664_v7  ;;  %1684 = vmatprep.subr.mxu1 %v3665_v18  ;;  %v3672_v7 = vld [vmem:[#allocation63_spill] sm:$0xff] }
 0x58c   :  { %1614 = vmatpush1.msra.mxu0 %v3666_v25  ;;  %1647 = vmatprep.mubr.f32.mxu0 %v3667_v23 }
 0x58d   :  { %1685 = vmatpush1.msra.mxu1 %v3668_v47  ;;  %1718 = vmatprep.mubr.f32.mxu1 %v3667_v23 }
 0x58e   :  { %1760 = vmatprep.subr.mxu0 %v3669_v14  ;;  %1831 = vmatprep.subr.mxu1 %v3670_v9 }
 0x62d   :  { %v1472_v10 = vpop.f32.mrf.mxu0  ;;  %v1543_v18 = vpop.f32.mrf.mxu1 }
 0x62e   :  { %v1548_v16 = vadd.f32 %v1472_v10, %v3671_v17  ;;  %v1550_v23 = vadd.f32 %v1543_v18, %v3674_v55 }
 0x62f   :  { %v1474_v8 = vpop.f32.mrf.mxu0  ;;  %v1545_v6 = vpop.f32.mrf.mxu1 }
 0x630   :  { %v2000_v13 = vmul.f32 -1.442695, %v1548_v16  ;;  %v1549_v12 = vadd.f32 %v1474_v8, %v3672_v7  ;;  %v1551_v47 = vadd.f32 %v1545_v6, %v3673_v29 }
 0x632   :  { %2102 = vpow2.f32 %v2000_v13  ;;  %v2001_v25 = vmul.f32 -1.442695, %v1549_v12  ;;  %v2002_v15 = vmul.f32 -1.442695, %v1551_v47  ;;  %v3697_v47 = vld [vmem:[#allocation69_spill] sm:$0xff] }
 0x634   :  { %2104 = vpow2.f32 %v2001_v25 }
 0x635   :  { %2106 = vtanh.f32 %v1550_v23 }
 0x636   :  { %2108 = vpow2.f32 %v2002_v15 }
 0x63f   :  { %v2103_v14 = vpop.eup %2102 }
 0x640   :  { %v1555_v26 = vadd.f32 1.0, %v2103_v14 }
 0x641   :  { %v2105_v9 = vpop.eup %2104 }
 0x642   :  { %2110 = vrcp.f32 %v1555_v26  ;;  %v1561_v10 = vadd.f32 1.0, %v2105_v9  ;;  %v2107_v16 = vpop.eup %2106 }
 0x643   :  { %v2109_v17 = vpop.eup %2108 }
 0x644   :  { %2112 = vrcp.f32 %v1561_v10  ;;  %v1568_v7 = vadd.f32 1.0, %v2109_v17 }
 0x646   :  { %2114 = vrcp.f32 %v1568_v7  ;;  %v3699_v7 = vld [vmem:[#allocation72_spill] sm:$0xff] }
 0x64f   :  { %v2111_v13 = vpop.eup %2110 }
 0x650   :  { %v1572_v8 = vmul.f32 %v2111_v13, %v2107_v16  ;;  %v3698_v16 = vld [vmem:[#allocation71_spill] sm:$0xff] }
 0x651   :  { %v2113_v12 = vpop.eup %2112 }
 0x652   :  { %v1571_v25 = vmul.f32 %v2113_v12, %v3259_v5 }
 0x653   :  { %v2115_v55 = vpop.eup %2114 }
 0x654   :  { %v3333_v29 = vadd.f32 %v1572_v8, %v1571_v25 }
 0x656   :  { %2116 = vtanh.f32 %v3333_v29 }
 0x663   :  { %v2117_v6 = vpop.eup %2116 }
 0x664   :  { %v1575_v18 = vmul.f32 %v2117_v6, %v2115_v55 }
 0x666   :  { %1577 = vst [vmem:[#allocation14 + $0x28] sm:$0xff] %v1575_v18  ;;  %1648 = vmatmul.mubr.f32.vlgmr.msra.gmra.mxu0 %v1575_v18  ;;  %1719 = vmatmul.mubr.f32.vlgmr.msra.gmra.mxu1 %v1575_v18 }
 0x667   :  { %1761 = vmatpush1.msra.mxu0 %v2990_v32  ;;  %1832 = vmatpush1.msra.mxu1 %v2993_v33  ;;  %v3675_v32 = vld [vmem:[#allocation24_spill] sm:$0xff]  ;;  %v3676_v33 = vld [vmem:[#allocation45_spill] sm:$0xff] }
 0x668   :  { %1762 = vmatprep.subr.mxu0 %v2996_v11  ;;  %1833 = vmatprep.subr.mxu1 %v2999_v34  ;;  %v3677_v11 = vld [vmem:[#allocation47_spill] sm:$0xff]  ;;  %v3678_v34 = vld [vmem:[#allocation48_spill] sm:$0xff] }
 0x669   :  { %1763 = vmatpush1.msra.mxu0 %v3002_v35  ;;  %1834 = vmatpush1.msra.mxu1 %v3005_v38  ;;  %v3679_v35 = vld [vmem:[#allocation46_spill] sm:$0xff]  ;;  %v3680_v38 = vld [vmem:[#allocation28_spill] sm:$0xff] }
 0x66a   :  { %1764 = vmatprep.subr.mxu0 %v3008_v52  ;;  %1835 = vmatprep.subr.mxu1 %v3011_v3  ;;  %v3681_v52 = vld [vmem:[#allocation29_spill] sm:$0xff]  ;;  %v3682_v3 = vld [vmem:[#allocation30_spill] sm:$0xff] }
 0x66b   :  { %1765 = vmatpush1.msra.mxu0 %v3014_v57  ;;  %1836 = vmatpush1.msra.mxu1 %v3017_v4  ;;  %v3683_v57 = vld [vmem:[#allocation31_spill] sm:$0xff]  ;;  %v3684_v4 = vld [vmem:[#allocation32_spill] sm:$0xff] }
 0x66c   :  { %1766 = vmatprep.subr.mxu0 %v3020_v58  ;;  %1837 = vmatprep.subr.mxu1 %v3023_v2  ;;  %v3685_v58 = vld [vmem:[#allocation33_spill] sm:$0xff]  ;;  %v3686_v2 = vld [vmem:[#allocation34_spill] sm:$0xff] }
 0x66d   :  { %1767 = vmatpush1.msra.mxu0 %v3026_v20  ;;  %1838 = vmatpush1.msra.mxu1 %v3029_v59  ;;  %v3687_v20 = vld [vmem:[#allocation35_spill] sm:$0xff]  ;;  %v3688_v59 = vld [vmem:[#allocation36_spill] sm:$0xff] }
 0x66e   :  { %1768 = vmatprep.subr.mxu0 %v3032_v53  ;;  %1839 = vmatprep.subr.mxu1 %v3035_v56  ;;  %v3689_v53 = vld [vmem:[#allocation37_spill] sm:$0xff]  ;;  %v3690_v56 = vld [vmem:[#allocation38_spill] sm:$0xff] }
 0x66f   :  { %1769 = vmatpush1.msra.mxu0 %v3038_v1  ;;  %1840 = vmatpush1.msra.mxu1 %v3041_v60  ;;  %v3691_v1 = vmov 0.0   ;;  %v3692_v60 = vld [vmem:[#allocation39_spill] sm:$0xff] }
 0x670   :  { %1770 = vmatprep.subr.mxu0 %v3044_v61  ;;  %1841 = vmatprep.subr.mxu1 %v3047_v62  ;;  %v3693_v62 = vld [vmem:[#allocation65_spill] sm:$0xff] }
 0x671   :  { %1771 = vmatpush1.msra.mxu0 %v3628_v19  ;;  %1842 = vmatpush1.msra.mxu1 %v3629_v21 }
 0x672   :  { %1772 = vmatprep.subr.mxu0 %v3056_v54  ;;  %1843 = vmatprep.subr.mxu1 %v3059_v28  ;;  %v3694_v28 = vld [vmem:[#allocation67_spill] sm:$0xff] }
 0x673   :  { %1773 = vmatpush1.msra.mxu0 %v3062_v30  ;;  %1844 = vmatpush1.msra.mxu1 %v3065_v31 }
 0x674   :  { %1774 = vmatprep.subr.mxu0 %v3068_v63  ;;  %1845 = vmatprep.subr.mxu1 %v3071_v0 }
 0x675   :  { %1775 = vmatpush1.msra.mxu0 %v3148_v22  ;;  %1846 = vmatpush1.msra.mxu1 %v3151_v24  ;;  %v3695_v22 = vld [vmem:[#allocation68_spill] sm:$0xff] }
 0x676   :  { %1776 = vmatprep.subr.mxu0 %v3154_v27  ;;  %1847 = vmatprep.subr.mxu1 %v3157_v36  ;;  %v3696_v27 = vld [vmem:[#allocation66_spill] sm:$0xff] }
 0x677   :  { %1777 = vmatpush1.msra.mxu0 %v3160_v37  ;;  %1848 = vmatpush1.msra.mxu1 %v3163_v39 }
 0x678   :  { %1778 = vmatprep.subr.mxu0 %v3166_v40  ;;  %1849 = vmatprep.subr.mxu1 %v3169_v41 }
 0x679   :  { %1779 = vmatpush1.msra.mxu0 %v3172_v42  ;;  %1850 = vmatpush1.msra.mxu1 %v3175_v43 }
 0x67a   :  { %1780 = vmatprep.subr.mxu0 %v3178_v44  ;;  %1851 = vmatprep.subr.mxu1 %v3181_v45 }
 0x67b   :  { %1781 = vmatpush1.msra.mxu0 %v3184_v46  ;;  %1852 = vmatpush1.msra.mxu1 %v3187_v48 }
 0x67c   :  { %1782 = vmatprep.subr.mxu0 %v3190_v49  ;;  %1853 = vmatprep.subr.mxu1 %v3193_v50 }
 0x67d   :  { %1783 = vmatpush1.msra.mxu0 %v3196_v51  ;;  %1854 = vmatpush1.msra.mxu1 %v3675_v32 }
 0x67e   :  { %1784 = vmatprep.subr.mxu0 %v3676_v33  ;;  %1855 = vmatprep.subr.mxu1 %v3677_v11 }
 0x67f   :  { %1785 = vmatpush1.msra.mxu0 %v3678_v34  ;;  %1856 = vmatpush1.msra.mxu1 %v3679_v35 }
 0x680   :  { %1786 = vmatprep.subr.mxu0 %v3680_v38  ;;  %1857 = vmatprep.subr.mxu1 %v3681_v52 }
 0x681   :  { %1787 = vmatpush1.msra.mxu0 %v3682_v3  ;;  %1858 = vmatpush1.msra.mxu1 %v3683_v57 }
 0x682   :  { %1788 = vmatprep.subr.mxu0 %v3684_v4  ;;  %1859 = vmatprep.subr.mxu1 %v3685_v58 }
 0x683   :  { %1789 = vmatpush1.msra.mxu0 %v3686_v2  ;;  %1860 = vmatpush1.msra.mxu1 %v3687_v20 }
 0x684   :  { %1790 = vmatprep.subr.mxu0 %v3688_v59  ;;  %1861 = vmatprep.subr.mxu1 %v3689_v53 }
 0x685   :  { %1791 = vmatpush1.msra.mxu0 %v3690_v56  ;;  %1824 = vmatprep.mubr.f32.mxu0 %v3691_v1 }
 0x686   :  { %1862 = vmatpush1.msra.mxu1 %v3692_v60  ;;  %1895 = vmatprep.mubr.f32.mxu1 %v3691_v1 }
 0x726   :  { %v1649_v61 = vpop.f32.mrf.mxu0  ;;  %v1720_v31 = vpop.f32.mrf.mxu1 }
 0x727   :  { %v1725_v63 = vadd.f32 %v1649_v61, %v3693_v62  ;;  %v1727_v36 = vadd.f32 %v1720_v31, %v3696_v27 }
 0x728   :  { %v1651_v0 = vpop.f32.mrf.mxu0  ;;  %v1722_v21 = vpop.f32.mrf.mxu1 }
 0x729   :  { %v2003_v54 = vmul.f32 -1.442695, %v1725_v63  ;;  %v1726_v30 = vadd.f32 %v1651_v0, %v3694_v28  ;;  %v1728_v24 = vadd.f32 %v1722_v21, %v3695_v22 }
 0x72b   :  { %2118 = vpow2.f32 %v2003_v54  ;;  %v2004_v19 = vmul.f32 -1.442695, %v1726_v30  ;;  %v2005_v37 = vmul.f32 -1.442695, %v1728_v24 }
 0x72d   :  { %2120 = vpow2.f32 %v2004_v19 }
 0x72e   :  { %2122 = vtanh.f32 %v1727_v36 }
 0x72f   :  { %2124 = vpow2.f32 %v2005_v37 }
 0x738   :  { %v2119_v39 = vpop.eup %2118 }
 0x739   :  { %v1732_v40 = vadd.f32 1.0, %v2119_v39 }
 0x73a   :  { %v2121_v41 = vpop.eup %2120 }
 0x73b   :  { %2126 = vrcp.f32 %v1732_v40  ;;  %v1738_v42 = vadd.f32 1.0, %v2121_v41  ;;  %v2123_v43 = vpop.eup %2122 }
 0x73c   :  { %v2125_v44 = vpop.eup %2124 }
 0x73d   :  { %2128 = vrcp.f32 %v1738_v42  ;;  %v1745_v49 = vadd.f32 1.0, %v2125_v44 }
 0x73f   :  { %2130 = vrcp.f32 %v1745_v49 }
 0x748   :  { %v2127_v45 = vpop.eup %2126 }
 0x749   :  { %v1749_v46 = vmul.f32 %v2127_v45, %v2123_v43 }
 0x74a   :  { %v2129_v48 = vpop.eup %2128 }
 0x74b   :  { %v1748_v50 = vmul.f32 %v2129_v48, %v3333_v29  ;;  %v3700_v29 = vld [vmem:[#allocation70_spill] sm:$0xff] }
 0x74c   :  { %v2131_v5 = vpop.eup %2130 }
 0x74d   :  { %v1750_v51 = vadd.f32 %v1749_v46, %v1748_v50 }
 0x74f   :  { %2132 = vtanh.f32 %v1750_v51 }
 0x75c   :  { %v2133_v26 = vpop.eup %2132 }
 0x75d   :  { %v1752_v15 = vmul.f32 %v2133_v26, %v2131_v5 }
 0x75f   :  { %1754 = vst [vmem:[#allocation14 + $0x30] sm:$0xff] %v1752_v15  ;;  %1825 = vmatmul.mubr.f32.vlgmr.msra.gmra.mxu0 %v1752_v15  ;;  %1896 = vmatmul.mubr.f32.vlgmr.msra.gmra.mxu1 %v1752_v15 }
 0x81f   :  { %v1826_v23 = vpop.f32.mrf.mxu0  ;;  %v1897_v13 = vpop.f32.mrf.mxu1 }
 0x820   :  { %v1902_v14 = vadd.f32 %v1826_v23, %v3697_v47  ;;  %v1904_v55 = vadd.f32 %v1897_v13, %v3700_v29 }
 0x821   :  { %v1828_v9 = vpop.f32.mrf.mxu0  ;;  %v1899_v12 = vpop.f32.mrf.mxu1 }
 0x822   :  { %v2006_v10 = vmul.f32 -1.442695, %v1902_v14  ;;  %v1903_v17 = vadd.f32 %v1828_v9, %v3698_v16  ;;  %v1905_v25 = vadd.f32 %v1899_v12, %v3699_v7 }
 0x824   :  { %2134 = vpow2.f32 %v2006_v10  ;;  %v2007_v8 = vmul.f32 -1.442695, %v1903_v17  ;;  %v2008_v6 = vmul.f32 -1.442695, %v1905_v25 }
 0x826   :  { %2136 = vpow2.f32 %v2007_v8 }
 0x827   :  { %2138 = vtanh.f32 %v1904_v55 }
 0x828   :  { %2140 = vpow2.f32 %v2008_v6 }
 0x831   :  { %v2135_v18 = vpop.eup %2134 }
 0x832   :  { %v1909_v32 = vadd.f32 1.0, %v2135_v18 }
 0x833   :  { %v2137_v33 = vpop.eup %2136 }
 0x834   :  { %2142 = vrcp.f32 %v1909_v32  ;;  %v1915_v11 = vadd.f32 1.0, %v2137_v33  ;;  %v2139_v34 = vpop.eup %2138 }
 0x835   :  { %v2141_v35 = vpop.eup %2140 }
 0x836   :  { %2144 = vrcp.f32 %v1915_v11  ;;  %v1922_v57 = vadd.f32 1.0, %v2141_v35 }
 0x838   :  { %2146 = vrcp.f32 %v1922_v57 }
 0x841   :  { %v2143_v38 = vpop.eup %2142 }
 0x842   :  { %v1926_v52 = vmul.f32 %v2143_v38, %v2139_v34 }
 0x843   :  { %v2145_v3 = vpop.eup %2144 }
 0x844   :  { %v1925_v4 = vmul.f32 %v2145_v3, %v1750_v51 }
 0x845   :  { %v2147_v2 = vpop.eup %2146 }
 0x846   :  { %v1927_v58 = vadd.f32 %v1926_v52, %v1925_v4 }
 0x848   :  { %2148 = vtanh.f32 %v1927_v58  ;;  %1938 = vst [vmem:[#allocation17] sm:$0xff] %v1927_v58 }
 0x855   :  { %v2149_v20 = vpop.eup %2148 }
 0x856   :  { %v1929_v59 = vmul.f32 %v2149_v20, %v2147_v2 }
 0x858   :  { %1931 = vst [vmem:[#allocation14 + $0x38] sm:$0xff] %v1929_v59  ;;  %1937 = vst [vmem:[#allocation15] sm:$0xff] %v1929_v59 }
 0x859   :  { %2325 = shalt.err (!%p2322_p1)
}
 0x85a   :  { %1960 = dma.vmem_to_hbm [thread:$0]  %s1958_s30, 128, %s3428_s7, [#allocation16]  }
 0x85b   :  { %s2334_s17 = scalar_lea.vmem %s1945_s11, 1024  ;;  %p2339_p3 = scmp.lt.s32.totalorder %s1945_s11, %s1945_s11 }
 0x85c   :  { %p2335_p2 = scmp.ne.s32.totalorder %s1945_s11, %s2334_s17  ;;  %p2340_p4 = scmp.lt.s32.totalorder %s2334_s17, %s2334_s17 }
 0x85e   :  { %p2341_p5 = por %p2340_p4, %p2339_p3 }
 0x860   :  { %p2342_p6 = pnand %p2341_p5, %p2335_p2 }
 0x862   :  { %2345 = shalt.err (!%p2342_p6)
}
 0x863   :  { %1950 = dma.vmem_to_hbm [thread:$0]  %s1945_s11, 1024, %s3427_s6, [#allocation7], %s2389_s1, %s2389_s1, %s2390_s20  }
 0x864   :  { %s2354_s21 = scalar_lea.vmem %s1968_s13, 128  ;;  %p2359_p8 = scmp.lt.s32.totalorder %s1968_s13, %s1968_s13 }
 0x865   :  { %p2355_p7 = scmp.ne.s32.totalorder %s1968_s13, %s2354_s21  ;;  %p2360_p9 = scmp.lt.s32.totalorder %s2354_s21, %s2354_s21 }
 0x867   :  { %p2361_p10 = por %p2360_p9, %p2359_p8 }
 0x869   :  { %p2362_p11 = pnand %p2361_p10, %p2355_p7 }
 0x86b   :  { %2365 = shalt.err (!%p2362_p11)
}
 0x86c   :  { %1970 = dma.vmem_to_hbm [thread:$0]  %s1968_s13, 128, %s3429_s8, [#allocation16]  }
 0x86d   :  { %2380 = dma.done.wait [#allocation7], 1024  }
 0x86e   :  { %2381 = vsyncadd [#allocation7], 4294966272 }
 0x86f   :  { %2382 = dma.done.wait [#allocation16], 256  }
 0x870   :  { %2383 = vsyncadd [#allocation16], 4294967040 }
 0x871   :  { %1980 = vsyncpa [#allocation6], 1 }
 0x872   :  { %1981 = vsyncpa [#allocation9], 1 }
 0x873   :  { %1982 = vsyncpa [#allocation12], 1 }
 0x874   :  { %1983 = vsyncpa [#allocation7], 1 }
 0x875   :  { %1984 = vsyncpa [#allocation16], 1 }

</bundles_post_ra>
